<compile_context>
chip_gen: v6e
topology: v6e:2x2x1
jax: 0.10.0
libtpu: 0.0.40
codegen_flags: <defaults>
</compile_context>

<pallas_src>
import functools

import jax
import jax.numpy as jnp
import numpy as np
from jax.experimental import pallas as pl
from jax.experimental.pallas import tpu as pltpu


def _rgat_kernel(tile_rel_ref,                      # scalar prefetch (used only by index_map)
                 src_col_ref, dst_row_ref, sr_ref, hcat_ref, w_ref, expand_ref,
                 o_ref, *, negative_slope, bn_eps):
    step = pl.program_id(0)
    n_nodes, out_feat = o_ref.shape
    tile_e = src_col_ref.shape[0]
    in_feat = hcat_ref.shape[1] // 2

    @pl.when(step == 0)
    def _():
        o_ref[...] = jnp.zeros_like(o_ref)

    src_ids = src_col_ref[...]                       # (TE, 1) int32
    dst_ids = dst_row_ref[...]                       # (1, TE) int32

    # --- src feature gather: bf16 one-hot (exact) @ hi/lo-split bf16 h ------
    col_iota = jax.lax.broadcasted_iota(jnp.int32, (tile_e, n_nodes), 1)
    src_oh = (col_iota == src_ids).astype(jnp.bfloat16)              # (TE, N)
    feat2 = jnp.dot(src_oh, hcat_ref[...],
                    preferred_element_type=jnp.float32)              # (TE, 2*Fin)
    src_feat = feat2[:, :in_feat] + feat2[:, in_feat:]               # ~exact f32 gather

    # --- relation-specific projection fused with attn_l ---------------------
    # w_ref is the (Fin, Fout+H) slice for THIS tile's relation (index_map).
    y = jnp.dot(src_feat, w_ref[...], preferred_element_type=jnp.float32)
    msg = y[:, :out_feat]                                            # (TE, Fout)
    score = y[:, out_feat:] + sr_ref[...]                            # (TE, H)

    # --- attention: leaky_relu + softmax over heads (EXACT divide) ----------
    score = jnp.where(score > 0, score, negative_slope * score)
    score = score - jnp.max(score, axis=-1, keepdims=True)
    p = jnp.exp(score)
    attn = p / jnp.sum(p, axis=-1, keepdims=True)                    # (TE, H)

    # broadcast per-head weight back to per-feature and scale the message
    attn_full = jnp.dot(attn, expand_ref[...],
                        preferred_element_type=jnp.float32)          # (TE, Fout)
    msg = msg * attn_full

    # --- scatter-add: bf16 one-hot @ hi/lo-split bf16 message ---------------
    # Padded edges carry dst == n_nodes and never match -> contribute nothing.
    row_iota = jax.lax.broadcasted_iota(jnp.int32, (n_nodes, tile_e), 0)
    scat = (row_iota == dst_ids).astype(jnp.bfloat16)                # (N, TE)
    msg_hi = msg.astype(jnp.bfloat16)
    msg_lo = (msg - msg_hi.astype(jnp.float32)).astype(jnp.bfloat16)
    msg_cat = jnp.concatenate([msg_hi, msg_lo], axis=1)              # (TE, 2*Fout)
    part = jnp.dot(scat, msg_cat, preferred_element_type=jnp.float32)  # (N, 2*Fout)
    o_ref[...] += part[:, :out_feat] + part[:, out_feat:]

    # --- finalize: BatchNorm1d (training mode, exact two-pass variance) -----
    @pl.when(step == pl.num_programs(0) - 1)
    def _():
        acc = o_ref[...]
        mean = jnp.mean(acc, axis=0, keepdims=True)
        centered = acc - mean
        var = jnp.mean(centered * centered, axis=0, keepdims=True)
        o_ref[...] = centered / jnp.sqrt(var + bn_eps)


def _sort_and_pad_edges(src_idx, dst_idx, rel_type, num_rels, n_nodes, tile_e):
    """Host-side one-off graph preprocessing: group edges by relation and pad
    every group to a whole number of edge tiles.  Padded edges use src=0 and
    the out-of-range dst sentinel n_nodes (so they scatter nowhere)."""
    src = np.asarray(jax.device_get(src_idx)).astype(np.int32)
    dst = np.asarray(jax.device_get(dst_idx)).astype(np.int32)
    rel = np.asarray(jax.device_get(rel_type)).astype(np.int32)
    src_parts, dst_parts, tile_rel = [], [], []
    for r in range(num_rels):
        sel = rel == r
        s, d = src[sel], dst[sel]
        if s.size == 0:
            continue
        n_pad = ((s.size + tile_e - 1) // tile_e) * tile_e
        pad = n_pad - s.size
        src_parts.append(np.concatenate([s, np.zeros(pad, np.int32)]))
        dst_parts.append(np.concatenate([d, np.full(pad, n_nodes, np.int32)]))
        tile_rel.extend([r] * (n_pad // tile_e))
    if not tile_rel:                      # graph with no edges: one dummy tile
        src_parts = [np.zeros(tile_e, np.int32)]
        dst_parts = [np.full(tile_e, n_nodes, np.int32)]
        tile_rel = [0]
    return (np.concatenate(src_parts), np.concatenate(dst_parts),
            np.asarray(tile_rel, np.int32))


def rgat_layer_forward(h, weight, attn_l, attn_r, src_idx, dst_idx, rel_type,
                       *, num_heads, negative_slope=0.2, bn_eps=1e-5,
                       tile_e=512, vmem_limit_bytes=48 * 1024 * 1024):
    """Pallas implementation of RGATLayer.forward (non-input, non-output layer,
    num_bases=-1, bias=None, activation=None, training-mode BatchNorm)."""
    n_nodes, in_feat = h.shape
    num_rels, w_in, out_feat = weight.shape
    assert w_in == in_feat
    assert in_feat == out_feat, "non-input RGAT layer reuses 'h' on both sides"
    assert out_feat % num_heads == 0
    assert tile_e % 128 == 0
    head_out_dim = out_feat // num_heads
    hi = jax.lax.Precision.HIGHEST

    # ---- host-side edge preprocessing (sort by relation, pad per group) ----
    src_p, dst_p, tile_rel_np = _sort_and_pad_edges(
        src_idx, dst_idx, rel_type, num_rels, n_nodes, tile_e)
    num_tiles = int(tile_rel_np.shape[0])
    e_pad = num_tiles * tile_e

    src_col = jnp.asarray(src_p).reshape(e_pad, 1)
    dst_row = jnp.asarray(dst_p).reshape(1, e_pad)
    tile_rel = jnp.asarray(tile_rel_np)

    # ---- small precomputed operands (once, outside the edge loop) ----------
    h32 = h.astype(jnp.float32)
    w32 = weight.astype(jnp.float32)

    eye_h = jnp.eye(num_heads, dtype=jnp.float32)
    # attn_l_mat[h*hd + d, k] = attn_l[h, d] * (k == h)
    attn_l_mat = jnp.einsum('hd,hk->hdk', attn_l.astype(jnp.float32),
                            eye_h).reshape(out_feat, num_heads)      # (Fout, H)
    # w_cat[r] = [W_r | W_r @ attn_l_mat]  -> msg and score_l from one matmul
    w_cat = jnp.concatenate(
        [w32, jnp.einsum('rio,oh->rih', w32, attn_l_mat, precision=hi)],
        axis=2)                                                      # (R, Fin, Fout+H)

    head_expand = jnp.repeat(eye_h, head_out_dim, axis=1)            # (H, Fout)

    # per-node right score, gathered per (sorted, padded) edge in the wrapper
    node_sr = jnp.einsum('nhd,hd->nh',
                         h32.reshape(n_nodes, num_heads, head_out_dim),
                         attn_r.astype(jnp.float32), precision=hi)   # (N, H)
    sr_edge = node_sr[jnp.clip(jnp.asarray(src_p) * 0 +
                               jnp.asarray(dst_p), 0, n_nodes - 1)]  # (E_pad, H)

    # hi/lo bf16 split of node features (recombines to ~f32 exactly)
    h_hi = h32.astype(jnp.bfloat16)
    h_lo = (h32 - h_hi.astype(jnp.float32)).astype(jnp.bfloat16)
    h_cat = jnp.concatenate([h_hi, h_lo], axis=1)                    # (N, 2*Fin) bf16

    kernel = functools.partial(_rgat_kernel,
                               negative_slope=negative_slope, bn_eps=bn_eps)

    grid_spec = pltpu.PrefetchScalarGridSpec(
        num_scalar_prefetch=1,                 # tile_rel -> SMEM, used by W index_map
        grid=(num_tiles,),
        in_specs=[
            pl.BlockSpec((tile_e, 1), lambda i, tr: (i, 0)),           # src ids (col)
            pl.BlockSpec((1, tile_e), lambda i, tr: (0, i)),           # dst ids (row)
            pl.BlockSpec((tile_e, num_heads), lambda i, tr: (i, 0)),   # score_r per edge
            pl.BlockSpec((n_nodes, 2 * in_feat), lambda i, tr: (0, 0)),  # h hi/lo (resident)
            pl.BlockSpec((None, in_feat, out_feat + num_heads),
                         lambda i, tr: (tr[i], 0, 0)),                 # this tile's relation W
            pl.BlockSpec((num_heads, out_feat), lambda i, tr: (0, 0)), # head expand (resident)
        ],
        out_specs=pl.BlockSpec((n_nodes, out_feat), lambda i, tr: (0, 0)),
    )

    return pl.pallas_call(
        kernel,
        out_shape=jax.ShapeDtypeStruct((n_nodes, out_feat), jnp.float32),
        grid_spec=grid_spec,
        compiler_params=pltpu.CompilerParams(
            # edge-tile axis is a reduction into one resident accumulator
            dimension_semantics=("arbitrary",),
            vmem_limit_bytes=vmem_limit_bytes,
        ),
    )(tile_rel, src_col, dst_row, sr_edge, h_cat, w_cat, head_expand)


# --------------------------- pure-JAX reference ------------------------------
def rgat_reference(h, weight, attn_l, attn_r, src_idx, dst_idx, rel_type,
                   *, num_heads, negative_slope=0.2, bn_eps=1e-5):
    n_nodes, _ = h.shape
    _, _, out_feat = weight.shape
    e = src_idx.shape[0]
    hd = out_feat // num_heads
    hi = jax.lax.Precision.HIGHEST
    src_h = h[src_idx]
    dst_h = h[dst_idx]
    msg = jnp.einsum('ei,eio->eo', src_h, weight[rel_type], precision=hi)
    msg_h = msg.reshape(e, num_heads, hd)
    dst_hh = dst_h.reshape(e, num_heads, hd)
    sl = (msg_h * attn_l).sum(-1)
    sr = (dst_hh * attn_r).sum(-1)
    s = jnp.where(sl + sr > 0, sl + sr, negative_slope * (sl + sr))
    a = jax.nn.softmax(s, axis=1)
    msg2 = (msg_h * a[..., None]).reshape(e, out_feat)
    h_out = jnp.zeros((n_nodes, out_feat), jnp.float32).at[dst_idx].add(msg2)
    mean = h_out.mean(axis=0, keepdims=True)
    var = ((h_out - mean) ** 2).mean(axis=0, keepdims=True)
    return (h_out - mean) / jnp.sqrt(var + bn_eps)


# --------------------------- parameter init ----------------------------------
def xavier_uniform(key, shape, gain):
    if len(shape) == 2:
        fan_in, fan_out = shape[1], shape[0]
    else:  # PyTorch convention for >2-D tensors
        receptive = int(np.prod(shape[2:]))
        fan_in, fan_out = shape[1] * receptive, shape[0] * receptive
    a = gain * np.sqrt(6.0 / (fan_in + fan_out))
    return jax.random.uniform(key, shape, jnp.float32, minval=-a, maxval=a)


if __name__ == "__main__":
    # Small config consistent with the module (non-input layer: in_feat == out_feat).
    in_feat = out_feat = 32
    num_rels = 4
    num_heads = 8
    negative_slope = 0.2
    n_nodes, n_edges = 16, 32

    key = jax.random.PRNGKey(0)
    k_w, k_al, k_ar, k_h, k_src, k_dst, k_rel = jax.random.split(key, 7)

    gain = float(np.sqrt(2.0 / (1.0 + negative_slope ** 2)))  # calculate_gain('leaky_relu', 0.2)
    weight = xavier_uniform(k_w, (num_rels, in_feat, out_feat), gain)  # num_bases == num_rels
    attn_l = xavier_uniform(k_al, (num_heads, out_feat // num_heads), gain)
    attn_r = xavier_uniform(k_ar, (num_heads, out_feat // num_heads), gain)

    h = jax.random.normal(k_h, (n_nodes, in_feat), jnp.float32)        # node features 'h'
    src_idx = jax.random.randint(k_src, (n_edges,), 0, n_nodes)
    dst_idx = jax.random.randint(k_dst, (n_edges,), 0, n_nodes)
    rel_type = jax.random.randint(k_rel, (n_edges,), 0, num_rels)

    out = rgat_layer_forward(h, weight, attn_l, attn_r, src_idx, dst_idx, rel_type,
                             num_heads=num_heads, negative_slope=negative_slope)
    out = jax.block_until_ready(out)

    ref = rgat_reference(h, weight, attn_l, attn_r, src_idx, dst_idx, rel_type,
                         num_heads=num_heads, negative_slope=negative_slope)
    np.testing.assert_allclose(np.asarray(out), np.asarray(ref), rtol=2e-3, atol=2e-3)

    # TODO(synk): is_input_layer=True embedding-lookup message path and the bias /
    # custom activation branches are not exercised (module defaults disable them).
    print("KERNEL_OK")
</pallas_src>

<mosaic_0001>
module attributes {stable_mosaic.version = 11 : i64} {
  func.func @_rgat_kernel(%arg0: i32, %arg1: memref<4xi32, #tpu.memory_space<smem>>, %arg2: memref<512x1xi32, #tpu.memory_space<vmem>>, %arg3: memref<1x512xi32, #tpu.memory_space<vmem>>, %arg4: memref<512x8xf32, #tpu.memory_space<vmem>>, %arg5: memref<16x64xbf16, #tpu.memory_space<vmem>>, %arg6: memref<1x32x40xf32, #tpu.memory_space<vmem>>, %arg7: memref<8x32xf32, #tpu.memory_space<vmem>>, %arg8: memref<16x32xf32, #tpu.memory_space<vmem>>) attributes {dimension_semantics = [#tpu.dimension_semantics<arbitrary>], iteration_bounds = array<i64: 4>, scalar_prefetch = 1 : i64, scratch_operands = 0 : i64, tpu.core_type = #tpu.core_type<tc>, window_params = [{transform_indices = @transform_0, window_bounds = array<i64: 512, 1>}, {transform_indices = @transform_1, window_bounds = array<i64: 1, 512>}, {transform_indices = @transform_2, window_bounds = array<i64: 512, 8>}, {pipeline_mode = #tpu.pipeline_mode<synchronous>, transform_indices = @transform_3, window_bounds = array<i64: 16, 64>}, {transform_indices = @transform_4, window_bounds = array<i64: 1, 32, 40>}, {pipeline_mode = #tpu.pipeline_mode<synchronous>, transform_indices = @transform_5, window_bounds = array<i64: 8, 32>}, {pipeline_mode = #tpu.pipeline_mode<synchronous>, transform_indices = @transform_6, window_bounds = array<i64: 16, 32>}]} {
    %c0_i32 = arith.constant 0 : i32
    %0 = arith.cmpi eq, %arg0, %c0_i32 : i32
    %1 = arith.extui %0 : i1 to i32
    %c0_i32_0 = arith.constant 0 : i32
    %2 = arith.cmpi ne, %1, %c0_i32_0 : i32
    scf.if %2 {
      %cst_25 = arith.constant 0.000000e+00 : f32
      %61 = vector.broadcast %cst_25 : f32 to vector<16x32xf32>
      %c0_26 = arith.constant 0 : index
      %c0_27 = arith.constant 0 : index
      %62 = vector.load %arg8[%c0_26, %c0_27] : memref<16x32xf32, #tpu.memory_space<vmem>>, vector<16x32xf32>
      tpu.vector_store %arg8[%c0_26, %c0_27], %61 {strides = array<i32>} : memref<16x32xf32, #tpu.memory_space<vmem>>, vector<16x32xf32>,
    } else {
    }
    %c0 = arith.constant 0 : index
    %c0_1 = arith.constant 0 : index
    %3 = vector.load %arg2[%c0, %c0_1] : memref<512x1xi32, #tpu.memory_space<vmem>>, vector<512x1xi32>
    %c0_2 = arith.constant 0 : index
    %c0_3 = arith.constant 0 : index
    %4 = vector.load %arg3[%c0_2, %c0_3] : memref<1x512xi32, #tpu.memory_space<vmem>>, vector<1x512xi32>
    %5 = tpu.iota {dimensions = array<i32: 1>} : vector<512x16xi32>
    %6 = vector.broadcast %3 : vector<512x1xi32> to vector<512x16xi32>
    %7 = arith.cmpi eq, %5, %6 : vector<512x16xi32>
    %8 = arith.extui %7 : vector<512x16xi1> to vector<512x16xi32>
    %9 = arith.sitofp %8 : vector<512x16xi32> to vector<512x16xf32>
    %10 = arith.truncf %9 : vector<512x16xf32> to vector<512x16xbf16>
    %c0_4 = arith.constant 0 : index
    %c0_5 = arith.constant 0 : index
    %11 = vector.load %arg5[%c0_4, %c0_5] : memref<16x64xbf16, #tpu.memory_space<vmem>>, vector<16x64xbf16>
    %cst = arith.constant dense<0.000000e+00> : vector<512x64xf32>
    %12 = tpu.matmul %10, %11, %cst {dimension_numbers = #tpu.dot_dimension_numbers<[1], [0], [0], [1], [0, 0, 1, 1], [], []>} : vector<512x16xbf16>, vector<16x64xbf16>, vector<512x64xf32> -> vector<512x64xf32>
    %13 = vector.extract_strided_slice %12 {offsets = [0, 0], sizes = [512, 32], strides = [1, 1]} : vector<512x64xf32> to vector<512x32xf32>
    %14 = vector.extract_strided_slice %12 {offsets = [0, 32], sizes = [512, 32], strides = [1, 1]} : vector<512x64xf32> to vector<512x32xf32>
    %15 = arith.addf %13, %14 : vector<512x32xf32>
    %c0_6 = arith.constant 0 : index
    %c0_7 = arith.constant 0 : index
    %c0_8 = arith.constant 0 : index
    %16 = vector.load %arg6[%c0_6, %c0_7, %c0_8] : memref<1x32x40xf32, #tpu.memory_space<vmem>>, vector<1x32x40xf32>
    %17 = vector.shape_cast %16 : vector<1x32x40xf32> to vector<32x40xf32>
    %cst_9 = arith.constant dense<0.000000e+00> : vector<512x40xf32>
    %18 = tpu.matmul %15, %17, %cst_9 {dimension_numbers = #tpu.dot_dimension_numbers<[1], [0], [0], [1], [0, 0, 1, 1], [], []>} : vector<512x32xf32>, vector<32x40xf32>, vector<512x40xf32> -> vector<512x40xf32>
    %19 = vector.extract_strided_slice %18 {offsets = [0, 0], sizes = [512, 32], strides = [1, 1]} : vector<512x40xf32> to vector<512x32xf32>
    %20 = vector.extract_strided_slice %18 {offsets = [0, 32], sizes = [512, 8], strides = [1, 1]} : vector<512x40xf32> to vector<512x8xf32>
    %c0_10 = arith.constant 0 : index
    %c0_11 = arith.constant 0 : index
    %21 = vector.load %arg4[%c0_10, %c0_11] : memref<512x8xf32, #tpu.memory_space<vmem>>, vector<512x8xf32>
    %22 = arith.addf %20, %21 : vector<512x8xf32>
    %cst_12 = arith.constant 0.000000e+00 : f32
    %23 = vector.broadcast %cst_12 : f32 to vector<512x8xf32>
    %24 = arith.cmpf ogt, %22, %23 : vector<512x8xf32>
    %cst_13 = arith.constant 2.000000e-01 : f32
    %25 = vector.broadcast %cst_13 : f32 to vector<512x8xf32>
    %26 = arith.mulf %25, %22 : vector<512x8xf32>
    %27 = arith.select %24, %22, %26 : vector<512x8xi1>, vector<512x8xf32>
    %cst_14 = arith.constant dense<0xFF800000> : vector<512xf32>
    %28 = vector.multi_reduction <maximumf>, %27, %cst_14 [1] : vector<512x8xf32> to vector<512xf32>
    %29 = vector.shape_cast %28 : vector<512xf32> to vector<512x1xf32>
    %30 = vector.broadcast %29 : vector<512x1xf32> to vector<512x8xf32>
    %31 = arith.subf %27, %30 : vector<512x8xf32>
    %32 = math.exp %31 : vector<512x8xf32>
    %cst_15 = arith.constant dense<0.000000e+00> : vector<512xf32>
    %33 = vector.multi_reduction <add>, %32, %cst_15 [1] : vector<512x8xf32> to vector<512xf32>
    %34 = vector.shape_cast %33 : vector<512xf32> to vector<512x1xf32>
    %35 = vector.broadcast %34 : vector<512x1xf32> to vector<512x8xf32>
    %36 = arith.divf %32, %35 : vector<512x8xf32>
    %c0_16 = arith.constant 0 : index
    %c0_17 = arith.constant 0 : index
    %37 = vector.load %arg7[%c0_16, %c0_17] : memref<8x32xf32, #tpu.memory_space<vmem>>, vector<8x32xf32>
    %cst_18 = arith.constant dense<0.000000e+00> : vector<512x32xf32>
    %38 = tpu.matmul %36, %37, %cst_18 {dimension_numbers = #tpu.dot_dimension_numbers<[1], [0], [0], [1], [0, 0, 1, 1], [], []>} : vector<512x8xf32>, vector<8x32xf32>, vector<512x32xf32> -> vector<512x32xf32>
    %39 = arith.mulf %19, %38 : vector<512x32xf32>
    %40 = tpu.iota {dimensions = array<i32: 0>} : vector<16x512xi32>
    %41 = vector.broadcast %4 : vector<1x512xi32> to vector<16x512xi32>
    %42 = arith.cmpi eq, %40, %41 : vector<16x512xi32>
    %43 = arith.extui %42 : vector<16x512xi1> to vector<16x512xi32>
    %44 = arith.sitofp %43 : vector<16x512xi32> to vector<16x512xf32>
    %45 = arith.truncf %44 : vector<16x512xf32> to vector<16x512xbf16>
    %46 = arith.truncf %39 : vector<512x32xf32> to vector<512x32xbf16>
    %47 = arith.extf %46 : vector<512x32xbf16> to vector<512x32xf32>
    %48 = arith.subf %39, %47 : vector<512x32xf32>
    %49 = arith.truncf %48 : vector<512x32xf32> to vector<512x32xbf16>
    %50 = tpu.concatenate %46, %49 in 1 : vector<512x32xbf16>, vector<512x32xbf16> -> vector<512x64xbf16>
    %cst_19 = arith.constant dense<0.000000e+00> : vector<16x64xf32>
    %51 = tpu.matmul %45, %50, %cst_19 {dimension_numbers = #tpu.dot_dimension_numbers<[1], [0], [0], [1], [0, 0, 1, 1], [], []>} : vector<16x512xbf16>, vector<512x64xbf16>, vector<16x64xf32> -> vector<16x64xf32>
    %c0_20 = arith.constant 0 : index
    %c0_21 = arith.constant 0 : index
    %52 = vector.load %arg8[%c0_20, %c0_21] : memref<16x32xf32, #tpu.memory_space<vmem>>, vector<16x32xf32>
    %53 = vector.extract_strided_slice %51 {offsets = [0, 0], sizes = [16, 32], strides = [1, 1]} : vector<16x64xf32> to vector<16x32xf32>
    %54 = vector.extract_strided_slice %51 {offsets = [0, 32], sizes = [16, 32], strides = [1, 1]} : vector<16x64xf32> to vector<16x32xf32>
    %55 = arith.addf %53, %54 : vector<16x32xf32>
    %56 = arith.addf %52, %55 : vector<16x32xf32>
    %c0_22 = arith.constant 0 : index
    %c0_23 = arith.constant 0 : index
    %57 = vector.load %arg8[%c0_22, %c0_23] : memref<16x32xf32, #tpu.memory_space<vmem>>, vector<16x32xf32>
    tpu.vector_store %arg8[%c0_22, %c0_23], %56 {strides = array<i32>} : memref<16x32xf32, #tpu.memory_space<vmem>>, vector<16x32xf32>,
    %c3_i32 = arith.constant 3 : i32
    %58 = arith.cmpi eq, %arg0, %c3_i32 : i32
    %59 = arith.extui %58 : i1 to i32
    %c0_i32_24 = arith.constant 0 : i32
    %60 = arith.cmpi ne, %59, %c0_i32_24 : i32
    scf.if %60 {
      %c0_25 = arith.constant 0 : index
      %c0_26 = arith.constant 0 : index
      %61 = vector.load %arg8[%c0_25, %c0_26] : memref<16x32xf32, #tpu.memory_space<vmem>>, vector<16x32xf32>
      %cst_27 = arith.constant dense<0.000000e+00> : vector<32xf32>
      %62 = vector.multi_reduction <add>, %61, %cst_27 [0] : vector<16x32xf32> to vector<32xf32>
      %63 = vector.shape_cast %62 : vector<32xf32> to vector<1x32xf32>
      %cst_28 = arith.constant 1.600000e+01 : f32
      %64 = vector.broadcast %cst_28 : f32 to vector<1x32xf32>
      %65 = arith.divf %63, %64 : vector<1x32xf32>
      %66 = vector.broadcast %65 : vector<1x32xf32> to vector<16x32xf32>
      %67 = arith.subf %61, %66 : vector<16x32xf32>
      %68 = arith.mulf %67, %67 : vector<16x32xf32>
      %cst_29 = arith.constant dense<0.000000e+00> : vector<32xf32>
      %69 = vector.multi_reduction <add>, %68, %cst_29 [0] : vector<16x32xf32> to vector<32xf32>
      %70 = vector.shape_cast %69 : vector<32xf32> to vector<1x32xf32>
      %cst_30 = arith.constant 1.600000e+01 : f32
      %71 = vector.broadcast %cst_30 : f32 to vector<1x32xf32>
      %72 = arith.divf %70, %71 : vector<1x32xf32>
      %cst_31 = arith.constant 9.99999974E-6 : f32
      %73 = vector.broadcast %cst_31 : f32 to vector<1x32xf32>
      %74 = arith.addf %72, %73 : vector<1x32xf32>
      %75 = math.sqrt %74 : vector<1x32xf32>
      %76 = vector.broadcast %75 : vector<1x32xf32> to vector<16x32xf32>
      %77 = arith.divf %67, %76 : vector<16x32xf32>
      %c0_32 = arith.constant 0 : index
      %c0_33 = arith.constant 0 : index
      %78 = vector.load %arg8[%c0_32, %c0_33] : memref<16x32xf32, #tpu.memory_space<vmem>>, vector<16x32xf32>
      tpu.vector_store %arg8[%c0_32, %c0_33], %77 {strides = array<i32>} : memref<16x32xf32, #tpu.memory_space<vmem>>, vector<16x32xf32>,
    } else {
    }
    return
  }
  func.func @transform_0(%arg0: i32, %arg1: memref<4xi32, #tpu.memory_space<smem>>) -> (i32, i32) {
    %c0_i32 = arith.constant 0 : i32
    %c0_i32_0 = arith.constant 0 : i32
    return %arg0, %c0_i32 : i32, i32
  }
  func.func @transform_1(%arg0: i32, %arg1: memref<4xi32, #tpu.memory_space<smem>>) -> (i32, i32) {
    %c0_i32 = arith.constant 0 : i32
    %c0_i32_0 = arith.constant 0 : i32
    return %c0_i32, %arg0 : i32, i32
  }
  func.func @transform_2(%arg0: i32, %arg1: memref<4xi32, #tpu.memory_space<smem>>) -> (i32, i32) {
    %c0_i32 = arith.constant 0 : i32
    %c0_i32_0 = arith.constant 0 : i32
    return %arg0, %c0_i32 : i32, i32
  }
  func.func @transform_3(%arg0: i32, %arg1: memref<4xi32, #tpu.memory_space<smem>>) -> (i32, i32) {
    %c0_i32 = arith.constant 0 : i32
    %c0_i32_0 = arith.constant 0 : i32
    %c0_i32_1 = arith.constant 0 : i32
    return %c0_i32, %c0_i32_0 : i32, i32
  }
  func.func @transform_4(%arg0: i32, %arg1: memref<4xi32, #tpu.memory_space<smem>>) -> (i32, i32, i32) {
    %0 = arith.index_cast %arg0 : i32 to index
    %1 = memref.load %arg1[%0] : memref<4xi32, #tpu.memory_space<smem>>
    %c0_i32 = arith.constant 0 : i32
    %c0_i32_0 = arith.constant 0 : i32
    %c0_i32_1 = arith.constant 0 : i32
    return %1, %c0_i32, %c0_i32_0 : i32, i32, i32
  }
  func.func @transform_5(%arg0: i32, %arg1: memref<4xi32, #tpu.memory_space<smem>>) -> (i32, i32) {
    %c0_i32 = arith.constant 0 : i32
    %c0_i32_0 = arith.constant 0 : i32
    %c0_i32_1 = arith.constant 0 : i32
    return %c0_i32, %c0_i32_0 : i32, i32
  }
  func.func @transform_6(%arg0: i32, %arg1: memref<4xi32, #tpu.memory_space<smem>>) -> (i32, i32) {
    %c0_i32 = arith.constant 0 : i32
    %c0_i32_0 = arith.constant 0 : i32
    %c0_i32_1 = arith.constant 0 : i32
    return %c0_i32, %c0_i32_0 : i32, i32
  }
}

</mosaic_0001>

<bundles_post_ra>
// kernel: tpu_custom_call.1
= control target key start
LH: loop header
LB: loop body
LE: loop exit
PB: predicated region body
PF: predicated region fallthrough
CT: control target
= control target key end

     0   :  { %s9007_s0 = inlined_call_operand.vmem [shape: s32[4], index: 0, kind: input, shape index: {}]   ;;  %s9008_s1 = inlined_call_operand.vmem [shape: s32[2048,1], index: 1, kind: input, shape index: {}]   ;;  %s9009_s2 = inlined_call_operand.vmem [shape: s32[1,2048], index: 2, kind: input, shape index: {}]   ;;  %s9010_s3 = inlined_call_operand.vmem [shape: f32[2048,8], index: 3, kind: input, shape index: {}]   ;;  %s9011_s4 = inlined_call_operand.vmem [shape: bf16[16,64], index: 4, kind: input, shape index: {}]   ;;  %s9012_s5 = inlined_call_operand.vmem [shape: f32[4,32,40], index: 5, kind: input, shape index: {}]   ;;  %s9013_s6 = inlined_call_operand.vmem [shape: f32[8,32], index: 6, kind: input, shape index: {}]   ;;  %s9014_s7 = inlined_call_operand.hbm [shape: f32[16,32], index: 7, kind: output, shape index: {}]  }
   0x1   :  { %s12_s26 = sshll.u32 %s9007_s0, 4  ;;  %s13_s26 = int_to_ptr.vmem [resolvable:$true] %s12_s26 }
   0x2   :  { %s6122_s27 = scalar_lea.vmem %s13_s26, 16  ;;  %p6127_p1 = scmp.lt.s32.totalorder %s13_s26, %s13_s26 }
   0x3   :  { %p6123_p0 = scmp.ne.s32.totalorder %s13_s26, %s6122_s27  ;;  %p6128_p2 = scmp.lt.s32.totalorder %s6122_s27, %s6122_s27 }
   0x5   :  { %p6129_p3 = por %p6128_p2, %p6127_p1 }
   0x7   :  { %p6130_p4 = pnand %p6129_p3, %p6123_p0 }
   0x9   :  { %6133 = shalt.err (!%p6130_p4)  }
   0xa   :  { %s6172_s28 = smov [#allocation3]  }
   0xb   :  { %15 = dma.vmem_to_smem %s13_s26, 16, %s6172_s28, [#allocation2] }
   0xc   :  { %6162 = dma.done.wait [#allocation2], 16 }
   0xd   :  { %6163 = vsyncadd [#allocation2], 4294967280 }
   0xe   :  { %17 = sfence }
   0xf   :  { %18 = vsyncpa [#allocation5], 0  ;;  %s6225_s29 = smov 0  }
  0x10 LB: > { %s6231_s0 = sadd.s32 4294967295, %s6170_s29   ;;  %p5099_p5 = scmp.ge.s32.totalorder %s6170_s29, 1  ;;  %s6170_s29 = sphi %s6225_s29, %s24_s29  }
  0x11   : > { %p251_p6 = scmp.lt.s32.totalorder %s6170_s29, 5 }
  0x13   : > { %p252_p7 = pnand %p5099_p5, %p251_p6 }
  0x15   : > { %255 = sbr.rel (%p252_p7) target bundleno = 4224 (0x1080), region = 44 }
  0x1a   : > { %s5100_s30 = sshll.u32 %s6231_s0, 6  ;;  %s5102_s8 = sshll.u32 %s6231_s0, 2 }
  0x1b   : > { %p292_p8 = scmp.lt.s32.totalorder %s5100_s30, 255  ;;  %p298_p9 = scmp.lt.s32.totalorder %s5102_s8, 15 }
  0x1c   : > { %s308_s9 = sld [smem:[#allocation3 + %s6231_s0]]  ;;  %p5107_p11 = scmp.ne.s32.totalorder %s6231_s0, 0 }
  0x1d   : > { %s9540_s30 = smov (!%p292_p8, %s5100_s30), 255  ;;  %s9542_s8 = smov (!%p298_p9, %s5102_s8), 15 }
  0x1e   : > { %s5101_s10 = sshll.u32 %s9540_s30, 3  ;;  %s300_s16 = scalar_lea.vmem %s9009_s2, %s9542_s8 }
  0x1f   : > { %s6243_s13 = scalar_lea.vmem %s9008_s1, %s5101_s10  ;;  %s6252_s19 = scalar_lea.vmem %s9010_s3, %s5101_s10 }
  0x22   : > { %p309_p10 = scmp.lt.s32.totalorder %s308_s9, 3  ;;  %319 = sbr.rel (%p5107_p11) target bundleno = 41 (0x29), region = 48 }
  0x24   : > { %s9544_s9 = smov (!%p309_p10, %s308_s9), 3 }
  0x25   : > { %s5354_s20 = sshll.u32 %s9544_s9, 5 }
  0x26   : > { %s6257_s23 = scalar_lea.vmem %s9012_s5, %s5354_s20 }
  0x27   : > { %vm320_vm0 = vcmask 261120   ;;  %v6173_v0 = vmov 0.0  }
  0x28   : > { %321 = vst.msk [vmem:[#allocation4] sm:$0xff] %vm320_vm0, %v6173_v0  ;;  %322 = vst.msk [vmem:[#allocation4 + $0x8] sm:$0xff] %vm320_vm0, %v6173_v0 }
  0x29 PF: > { %v325_v1 = vld [vmem:[%s6243_s13 + $0x10] sm:$0xff]  ;;  %v323_v2 = vld [vmem:[%s6243_s13] sm:$0xff]  ;;  %v6174_v3 = vmov 0   ;;  %v326_v4 = vld [vmem:[%s6243_s13 + $0x18] sm:$0xff]  ;;  %vm814_vm5 = vcmask 130048   ;;  %s6175_s26 = smov 32  }
  0x2a   : > { %5860 = vset.pattern.permute.xlu1 %v6174_v3  ;;  %5859 = vset.pattern.permute.xlu0 %v6174_v3  ;;  %v324_v5 = vld [vmem:[%s6243_s13 + $0x8] sm:$0xff]  ;;  %v327_v7 = vld [vmem:[%s6243_s13 + $0x20] sm:$0xff]  ;;  %v330_v8 = vld [vmem:[%s6243_s13 + $0x38] sm:$0xff]  ;;  %s6177_s27 = smov 96   ;;  %p5349_p12 = scmp.ne.s32.totalorder %s6231_s0, 3 }
  0x2b   : > { %397 = vperm.xlu1 %5860, %v325_v1   ;;  %391 = vperm.xlu0 %5859, %v323_v2   ;;  %v328_v6 = vld [vmem:[%s6243_s13 + $0x28] sm:$0xff]  ;;  %v329_v9 = vld [vmem:[%s6243_s13 + $0x30] sm:$0xff]  ;;  %v331_v11 = vld [vmem:[%s6243_s13 + $0x40] sm:$0xff]  ;;  %v9015_v1 = vlaneseq }
  0x2c   : > { %v332_v10 = vld [vmem:[%s6243_s13 + $0x48] sm:$0xff]  ;;  %v334_v12 = vld [vmem:[%s6243_s13 + $0x58] sm:$0xff]  ;;  %v333_v13 = vld [vmem:[%s6243_s13 + $0x50] sm:$0xff] }
  0x2d   : > { %v5861_v14 = vld [vmem:[%s9011_s4] sm:$0xff]   ;;  %v336_v15 = vld [vmem:[%s6243_s13 + $0x68] sm:$0xff]  ;;  %v338_v17 = vld [vmem:[%s6243_s13 + $0x78] sm:$0xff] }
  0x2e   : > { %v335_v16 = vld [vmem:[%s6243_s13 + $0x60] sm:$0xff]  ;;  %5565 = vmatprep.subr.bf16.mxu0 %v5861_v14  ;;  %5833 = vmatprep.subr.bf16.mxu1 %v5861_v14  ;;  %v337_v18 = vld [vmem:[%s6243_s13 + $0x70] sm:$0xff]  ;;  %v340_v19 = vld [vmem:[%s6243_s13 + $0x88] sm:$0xff] }
  0x2f   : > { %400 = vperm.xlu1 %5860, %v326_v4   ;;  %394 = vperm.xlu0 %5859, %v324_v5   ;;  %v339_v20 = vld [vmem:[%s6243_s13 + $0x80] sm:$0xff]  ;;  %v342_v21 = vld [vmem:[%s6243_s13 + $0x98] sm:$0xff]  ;;  %v341_v22 = vld [vmem:[%s6243_s13 + $0x90] sm:$0xff]  ;;  %v6328_v4 = vand.u32 127, %v9015_v1 }
  0x30   : > { %5566 = vmatpush3.bf16.msra.mxu0 %v5861_v14  ;;  %5834 = vmatpush3.bf16.msra.mxu1 %v5861_v14  ;;  %v344_v23 = vld [vmem:[%s6243_s13 + $0xa8] sm:$0xff]  ;;  %v343_v24 = vld [vmem:[%s6243_s13 + $0xa0] sm:$0xff]  ;;  %v346_v25 = vld [vmem:[%s6243_s13 + $0xb8] sm:$0xff] }
  0x31   : > { %v345_v26 = vld [vmem:[%s6243_s13 + $0xb0] sm:$0xff]  ;;  %v348_v27 = vld [vmem:[%s6243_s13 + $0xc8] sm:$0xff]  ;;  %v347_v28 = vld [vmem:[%s6243_s13 + $0xc0] sm:$0xff] }
  0x32   : > { %v350_v29 = vld [vmem:[%s6243_s13 + $0xd8] sm:$0xff]  ;;  %v349_v30 = vld [vmem:[%s6243_s13 + $0xd0] sm:$0xff]  ;;  %v352_v31 = vld [vmem:[%s6243_s13 + $0xe8] sm:$0xff] }
  0x33   : > { %406 = vperm.xlu1 %5860, %v328_v6   ;;  %403 = vperm.xlu0 %5859, %v327_v7   ;;  %v351_v32 = vld [vmem:[%s6243_s13 + $0xe0] sm:$0xff]  ;;  %v354_v33 = vld [vmem:[%s6243_s13 + $0xf8] sm:$0xff]  ;;  %v353_v34 = vld [vmem:[%s6243_s13 + $0xf0] sm:$0xff] }
  0x34   : > { %v356_v35 = vld [vmem:[%s6243_s13 + $0x108] sm:$0xff]  ;;  %v355_v36 = vld [vmem:[%s6243_s13 + $0x100] sm:$0xff]  ;;  %v358_v37 = vld [vmem:[%s6243_s13 + $0x118] sm:$0xff] }
  0x35   : > { %v357_v38 = vld [vmem:[%s6243_s13 + $0x110] sm:$0xff]  ;;  %v360_v39 = vld [vmem:[%s6243_s13 + $0x128] sm:$0xff]  ;;  %v359_v40 = vld [vmem:[%s6243_s13 + $0x120] sm:$0xff] }
  0x36   : > { %v362_v41 = vld [vmem:[%s6243_s13 + $0x138] sm:$0xff]  ;;  %v361_v42 = vld [vmem:[%s6243_s13 + $0x130] sm:$0xff]  ;;  %v364_v43 = vld [vmem:[%s6243_s13 + $0x148] sm:$0xff] }
  0x37   : > { %412 = vperm.xlu1 %5860, %v330_v8   ;;  %409 = vperm.xlu0 %5859, %v329_v9   ;;  %v363_v44 = vld [vmem:[%s6243_s13 + $0x140] sm:$0xff]  ;;  %v366_v45 = vld [vmem:[%s6243_s13 + $0x158] sm:$0xff]  ;;  %v365_v46 = vld [vmem:[%s6243_s13 + $0x150] sm:$0xff] }
  0x38   : > { %v368_v47 = vld [vmem:[%s6243_s13 + $0x168] sm:$0xff]  ;;  %v367_v48 = vld [vmem:[%s6243_s13 + $0x160] sm:$0xff]  ;;  %v370_v49 = vld [vmem:[%s6243_s13 + $0x178] sm:$0xff] }
  0x39   : > { %v369_v50 = vld [vmem:[%s6243_s13 + $0x170] sm:$0xff]  ;;  %v372_v51 = vld [vmem:[%s6243_s13 + $0x188] sm:$0xff]  ;;  %v371_v52 = vld [vmem:[%s6243_s13 + $0x180] sm:$0xff] }
  0x3a   : > { %v374_v53 = vld [vmem:[%s6243_s13 + $0x198] sm:$0xff]  ;;  %v373_v54 = vld [vmem:[%s6243_s13 + $0x190] sm:$0xff]  ;;  %v376_v55 = vld [vmem:[%s6243_s13 + $0x1a8] sm:$0xff] }
  0x3b   : > { %418 = vperm.xlu1 %5860, %v332_v10   ;;  %415 = vperm.xlu0 %5859, %v331_v11   ;;  %v375_v56 = vld [vmem:[%s6243_s13 + $0x1a0] sm:$0xff]  ;;  %v378_v57 = vld [vmem:[%s6243_s13 + $0x1b8] sm:$0xff]  ;;  %v377_v58 = vld [vmem:[%s6243_s13 + $0x1b0] sm:$0xff]  ;;  %v6176_v11 = vmov 0.0  }
  0x3c   : > { %v380_v59 = vld [vmem:[%s6243_s13 + $0x1c8] sm:$0xff]  ;;  %v379_v60 = vld [vmem:[%s6243_s13 + $0x1c0] sm:$0xff]  ;;  %v382_v61 = vld [vmem:[%s6243_s13 + $0x1d8] sm:$0xff] }
  0x3d   : > { %v381_v62 = vld [vmem:[%s6243_s13 + $0x1d0] sm:$0xff]  ;;  %v384_v63 = vld [vmem:[%s6243_s13 + $0x1e8] sm:$0xff]  ;;  %v383_v0 = vld [vmem:[%s6243_s13 + $0x1e0] sm:$0xff] }
  0x3e   : > { %v386_v2 = vld [vmem:[%s6243_s13 + $0x1f8] sm:$0xff]  ;;  %v385_v3 = vld [vmem:[%s6243_s13 + $0x1f0] sm:$0xff]  ;;  %v2102_v7 = vld [vmem:[%s6252_s19] sm:$0xff] }
  0x3f   : > { %424 = vperm.xlu1 %5860, %v334_v12   ;;  %421 = vperm.xlu0 %5859, %v333_v13   ;;  %v2103_v8 = vld [vmem:[%s6252_s19 + $0x8] sm:$0xff] }
  0x43   : > { %430 = vperm.xlu1 %5860, %v336_v15   ;;  %427 = vperm.xlu0 %5859, %v335_v16   ;;  %v2104_v16 = vld [vmem:[%s6252_s19 + $0x10] sm:$0xff] }
  0x47   : > { %436 = vperm.xlu1 %5860, %v338_v17   ;;  %433 = vperm.xlu0 %5859, %v337_v18  }
  0x4b   : > { %442 = vperm.xlu1 %5860, %v340_v19   ;;  %439 = vperm.xlu0 %5859, %v339_v20   ;;  %v2105_v19 = vld [vmem:[%s6252_s19 + $0x18] sm:$0xff] }
  0x4f   : > { %448 = vperm.xlu1 %5860, %v342_v21   ;;  %445 = vperm.xlu0 %5859, %v341_v22  }
  0x53   : > { %454 = vperm.xlu1 %5860, %v344_v23   ;;  %451 = vperm.xlu0 %5859, %v343_v24   ;;  %v2106_v24 = vld [vmem:[%s6252_s19 + $0x20] sm:$0xff] }
  0x57   : > { %460 = vperm.xlu1 %5860, %v346_v25   ;;  %457 = vperm.xlu0 %5859, %v345_v26   ;;  %v2107_v26 = vld [vmem:[%s6252_s19 + $0x28] sm:$0xff] }
  0x5b   : > { %466 = vperm.xlu1 %5860, %v348_v27   ;;  %463 = vperm.xlu0 %5859, %v347_v28  }
  0x5f   : > { %472 = vperm.xlu1 %5860, %v350_v29   ;;  %469 = vperm.xlu0 %5859, %v349_v30  }
  0x63   : > { %478 = vperm.xlu1 %5860, %v352_v31   ;;  %475 = vperm.xlu0 %5859, %v351_v32   ;;  %v2108_v31 = vld [vmem:[%s6252_s19 + $0x30] sm:$0xff] }
  0x67   : > { %484 = vperm.xlu1 %5860, %v354_v33   ;;  %481 = vperm.xlu0 %5859, %v353_v34   ;;  %v2109_v33 = vld [vmem:[%s6252_s19 + $0x38] sm:$0xff] }
  0x6b   : > { %490 = vperm.xlu1 %5860, %v356_v35   ;;  %487 = vperm.xlu0 %5859, %v355_v36  }
  0x6f   : > { %496 = vperm.xlu1 %5860, %v358_v37   ;;  %493 = vperm.xlu0 %5859, %v357_v38   ;;  %v2110_v38 = vld [vmem:[%s6252_s19 + $0x40] sm:$0xff] }
  0x73   : > { %502 = vperm.xlu1 %5860, %v360_v39   ;;  %499 = vperm.xlu0 %5859, %v359_v40   ;;  %v2111_v40 = vld [vmem:[%s6252_s19 + $0x48] sm:$0xff] }
  0x77   : > { %508 = vperm.xlu1 %5860, %v362_v41   ;;  %505 = vperm.xlu0 %5859, %v361_v42  }
  0x7b   : > { %514 = vperm.xlu1 %5860, %v364_v43   ;;  %511 = vperm.xlu0 %5859, %v363_v44  }
  0x7f   : > { %520 = vperm.xlu1 %5860, %v366_v45   ;;  %517 = vperm.xlu0 %5859, %v365_v46   ;;  %v2112_v45 = vld [vmem:[%s6252_s19 + $0x50] sm:$0xff] }
  0x83   : > { %526 = vperm.xlu1 %5860, %v368_v47   ;;  %523 = vperm.xlu0 %5859, %v367_v48   ;;  %v2113_v47 = vld [vmem:[%s6252_s19 + $0x58] sm:$0xff] }
  0x87   : > { %532 = vperm.xlu1 %5860, %v370_v49   ;;  %529 = vperm.xlu0 %5859, %v369_v50  }
  0x8b   : > { %538 = vperm.xlu1 %5860, %v372_v51   ;;  %535 = vperm.xlu0 %5859, %v371_v52   ;;  %v2114_v52 = vld [vmem:[%s6252_s19 + $0x60] sm:$0xff] }
  0x8f   : > { %544 = vperm.xlu1 %5860, %v374_v53   ;;  %541 = vperm.xlu0 %5859, %v373_v54   ;;  %v2115_v54 = vld [vmem:[%s6252_s19 + $0x68] sm:$0xff] }
  0x93   : > { %550 = vperm.xlu1 %5860, %v376_v55   ;;  %547 = vperm.xlu0 %5859, %v375_v56  }
  0x97   : > { %556 = vperm.xlu1 %5860, %v378_v57   ;;  %553 = vperm.xlu0 %5859, %v377_v58  }
  0x9b   : > { %562 = vperm.xlu1 %5860, %v380_v59   ;;  %559 = vperm.xlu0 %5859, %v379_v60   ;;  %v2116_v59 = vld [vmem:[%s6252_s19 + $0x70] sm:$0xff] }
  0x9f   : > { %568 = vperm.xlu1 %5860, %v382_v61   ;;  %565 = vperm.xlu0 %5859, %v381_v62   ;;  %v2117_v61 = vld [vmem:[%s6252_s19 + $0x78] sm:$0xff] }
  0xa3   : > { %574 = vperm.xlu1 %5860, %v384_v63   ;;  %571 = vperm.xlu0 %5859, %v383_v0  }
  0xa6   : > { %v398_v5 = vpop.permute.xlu1 %397  ;;  %v392_v6 = vpop.permute.xlu0 %391 }
  0xa7   : > { %580 = vperm.xlu1 %5860, %v386_v2   ;;  %577 = vperm.xlu0 %5859, %v385_v3   ;;  %vm584_vm1 = vcmp.eq.s32.totalorder %v6328_v4, %v398_v5  ;;  %vm582_vm2 = vcmp.eq.s32.totalorder %v6328_v4, %v392_v6  ;;  %v2118_v3 = vld [vmem:[%s6252_s19 + $0x80] sm:$0xff]  ;;  %v2119_v6 = vld [vmem:[%s6252_s19 + $0x88] sm:$0xff] }
  0xa8   : > { %v5110_v12 = vsel %vm584_vm1, 1.0, %v6176_v11  ;;  %v5108_v14 = vsel %vm582_vm2, 1.0, %v6176_v11 }
  0xaa   : > { %v401_v9 = vpop.permute.xlu1 %400  ;;  %v395_v10 = vpop.permute.xlu0 %394 }
  0xab   : > { %vm585_vm3 = vcmp.eq.s32.totalorder %v6328_v4, %v401_v9  ;;  %vm583_vm4 = vcmp.eq.s32.totalorder %v6328_v4, %v395_v10  ;;  %2230 = vrot.lane.b32.xlu0 %v2102_v7, %s6175_s26  ;;  %2232 = vrot.lane.b32.xlu1 %v2103_v8, %s6175_s26 }
  0xac   : > { %v5111_v13 = vsel %vm585_vm3, 1.0, %v6176_v11  ;;  %v5109_v15 = vsel %vm583_vm4, 1.0, %v6176_v11 }
  0xad   : > { %v775_v17 = vpack.c.bf16 %v5111_v13, %v5110_v12  ;;  %v774_v18 = vpack.c.bf16 %v5109_v15, %v5108_v14  ;;  %v2120_v12 = vld [vmem:[%s6252_s19 + $0x90] sm:$0xff]  ;;  %v2121_v14 = vld [vmem:[%s6252_s19 + $0x98] sm:$0xff] }
  0xae   : > { %v407_v20 = vpop.permute.xlu1 %406  ;;  %v404_v21 = vpop.permute.xlu0 %403 }
  0xaf   : > { %vm587_vm6 = vcmp.eq.s32.totalorder %v6328_v4, %v407_v20  ;;  %vm586_vm7 = vcmp.eq.s32.totalorder %v6328_v4, %v404_v21  ;;  %5567 = vmatprep.mubr.msk.bf16.mxu0 %vm814_vm5, %v774_v18  ;;  %2234 = vrot.lane.b32.xlu0 %v2104_v16, %s6175_s26  ;;  %v2123_v21 = vld [vmem:[%s6252_s19 + $0xa8] sm:$0xff] }
  0xb0   : > { %v5113_v22 = vsel %vm587_vm6, 1.0, %v6176_v11  ;;  %v5112_v23 = vsel %vm586_vm7, 1.0, %v6176_v11  ;;  %5568 = vmatmul.mubr.msk.bf16.vlgmr.msra.gmra.mxu0 %vm814_vm5, %v775_v17  ;;  %2236 = vrot.lane.b32.xlu1 %v2105_v19, %s6175_s26  ;;  %v2122_v19 = vld [vmem:[%s6252_s19 + $0xa0] sm:$0xff] }
  0xb1   : > { %v776_v25 = vpack.c.bf16 %v5113_v22, %v5112_v23 }
  0xb2   : > { %v413_v27 = vpop.permute.xlu1 %412  ;;  %v410_v28 = vpop.permute.xlu0 %409 }
  0xb3   : > { %vm589_vm8 = vcmp.eq.s32.totalorder %v6328_v4, %v413_v27  ;;  %vm588_vm9 = vcmp.eq.s32.totalorder %v6328_v4, %v410_v28  ;;  %5571 = vmatprep.mubr.msk.bf16.mxu0 %vm814_vm5, %v776_v25  ;;  %2238 = vrot.lane.b32.xlu0 %v2106_v24, %s6175_s26  ;;  %v2125_v28 = vld [vmem:[%s6252_s19 + $0xb8] sm:$0xff] }
  0xb4   : > { %v5115_v29 = vsel %vm589_vm8, 1.0, %v6176_v11  ;;  %v5114_v30 = vsel %vm588_vm9, 1.0, %v6176_v11  ;;  %2240 = vrot.lane.b32.xlu1 %v2107_v26, %s6175_s26  ;;  %v2124_v26 = vld [vmem:[%s6252_s19 + $0xb0] sm:$0xff] }
  0xb5   : > { %v777_v32 = vpack.c.bf16 %v5115_v29, %v5114_v30 }
  0xb6   : > { %v419_v34 = vpop.permute.xlu1 %418  ;;  %v416_v35 = vpop.permute.xlu0 %415 }
  0xb7   : > { %vm591_vm10 = vcmp.eq.s32.totalorder %v6328_v4, %v419_v34  ;;  %vm590_vm11 = vcmp.eq.s32.totalorder %v6328_v4, %v416_v35  ;;  %2242 = vrot.lane.b32.xlu0 %v2108_v31, %s6175_s26  ;;  %v2127_v35 = vld [vmem:[%s6252_s19 + $0xc8] sm:$0xff] }
  0xb8   : > { %v5117_v36 = vsel %vm591_vm10, 1.0, %v6176_v11  ;;  %v5116_v37 = vsel %vm590_vm11, 1.0, %v6176_v11  ;;  %5572 = vmatmul.mubr.msk.bf16.gmra.mxu0 %vm814_vm5, %v777_v32  ;;  %2244 = vrot.lane.b32.xlu1 %v2109_v33, %s6175_s26  ;;  %v2126_v33 = vld [vmem:[%s6252_s19 + $0xc0] sm:$0xff] }
  0xb9   : > { %v778_v39 = vpack.c.bf16 %v5117_v36, %v5116_v37 }
  0xba   : > { %v425_v41 = vpop.permute.xlu1 %424  ;;  %v422_v42 = vpop.permute.xlu0 %421 }
  0xbb   : > { %vm593_vm12 = vcmp.eq.s32.totalorder %v6328_v4, %v425_v41  ;;  %vm592_vm13 = vcmp.eq.s32.totalorder %v6328_v4, %v422_v42  ;;  %5575 = vmatprep.mubr.msk.bf16.mxu0 %vm814_vm5, %v778_v39  ;;  %2246 = vrot.lane.b32.xlu0 %v2110_v38, %s6175_s26  ;;  %v2129_v42 = vld [vmem:[%s6252_s19 + $0xd8] sm:$0xff] }
  0xbc   : > { %v5119_v43 = vsel %vm593_vm12, 1.0, %v6176_v11  ;;  %v5118_v44 = vsel %vm592_vm13, 1.0, %v6176_v11  ;;  %2248 = vrot.lane.b32.xlu1 %v2111_v40, %s6175_s26  ;;  %v2128_v40 = vld [vmem:[%s6252_s19 + $0xd0] sm:$0xff] }
  0xbd   : > { %v779_v46 = vpack.c.bf16 %v5119_v43, %v5118_v44 }
  0xbe   : > { %v431_v48 = vpop.permute.xlu1 %430  ;;  %v428_v49 = vpop.permute.xlu0 %427 }
  0xbf   : > { %vm595_vm14 = vcmp.eq.s32.totalorder %v6328_v4, %v431_v48  ;;  %vm594_vm15 = vcmp.eq.s32.totalorder %v6328_v4, %v428_v49  ;;  %2250 = vrot.lane.b32.xlu0 %v2112_v45, %s6175_s26  ;;  %v2131_v49 = vld [vmem:[%s6252_s19 + $0xe8] sm:$0xff] }
  0xc0   : > { %v5121_v50 = vsel %vm595_vm14, 1.0, %v6176_v11  ;;  %v5120_v51 = vsel %vm594_vm15, 1.0, %v6176_v11  ;;  %5576 = vmatmul.mubr.msk.bf16.gmra.mxu0 %vm814_vm5, %v779_v46  ;;  %2252 = vrot.lane.b32.xlu1 %v2113_v47, %s6175_s26  ;;  %v2130_v47 = vld [vmem:[%s6252_s19 + $0xe0] sm:$0xff] }
  0xc1   : > { %v780_v53 = vpack.c.bf16 %v5121_v50, %v5120_v51 }
  0xc2   : > { %v437_v55 = vpop.permute.xlu1 %436  ;;  %v434_v56 = vpop.permute.xlu0 %433 }
  0xc3   : > { %vm597_vm0 = vcmp.eq.s32.totalorder %v6328_v4, %v437_v55  ;;  %vm596_vm1 = vcmp.eq.s32.totalorder %v6328_v4, %v434_v56  ;;  %5579 = vmatprep.mubr.msk.bf16.mxu0 %vm814_vm5, %v780_v53  ;;  %2254 = vrot.lane.b32.xlu0 %v2114_v52, %s6175_s26  ;;  %v2133_v56 = vld [vmem:[%s6252_s19 + $0xf8] sm:$0xff] }
  0xc4   : > { %v5123_v57 = vsel %vm597_vm0, 1.0, %v6176_v11  ;;  %v5122_v58 = vsel %vm596_vm1, 1.0, %v6176_v11  ;;  %2256 = vrot.lane.b32.xlu1 %v2115_v54, %s6175_s26  ;;  %v2132_v54 = vld [vmem:[%s6252_s19 + $0xf0] sm:$0xff] }
  0xc5   : > { %v781_v60 = vpack.c.bf16 %v5123_v57, %v5122_v58 }
  0xc6   : > { %v443_v62 = vpop.permute.xlu1 %442  ;;  %v440_v63 = vpop.permute.xlu0 %439 }
  0xc7   : > { %vm599_vm2 = vcmp.eq.s32.totalorder %v6328_v4, %v443_v62  ;;  %vm598_vm3 = vcmp.eq.s32.totalorder %v6328_v4, %v440_v63  ;;  %2258 = vrot.lane.b32.xlu0 %v2116_v59, %s6175_s26  ;;  %v2136_v63 = vld [vmem:[%s6252_s19 + $0x110] sm:$0xff] }
  0xc8   : > { %v5125_v0 = vsel %vm599_vm2, 1.0, %v6176_v11  ;;  %v5124_v2 = vsel %vm598_vm3, 1.0, %v6176_v11  ;;  %5580 = vmatmul.mubr.msk.bf16.gmra.mxu0 %vm814_vm5, %v781_v60  ;;  %2260 = vrot.lane.b32.xlu1 %v2117_v61, %s6175_s26  ;;  %v2134_v61 = vld [vmem:[%s6252_s19 + $0x100] sm:$0xff] }
  0xc9   : > { %v782_v5 = vpack.c.bf16 %v5125_v0, %v5124_v2 }
  0xca   : > { %v449_v7 = vpop.permute.xlu1 %448  ;;  %v446_v8 = vpop.permute.xlu0 %445 }
  0xcb   : > { %vm601_vm4 = vcmp.eq.s32.totalorder %v6328_v4, %v449_v7  ;;  %vm600_vm6 = vcmp.eq.s32.totalorder %v6328_v4, %v446_v8  ;;  %5583 = vmatprep.mubr.msk.bf16.mxu0 %vm814_vm5, %v782_v5  ;;  %2262 = vrot.lane.b32.xlu0 %v2118_v3, %s6175_s26  ;;  %v2139_v8 = vld [vmem:[%s6252_s19 + $0x128] sm:$0xff] }
  0xcc   : > { %v5127_v9 = vsel %vm601_vm4, 1.0, %v6176_v11  ;;  %v5126_v10 = vsel %vm600_vm6, 1.0, %v6176_v11  ;;  %2264 = vrot.lane.b32.xlu1 %v2119_v6, %s6175_s26  ;;  %v2135_v6 = vld [vmem:[%s6252_s19 + $0x108] sm:$0xff] }
  0xcd   : > { %v783_v13 = vpack.c.bf16 %v5127_v9, %v5126_v10 }
  0xce   : > { %v455_v15 = vpop.permute.xlu1 %454  ;;  %v452_v16 = vpop.permute.xlu0 %451 }
  0xcf   : > { %vm603_vm7 = vcmp.eq.s32.totalorder %v6328_v4, %v455_v15  ;;  %vm602_vm8 = vcmp.eq.s32.totalorder %v6328_v4, %v452_v16  ;;  %2266 = vrot.lane.b32.xlu0 %v2120_v12, %s6175_s26  ;;  %v2142_v16 = vld [vmem:[%s6252_s19 + $0x140] sm:$0xff] }
  0xd0   : > { %v5129_v17 = vsel %vm603_vm7, 1.0, %v6176_v11  ;;  %v5128_v18 = vsel %vm602_vm8, 1.0, %v6176_v11  ;;  %5584 = vmatmul.mubr.msk.bf16.gmra.mxu0 %vm814_vm5, %v783_v13  ;;  %2268 = vrot.lane.b32.xlu1 %v2121_v14, %s6175_s26  ;;  %v2137_v14 = vld [vmem:[%s6252_s19 + $0x118] sm:$0xff] }
  0xd1   : > { %v784_v20 = vpack.c.bf16 %v5129_v17, %v5128_v18 }
  0xd2   : > { %v461_v22 = vpop.permute.xlu1 %460  ;;  %v458_v23 = vpop.permute.xlu0 %457 }
  0xd3   : > { %vm605_vm9 = vcmp.eq.s32.totalorder %v6328_v4, %v461_v22  ;;  %vm604_vm10 = vcmp.eq.s32.totalorder %v6328_v4, %v458_v23  ;;  %5587 = vmatprep.mubr.msk.bf16.mxu0 %vm814_vm5, %v784_v20  ;;  %2270 = vrot.lane.b32.xlu0 %v2122_v19, %s6175_s26  ;;  %v2144_v23 = vld [vmem:[%s6252_s19 + $0x150] sm:$0xff] }
  0xd4   : > { %v5131_v24 = vsel %vm605_vm9, 1.0, %v6176_v11  ;;  %v5130_v25 = vsel %vm604_vm10, 1.0, %v6176_v11  ;;  %2272 = vrot.lane.b32.xlu1 %v2123_v21, %s6175_s26  ;;  %v2138_v21 = vld [vmem:[%s6252_s19 + $0x120] sm:$0xff] }
  0xd5   : > { %v785_v27 = vpack.c.bf16 %v5131_v24, %v5130_v25 }
  0xd6   : > { %v467_v29 = vpop.permute.xlu1 %466  ;;  %v464_v30 = vpop.permute.xlu0 %463 }
  0xd7   : > { %vm607_vm11 = vcmp.eq.s32.totalorder %v6328_v4, %v467_v29  ;;  %vm606_vm12 = vcmp.eq.s32.totalorder %v6328_v4, %v464_v30  ;;  %2274 = vrot.lane.b32.xlu0 %v2124_v26, %s6175_s26 }
  0xd8   : > { %v5133_v31 = vsel %vm607_vm11, 1.0, %v6176_v11  ;;  %v5132_v32 = vsel %vm606_vm12, 1.0, %v6176_v11  ;;  %5588 = vmatmul.mubr.msk.bf16.gmra.mxu0 %vm814_vm5, %v785_v27  ;;  %2276 = vrot.lane.b32.xlu1 %v2125_v28, %s6175_s26  ;;  %v2140_v28 = vld [vmem:[%s6252_s19 + $0x130] sm:$0xff] }
  0xd9   : > { %v786_v34 = vpack.c.bf16 %v5133_v31, %v5132_v32 }
  0xda   : > { %v473_v36 = vpop.permute.xlu1 %472  ;;  %v470_v37 = vpop.permute.xlu0 %469 }
  0xdb   : > { %vm609_vm13 = vcmp.eq.s32.totalorder %v6328_v4, %v473_v36  ;;  %vm608_vm14 = vcmp.eq.s32.totalorder %v6328_v4, %v470_v37  ;;  %5591 = vmatprep.mubr.msk.bf16.mxu0 %vm814_vm5, %v786_v34  ;;  %2278 = vrot.lane.b32.xlu0 %v2126_v33, %s6175_s26  ;;  %v2141_v34 = vld [vmem:[%s6252_s19 + $0x138] sm:$0xff] }
  0xdc   : > { %v5135_v38 = vsel %vm609_vm13, 1.0, %v6176_v11  ;;  %v5134_v39 = vsel %vm608_vm14, 1.0, %v6176_v11  ;;  %2280 = vrot.lane.b32.xlu1 %v2127_v35, %s6175_s26 }
  0xdd   : > { %v787_v41 = vpack.c.bf16 %v5135_v38, %v5134_v39 }
  0xde   : > { %v479_v43 = vpop.permute.xlu1 %478  ;;  %v476_v44 = vpop.permute.xlu0 %475 }
  0xdf   : > { %vm611_vm15 = vcmp.eq.s32.totalorder %v6328_v4, %v479_v43  ;;  %vm610_vm0 = vcmp.eq.s32.totalorder %v6328_v4, %v476_v44  ;;  %2282 = vrot.lane.b32.xlu0 %v2128_v40, %s6175_s26  ;;  %v2143_v40 = vld [vmem:[%s6252_s19 + $0x148] sm:$0xff] }
  0xe0   : > { %v5137_v45 = vsel %vm611_vm15, 1.0, %v6176_v11  ;;  %v5136_v46 = vsel %vm610_vm0, 1.0, %v6176_v11  ;;  %5592 = vmatmul.mubr.msk.bf16.gmra.mxu0 %vm814_vm5, %v787_v41  ;;  %2284 = vrot.lane.b32.xlu1 %v2129_v42, %s6175_s26 }
  0xe1   : > { %v788_v48 = vpack.c.bf16 %v5137_v45, %v5136_v46 }
  0xe2   : > { %v485_v50 = vpop.permute.xlu1 %484  ;;  %v482_v51 = vpop.permute.xlu0 %481 }
  0xe3   : > { %vm613_vm1 = vcmp.eq.s32.totalorder %v6328_v4, %v485_v50  ;;  %vm612_vm2 = vcmp.eq.s32.totalorder %v6328_v4, %v482_v51  ;;  %5595 = vmatprep.mubr.msk.bf16.mxu0 %vm814_vm5, %v788_v48  ;;  %2286 = vrot.lane.b32.xlu0 %v2130_v47, %s6175_s26 }
  0xe4   : > { %v5139_v52 = vsel %vm613_vm1, 1.0, %v6176_v11  ;;  %v5138_v53 = vsel %vm612_vm2, 1.0, %v6176_v11  ;;  %2288 = vrot.lane.b32.xlu1 %v2131_v49, %s6175_s26 }
  0xe5   : > { %v789_v55 = vpack.c.bf16 %v5139_v52, %v5138_v53 }
  0xe6   : > { %v491_v57 = vpop.permute.xlu1 %490  ;;  %v488_v58 = vpop.permute.xlu0 %487 }
  0xe7   : > { %vm615_vm3 = vcmp.eq.s32.totalorder %v6328_v4, %v491_v57  ;;  %vm614_vm4 = vcmp.eq.s32.totalorder %v6328_v4, %v488_v58  ;;  %2290 = vrot.lane.b32.xlu0 %v2132_v54, %s6175_s26 }
  0xe8   : > { %v5141_v59 = vsel %vm615_vm3, 1.0, %v6176_v11  ;;  %v5140_v60 = vsel %vm614_vm4, 1.0, %v6176_v11  ;;  %5596 = vmatmul.mubr.msk.bf16.gmra.mxu0 %vm814_vm5, %v789_v55  ;;  %2292 = vrot.lane.b32.xlu1 %v2133_v56, %s6175_s26 }
  0xe9   : > { %v790_v62 = vpack.c.bf16 %v5141_v59, %v5140_v60 }
  0xea   : > { %v497_v0 = vpop.permute.xlu1 %496  ;;  %v494_v2 = vpop.permute.xlu0 %493 }
  0xeb   : > { %vm617_vm6 = vcmp.eq.s32.totalorder %v6328_v4, %v497_v0  ;;  %vm616_vm7 = vcmp.eq.s32.totalorder %v6328_v4, %v494_v2  ;;  %5599 = vmatprep.mubr.msk.bf16.mxu0 %vm814_vm5, %v790_v62  ;;  %2294 = vrot.lane.b32.xlu0 %v2134_v61, %s6175_s26 }
  0xec   : > { %v5143_v3 = vsel %vm617_vm6, 1.0, %v6176_v11  ;;  %v5142_v5 = vsel %vm616_vm7, 1.0, %v6176_v11  ;;  %2298 = vrot.lane.b32.xlu1 %v2136_v63, %s6175_s26 }
  0xed   : > { %v791_v7 = vpack.c.bf16 %v5143_v3, %v5142_v5 }
  0xee   : > { %v503_v9 = vpop.permute.xlu1 %502  ;;  %v500_v10 = vpop.permute.xlu0 %499 }
  0xef   : > { %vm619_vm8 = vcmp.eq.s32.totalorder %v6328_v4, %v503_v9  ;;  %vm618_vm9 = vcmp.eq.s32.totalorder %v6328_v4, %v500_v10  ;;  %2296 = vrot.lane.b32.xlu0 %v2135_v6, %s6175_s26 }
  0xf0   : > { %v5145_v12 = vsel %vm619_vm8, 1.0, %v6176_v11  ;;  %v5144_v13 = vsel %vm618_vm9, 1.0, %v6176_v11  ;;  %5600 = vmatmul.mubr.msk.bf16.gmra.mxu0 %vm814_vm5, %v791_v7  ;;  %2304 = vrot.lane.b32.xlu1 %v2139_v8, %s6175_s26 }
  0xf1   : > { %v792_v15 = vpack.c.bf16 %v5145_v12, %v5144_v13 }
  0xf2   : > { %v509_v17 = vpop.permute.xlu1 %508  ;;  %v506_v18 = vpop.permute.xlu0 %505 }
  0xf3   : > { %vm621_vm10 = vcmp.eq.s32.totalorder %v6328_v4, %v509_v17  ;;  %vm620_vm11 = vcmp.eq.s32.totalorder %v6328_v4, %v506_v18  ;;  %5603 = vmatprep.mubr.msk.bf16.mxu0 %vm814_vm5, %v792_v15  ;;  %2300 = vrot.lane.b32.xlu0 %v2137_v14, %s6175_s26 }
  0xf4   : > { %v5147_v19 = vsel %vm621_vm10, 1.0, %v6176_v11  ;;  %v5146_v20 = vsel %vm620_vm11, 1.0, %v6176_v11  ;;  %2310 = vrot.lane.b32.xlu1 %v2142_v16, %s6175_s26 }
  0xf5   : > { %v793_v22 = vpack.c.bf16 %v5147_v19, %v5146_v20 }
  0xf6   : > { %v515_v24 = vpop.permute.xlu1 %514  ;;  %v512_v25 = vpop.permute.xlu0 %511 }
  0xf7   : > { %vm623_vm12 = vcmp.eq.s32.totalorder %v6328_v4, %v515_v24  ;;  %vm622_vm13 = vcmp.eq.s32.totalorder %v6328_v4, %v512_v25  ;;  %2302 = vrot.lane.b32.xlu0 %v2138_v21, %s6175_s26 }
  0xf8   : > { %v5149_v26 = vsel %vm623_vm12, 1.0, %v6176_v11  ;;  %v5148_v27 = vsel %vm622_vm13, 1.0, %v6176_v11  ;;  %5604 = vmatmul.mubr.msk.bf16.gmra.mxu0 %vm814_vm5, %v793_v22  ;;  %2314 = vrot.lane.b32.xlu1 %v2144_v23, %s6175_s26 }
  0xf9   : > { %v794_v29 = vpack.c.bf16 %v5149_v26, %v5148_v27 }
  0xfa   : > { %v521_v30 = vpop.permute.xlu1 %520  ;;  %v518_v31 = vpop.permute.xlu0 %517 }
  0xfb   : > { %vm625_vm14 = vcmp.eq.s32.totalorder %v6328_v4, %v521_v30  ;;  %vm624_vm15 = vcmp.eq.s32.totalorder %v6328_v4, %v518_v31  ;;  %5607 = vmatprep.mubr.msk.bf16.mxu0 %vm814_vm5, %v794_v29  ;;  %2306 = vrot.lane.b32.xlu0 %v2140_v28, %s6175_s26 }
  0xfc   : > { %v5151_v32 = vsel %vm625_vm14, 1.0, %v6176_v11  ;;  %v5150_v33 = vsel %vm624_vm15, 1.0, %v6176_v11 }
  0xfd   : > { %v795_v35 = vpack.c.bf16 %v5151_v32, %v5150_v33 }
  0xfe   : > { %v527_v36 = vpop.permute.xlu1 %526  ;;  %v524_v37 = vpop.permute.xlu0 %523 }
  0xff   : > { %vm627_vm0 = vcmp.eq.s32.totalorder %v6328_v4, %v527_v36  ;;  %vm626_vm1 = vcmp.eq.s32.totalorder %v6328_v4, %v524_v37  ;;  %2308 = vrot.lane.b32.xlu0 %v2141_v34, %s6175_s26  ;;  %v1523_v36 = vld [vmem:[%s6257_s23 + $0x18] sm:$0xff] }
 0x100   : > { %5608 = vmatmul.mubr.msk.bf16.gmra.mxu0 %vm814_vm5, %v795_v35  ;;  %v5152_v38 = vsel %vm626_vm1, 1.0, %v6176_v11  ;;  %v5153_v39 = vsel %vm627_vm0, 1.0, %v6176_v11  ;;  %5631 = vmatprep.subr.mxu1 %v1523_v36 }
 0x101   : > { %v796_v41 = vpack.c.bf16 %v5153_v39, %v5152_v38  ;;  %v1522_v38 = vld [vmem:[%s6257_s23 + $0x10] sm:$0xff] }
 0x102   : > { %v533_v42 = vpop.permute.xlu1 %532  ;;  %v530_v43 = vpop.permute.xlu0 %529 }
 0x103   : > { %vm629_vm2 = vcmp.eq.s32.totalorder %v6328_v4, %v533_v42  ;;  %vm628_vm3 = vcmp.eq.s32.totalorder %v6328_v4, %v530_v43  ;;  %5611 = vmatprep.mubr.msk.bf16.mxu1 %vm814_vm5, %v796_v41  ;;  %2312 = vrot.lane.b32.xlu0 %v2143_v40, %s6175_s26  ;;  %v1521_v40 = vld [vmem:[%s6257_s23 + $0x8] sm:$0xff]  ;;  %v1520_v42 = vld [vmem:[%s6257_s23] sm:$0xff] }
 0x104   : > { %v5155_v44 = vsel %vm629_vm2, 1.0, %v6176_v11  ;;  %v5154_v45 = vsel %vm628_vm3, 1.0, %v6176_v11 }
 0x105   : > { %v797_v46 = vpack.c.bf16 %v5155_v44, %v5154_v45 }
 0x106   : > { %v539_v47 = vpop.permute.xlu1 %538  ;;  %v536_v48 = vpop.permute.xlu0 %535 }
 0x107   : > { %vm631_vm4 = vcmp.eq.s32.totalorder %v6328_v4, %v539_v47  ;;  %vm630_vm6 = vcmp.eq.s32.totalorder %v6328_v4, %v536_v48  ;;  %5612 = vmatmul.mubr.msk.bf16.vlgmr.msra.gmra.mxu1 %vm814_vm5, %v797_v46 }
 0x108   : > { %v5157_v49 = vsel %vm631_vm4, 1.0, %v6176_v11  ;;  %v5156_v50 = vsel %vm630_vm6, 1.0, %v6176_v11  ;;  %5632 = vmatpush3.msra.mxu1 %v1523_v36 }
 0x109   : > { %v798_v51 = vpack.c.bf16 %v5157_v49, %v5156_v50  ;;  %5633 = vmatprep.subr.mxu1 %v1522_v38 }
 0x10a   : > { %v545_v52 = vpop.permute.xlu1 %544  ;;  %v542_v53 = vpop.permute.xlu0 %541  ;;  %5634 = vmatpush3.msra.mxu1 %v1522_v38 }
 0x10b   : > { %vm633_vm7 = vcmp.eq.s32.totalorder %v6328_v4, %v545_v52  ;;  %vm632_vm8 = vcmp.eq.s32.totalorder %v6328_v4, %v542_v53  ;;  %5615 = vmatprep.mubr.msk.bf16.mxu1 %vm814_vm5, %v798_v51  ;;  %5635 = vmatprep.subr.mxu1 %v1521_v40 }
 0x10c   : > { %v5159_v54 = vsel %vm633_vm7, 1.0, %v6176_v11  ;;  %v5158_v55 = vsel %vm632_vm8, 1.0, %v6176_v11  ;;  %5636 = vmatpush3.msra.mxu1 %v1521_v40  ;;  %vm2678_vm7 = vcmask 326912  }
 0x10d   : > { %v799_v56 = vpack.c.bf16 %v5159_v54, %v5158_v55  ;;  %5637 = vmatprep.subr.mxu1 %v1520_v42 }
 0x10e   : > { %v551_v57 = vpop.permute.xlu1 %550  ;;  %v548_v58 = vpop.permute.xlu0 %547  ;;  %5638 = vmatpush3.msra.mxu1 %v1520_v42 }
 0x10f   : > { %vm635_vm9 = vcmp.eq.s32.totalorder %v6328_v4, %v551_v57  ;;  %vm634_vm10 = vcmp.eq.s32.totalorder %v6328_v4, %v548_v58  ;;  %5616 = vmatmul.mubr.msk.bf16.gmra.mxu1 %vm814_vm5, %v799_v56 }
 0x110   : > { %v5161_v59 = vsel %vm635_vm9, 1.0, %v6176_v11  ;;  %v5160_v60 = vsel %vm634_vm10, 1.0, %v6176_v11 }
 0x111   : > { %v800_v61 = vpack.c.bf16 %v5161_v59, %v5160_v60 }
 0x112   : > { %v557_v62 = vpop.permute.xlu1 %556  ;;  %v554_v63 = vpop.permute.xlu0 %553 }
 0x113   : > { %vm637_vm11 = vcmp.eq.s32.totalorder %v6328_v4, %v557_v62  ;;  %vm636_vm12 = vcmp.eq.s32.totalorder %v6328_v4, %v554_v63  ;;  %5619 = vmatprep.mubr.msk.bf16.mxu1 %vm814_vm5, %v800_v61 }
 0x114   : > { %v5163_v0 = vsel %vm637_vm11, 1.0, %v6176_v11  ;;  %v5162_v2 = vsel %vm636_vm12, 1.0, %v6176_v11 }
 0x115   : > { %v801_v3 = vpack.c.bf16 %v5163_v0, %v5162_v2 }
 0x116   : > { %v563_v5 = vpop.permute.xlu1 %562  ;;  %v560_v6 = vpop.permute.xlu0 %559 }
 0x117   : > { %vm639_vm13 = vcmp.eq.s32.totalorder %v6328_v4, %v563_v5  ;;  %vm638_vm14 = vcmp.eq.s32.totalorder %v6328_v4, %v560_v6  ;;  %5620 = vmatmul.mubr.msk.bf16.gmra.mxu1 %vm814_vm5, %v801_v3 }
 0x118   : > { %v5165_v7 = vsel %vm639_vm13, 1.0, %v6176_v11  ;;  %v5164_v8 = vsel %vm638_vm14, 1.0, %v6176_v11 }
 0x119   : > { %v802_v9 = vpack.c.bf16 %v5165_v7, %v5164_v8 }
 0x11a   : > { %v569_v10 = vpop.permute.xlu1 %568  ;;  %v566_v12 = vpop.permute.xlu0 %565 }
 0x11b   : > { %vm641_vm15 = vcmp.eq.s32.totalorder %v6328_v4, %v569_v10  ;;  %vm640_vm0 = vcmp.eq.s32.totalorder %v6328_v4, %v566_v12  ;;  %5623 = vmatprep.mubr.msk.bf16.mxu1 %vm814_vm5, %v802_v9 }
 0x11c   : > { %v5167_v13 = vsel %vm641_vm15, 1.0, %v6176_v11  ;;  %v5166_v14 = vsel %vm640_vm0, 1.0, %v6176_v11 }
 0x11d   : > { %v803_v15 = vpack.c.bf16 %v5167_v13, %v5166_v14 }
 0x11e   : > { %v575_v16 = vpop.permute.xlu1 %574  ;;  %v572_v17 = vpop.permute.xlu0 %571 }
 0x11f   : > { %vm643_vm1 = vcmp.eq.s32.totalorder %v6328_v4, %v575_v16  ;;  %vm642_vm2 = vcmp.eq.s32.totalorder %v6328_v4, %v572_v17  ;;  %5624 = vmatmul.mubr.msk.bf16.gmra.mxu1 %vm814_vm5, %v803_v15 }
 0x120   : > { %v5169_v18 = vsel %vm643_vm1, 1.0, %v6176_v11  ;;  %v5168_v19 = vsel %vm642_vm2, 1.0, %v6176_v11 }
 0x121   : > { %v804_v20 = vpack.c.bf16 %v5169_v18, %v5168_v19 }
 0x122   : > { %v581_v21 = vpop.permute.xlu1 %580  ;;  %v578_v22 = vpop.permute.xlu0 %577 }
 0x123   : > { %vm645_vm3 = vcmp.eq.s32.totalorder %v6328_v4, %v581_v21  ;;  %vm644_vm4 = vcmp.eq.s32.totalorder %v6328_v4, %v578_v22  ;;  %5627 = vmatprep.mubr.msk.bf16.mxu1 %vm814_vm5, %v804_v20 }
 0x124   : > { %v5171_v23 = vsel %vm645_vm3, 1.0, %v6176_v11  ;;  %v5170_v24 = vsel %vm644_vm4, 1.0, %v6176_v11 }
 0x125   : > { %v805_v25 = vpack.c.bf16 %v5171_v23, %v5170_v24 }
 0x126   : > { %v6590_v29 = vpop.permute.xlu0 %2230  ;;  %v6611_v41 = vpop.permute.xlu1 %2232 }
 0x127   : > { %5628 = vmatmul.mubr.msk.bf16.gmra.mxu1 %vm814_vm5, %v805_v25  ;;  %9157 = vst [vmem:[#allocation8_spill] sm:$0xff] %v6590_v29  ;;  %9161 = vst [vmem:[#allocation12_spill] sm:$0xff] %v6611_v41  ;;  %vm1524_vm5 = vcmask 261120  }
 0x12a   : > { %v6594_v31 = vpop.permute.xlu0 %2234  ;;  %v6622_v47 = vpop.permute.xlu1 %2236 }
 0x12b   : > { %9158 = vst [vmem:[#allocation9_spill] sm:$0xff] %v6594_v31  ;;  %9163 = vst [vmem:[#allocation14_spill] sm:$0xff] %v6622_v47 }
 0x12e   : > { %v6600_v34 = vpop.permute.xlu0 %2238  ;;  %v6638_v52 = vpop.permute.xlu1 %2240 }
 0x12f   : > { %9159 = vst [vmem:[#allocation10_spill] sm:$0xff] %v6600_v34  ;;  %9165 = vst [vmem:[#allocation16_spill] sm:$0xff] %v6638_v52 }
 0x132   : > { %v6605_v37 = vpop.permute.xlu0 %2242  ;;  %v6654_v58 = vpop.permute.xlu1 %2244 }
 0x133   : > { %9160 = vst [vmem:[#allocation11_spill] sm:$0xff] %v6605_v37  ;;  %9167 = vst [vmem:[#allocation18_spill] sm:$0xff] %v6654_v58 }
 0x136   : > { %v6616_v44 = vpop.permute.xlu0 %2246  ;;  %v6670_v62 = vpop.permute.xlu1 %2248 }
 0x137   : > { %9162 = vst [vmem:[#allocation13_spill] sm:$0xff] %v6616_v44  ;;  %9169 = vst [vmem:[#allocation20_spill] sm:$0xff] %v6670_v62 }
 0x13a   : > { %v6628_v49 = vpop.permute.xlu0 %2250  ;;  %v6686_v6 = vpop.permute.xlu1 %2252 }
 0x13b   : > { %9164 = vst [vmem:[#allocation15_spill] sm:$0xff] %v6628_v49  ;;  %9172 = vst [vmem:[#allocation23_spill] sm:$0xff] %v6686_v6 }
 0x13e   : > { %v6644_v55 = vpop.permute.xlu0 %2254  ;;  %v6702_v10 = vpop.permute.xlu1 %2256 }
 0x13f   : > { %9166 = vst [vmem:[#allocation17_spill] sm:$0xff] %v6644_v55  ;;  %9175 = vst [vmem:[#allocation26_spill] sm:$0xff] %v6702_v10 }
 0x142   : > { %v6660_v59 = vpop.permute.xlu0 %2258  ;;  %v6718_v17 = vpop.permute.xlu1 %2260 }
 0x143   : > { %9168 = vst [vmem:[#allocation19_spill] sm:$0xff] %v6660_v59  ;;  %9179 = vst [vmem:[#allocation30_spill] sm:$0xff] %v6718_v17 }
 0x146   : > { %v6676_v2 = vpop.permute.xlu0 %2262  ;;  %v6734_v21 = vpop.permute.xlu1 %2264 }
 0x147   : > { %9171 = vst [vmem:[#allocation22_spill] sm:$0xff] %v6676_v2  ;;  %9182 = vst [vmem:[#allocation33_spill] sm:$0xff] %v6734_v21 }
 0x14a   : > { %v6692_v7 = vpop.permute.xlu0 %2266  ;;  %v6750_v38 = vpop.permute.xlu1 %2268 }
 0x14b   : > { %9173 = vst [vmem:[#allocation24_spill] sm:$0xff] %v6692_v7  ;;  %9186 = vst [vmem:[#allocation37_spill] sm:$0xff] %v6750_v38 }
 0x14e   : > { %v6708_v14 = vpop.permute.xlu0 %2270 }
 0x14f   : > { %9177 = vst [vmem:[#allocation28_spill] sm:$0xff] %v6708_v14 }
 0x152   : > { %v6724_v18 = vpop.permute.xlu0 %2274 }
 0x153   : > { %9180 = vst [vmem:[#allocation31_spill] sm:$0xff] %v6724_v18 }
 0x156   : > { %v6740_v24 = vpop.permute.xlu0 %2278 }
 0x157   : > { %9184 = vst [vmem:[#allocation35_spill] sm:$0xff] %v6740_v24  ;;  %v6766_v24 = vpop.permute.xlu1 %2272 }
 0x158   : > { %9189 = vst [vmem:[#allocation40_spill] sm:$0xff] %v6766_v24 }
 0x15a   : > { %v6756_v40 = vpop.permute.xlu0 %2282 }
 0x15b   : > { %9187 = vst [vmem:[#allocation38_spill] sm:$0xff] %v6756_v40  ;;  %v6782_v2 = vpop.permute.xlu1 %2276 }
 0x15c   : > { %9193 = vst [vmem:[#allocation44_spill] sm:$0xff] %v6782_v2 }
 0x15e   : > { %v6772_v7 = vpop.permute.xlu0 %2286 }
 0x15f   : > { %9191 = vst [vmem:[#allocation42_spill] sm:$0xff] %v6772_v7  ;;  %v6798_v59 = vpop.permute.xlu1 %2280 }
 0x160   : > { %9196 = vst [vmem:[#allocation47_spill] sm:$0xff] %v6798_v59 }
 0x162   : > { %v6788_v24 = vpop.permute.xlu0 %2290 }
 0x163   : > { %9194 = vst [vmem:[#allocation45_spill] sm:$0xff] %v6788_v24  ;;  %v6812_v10 = vpop.permute.xlu1 %2284 }
 0x164   : > { %9199 = vst [vmem:[#allocation50_spill] sm:$0xff] %v6812_v10 }
 0x166   : > { %v6804_v55 = vpop.permute.xlu0 %2294 }
 0x167   : > { %9198 = vst [vmem:[#allocation49_spill] sm:$0xff] %v6804_v55  ;;  %v6828_v6 = vpop.permute.xlu1 %2288 }
 0x168   : > { %9202 = vst [vmem:[#allocation53_spill] sm:$0xff] %v6828_v6 }
 0x16a   : > { %v6818_v59 = vpop.permute.xlu0 %2296 }
 0x16b   : > { %9200 = vst [vmem:[#allocation51_spill] sm:$0xff] %v6818_v59  ;;  %v6840_v62 = vpop.permute.xlu1 %2292 }
 0x16c   : > { %9204 = vst [vmem:[#allocation55_spill] sm:$0xff] %v6840_v62 }
 0x16e   : > { %v6832_v44 = vpop.permute.xlu0 %2300 }
 0x16f   : > { %9203 = vst [vmem:[#allocation54_spill] sm:$0xff] %v6832_v44  ;;  %v6854_v44 = vpop.permute.xlu1 %2298 }
 0x170   : > { %v6576_v26 = vpop.f32.mrf.mxu0  ;;  %9206 = vst [vmem:[#allocation57_spill] sm:$0xff] %v6854_v44 }
 0x171   : > { %1268 = vrot.lane.b32.xlu0 %v6576_v26, %s6177_s27 }
 0x172   : > { %v6580_v27 = vpop.f32.mrf.mxu0  ;;  %v6846_v6 = vpop.permute.xlu0 %2302 }
 0x173   : > { %9205 = vst [vmem:[#allocation56_spill] sm:$0xff] %v6846_v6  ;;  %v6866_v34 = vpop.permute.xlu1 %2304 }
 0x174   : > { %v6582_v4 = vpop.f32.mrf.mxu0  ;;  %9208 = vst [vmem:[#allocation59_spill] sm:$0xff] %v6866_v34 }
 0x175   : > { %1270 = vrot.lane.b32.xlu1 %v6582_v4, %s6177_s27 }
 0x176   : > { %v6586_v28 = vpop.f32.mrf.mxu0  ;;  %v6858_v62 = vpop.permute.xlu0 %2306 }
 0x177   : > { %9207 = vst [vmem:[#allocation58_spill] sm:$0xff] %v6858_v62  ;;  %v6880_v62 = vpop.permute.xlu1 %2310 }
 0x178   : > { %v6588_v11 = vpop.f32.mrf.mxu0  ;;  %9210 = vst [vmem:[#allocation61_spill] sm:$0xff] %v6880_v62 }
 0x17a   : > { %v6592_v30 = vpop.f32.mrf.mxu0  ;;  %v6872_v44 = vpop.permute.xlu0 %2308 }
 0x17b   : > { %9209 = vst [vmem:[#allocation60_spill] sm:$0xff] %v6872_v44  ;;  %v6892_v47 = vpop.permute.xlu1 %2314 }
 0x17c   : > { %v6596_v32 = vpop.f32.mrf.mxu0  ;;  %9212 = vst [vmem:[#allocation63_spill] sm:$0xff] %v6892_v47  ;;  %v2146_v47 = vld [vmem:[%s6252_s19 + $0x160] sm:$0xff] }
 0x17e   : > { %v6598_v33 = vpop.f32.mrf.mxu0  ;;  %v6884_v34 = vpop.permute.xlu0 %2312 }
 0x17f   : > { %9211 = vst [vmem:[#allocation62_spill] sm:$0xff] %v6884_v34 }
 0x180   : > { %v6602_v35 = vpop.f32.mrf.mxu0 }
 0x182   : > { %v6608_v39 = vpop.f32.mrf.mxu0 }
 0x184   : > { %v6614_v43 = vpop.f32.mrf.mxu0 }
 0x186   : > { %v6618_v45 = vpop.f32.mrf.mxu0 }
 0x188   : > { %v6630_v50 = vpop.f32.mrf.mxu0 }
 0x18a   : > { %v6640_v53 = vpop.f32.mrf.mxu0 }
 0x18c   : > { %v6650_v56 = vpop.f32.mrf.mxu0 }
 0x18e   : > { %v6662_v60 = vpop.f32.mrf.mxu0 }
 0x190   : > { %v6672_v63 = vpop.f32.mrf.mxu0 }
 0x192   : > { %v6682_v3 = vpop.f32.mrf.mxu0 }
 0x194   : > { %v6694_v8 = vpop.f32.mrf.mxu0 }
 0x196   : > { %v6704_v12 = vpop.f32.mrf.mxu0 }
 0x198   : > { %v6714_v15 = vpop.f32.mrf.mxu0 }
 0x19a   : > { %v6726_v19 = vpop.f32.mrf.mxu0 }
 0x19c   : > { %v6736_v22 = vpop.f32.mrf.mxu0 }
 0x19e   : > { %v6746_v25 = vpop.f32.mrf.mxu0 }
 0x1a0   : > { %v6758_v42 = vpop.f32.mrf.mxu0 }
 0x1a2   : > { %v6768_v18 = vpop.f32.mrf.mxu0 }
 0x1a4   : > { %v6778_v40 = vpop.f32.mrf.mxu0 }
 0x1a6   : > { %v6790_v7 = vpop.f32.mrf.mxu0 }
 0x1a8   : > { %v6800_v2 = vpop.f32.mrf.mxu0 }
 0x1aa   : > { %v6810_v24 = vpop.f32.mrf.mxu0 }
 0x1ac   : > { %v6820_v49 = vpop.f32.mrf.mxu0 }
 0x1ae   : > { %v6830_v10 = vpop.f32.mrf.mxu0 }
 0x1b0   : > { %v6838_v59 = vpop.f32.mrf.mxu0 }
 0x1b2   : > { %v6848_v37 = vpop.f32.mrf.mxu0 }
 0x1b4   : > { %v6856_v58 = vpop.f32.mrf.mxu0 }
 0x1b6   : > { %v6864_v6 = vpop.f32.mrf.mxu0 }
 0x1b8   : > { %v6874_v52 = vpop.f32.mrf.mxu0 }
 0x1ba   : > { %v6882_v31 = vpop.f32.mrf.mxu0 }
 0x1bc   : > { %v6890_v44 = vpop.f32.mrf.mxu0 }
 0x1be   : > { %v6898_v29 = vpop.f32.mrf.mxu0 }
 0x1c7   : > { %v6620_v46 = vpop.f32.mrf.mxu1 }
 0x1c8   : > { %1356 = vrot.lane.b32.xlu0 %v6620_v46, %s6177_s27 }
 0x1c9   : > { %v6626_v48 = vpop.f32.mrf.mxu1 }
 0x1cb   : > { %v6632_v51 = vpop.f32.mrf.mxu1 }
 0x1cc   : > { %1264 = vrot.lane.b32.xlu0 %v6580_v27, %s6177_s27  ;;  %1358 = vrot.lane.b32.xlu1 %v6632_v51, %s6177_s27 }
 0x1cd   : > { %v6642_v54 = vpop.f32.mrf.mxu1 }
 0x1cf   : > { %v6652_v57 = vpop.f32.mrf.mxu1 }
 0x1d0   : > { %1352 = vrot.lane.b32.xlu0 %v6626_v48, %s6177_s27  ;;  %1266 = vrot.lane.b32.xlu1 %v6586_v28, %s6177_s27 }
 0x1d1   : > { %v6664_v61 = vpop.f32.mrf.mxu1 }
 0x1d3   : > { %v6674_v0 = vpop.f32.mrf.mxu1 }
 0x1d4   : > { %1276 = vrot.lane.b32.xlu0 %v6588_v11, %s6177_s27  ;;  %1354 = vrot.lane.b32.xlu1 %v6642_v54, %s6177_s27  ;;  %9170 = vst [vmem:[#allocation21_spill] sm:$0xff] %v6674_v0 }
 0x1d5   : > { %v6684_v5 = vpop.f32.mrf.mxu1 }
 0x1d7   : > { %v6696_v9 = vpop.f32.mrf.mxu1 }
 0x1d8   : > { %1278 = vrot.lane.b32.xlu1 %v6596_v32, %s6177_s27  ;;  %1364 = vrot.lane.b32.xlu0 %v6652_v57, %s6177_s27  ;;  %9174 = vst [vmem:[#allocation25_spill] sm:$0xff] %v6696_v9 }
 0x1d9   : > { %v6706_v13 = vpop.f32.mrf.mxu1 }
 0x1da   : > { %9176 = vst [vmem:[#allocation27_spill] sm:$0xff] %v6706_v13 }
 0x1db   : > { %v6716_v16 = vpop.f32.mrf.mxu1 }
 0x1dc   : > { %1272 = vrot.lane.b32.xlu0 %v6592_v30, %s6177_s27  ;;  %1366 = vrot.lane.b32.xlu1 %v6674_v0, %s6177_s27  ;;  %9178 = vst [vmem:[#allocation29_spill] sm:$0xff] %v6716_v16 }
 0x1dd   : > { %v6728_v20 = vpop.f32.mrf.mxu1 }
 0x1de   : > { %9181 = vst [vmem:[#allocation32_spill] sm:$0xff] %v6728_v20 }
 0x1df   : > { %v6738_v23 = vpop.f32.mrf.mxu1 }
 0x1e0   : > { %1360 = vrot.lane.b32.xlu0 %v6664_v61, %s6177_s27  ;;  %1274 = vrot.lane.b32.xlu1 %v6598_v33, %s6177_s27  ;;  %9183 = vst [vmem:[#allocation34_spill] sm:$0xff] %v6738_v23 }
 0x1e1   : > { %v6748_v36 = vpop.f32.mrf.mxu1 }
 0x1e2   : > { %9185 = vst [vmem:[#allocation36_spill] sm:$0xff] %v6748_v36 }
 0x1e3   : > { %v6760_v1 = vpop.f32.mrf.mxu1  ;;  %v1269_v62 = vpop.permute.xlu0 %1268 }
 0x1e4   : > { %1284 = vrot.lane.b32.xlu0 %v6602_v35, %s6177_s27  ;;  %1362 = vrot.lane.b32.xlu1 %v6684_v5, %s6177_s27  ;;  %9188 = vst [vmem:[#allocation39_spill] sm:$0xff] %v6760_v1 }
 0x1e5   : > { %v6770_v14 = vpop.f32.mrf.mxu1 }
 0x1e6   : > { %9190 = vst [vmem:[#allocation41_spill] sm:$0xff] %v6770_v14 }
 0x1e7   : > { %v6780_v38 = vpop.f32.mrf.mxu1  ;;  %v1271_v34 = vpop.permute.xlu1 %1270 }
 0x1e8   : > { %1286 = vrot.lane.b32.xlu1 %v6614_v43, %s6177_s27  ;;  %1372 = vrot.lane.b32.xlu0 %v6696_v9, %s6177_s27  ;;  %9192 = vst [vmem:[#allocation43_spill] sm:$0xff] %v6780_v38  ;;  %v1458_v9 = vadd.f32 %v6576_v26, %v1269_v62 }
 0x1e9   : > { %v6792_v21 = vpop.f32.mrf.mxu1 }
 0x1ea   : > { %9195 = vst [vmem:[#allocation46_spill] sm:$0xff] %v6792_v21 }
 0x1eb   : > { %v6802_v17 = vpop.f32.mrf.mxu1 }
 0x1ec   : > { %1280 = vrot.lane.b32.xlu0 %v6608_v39, %s6177_s27  ;;  %1374 = vrot.lane.b32.xlu1 %v6716_v16, %s6177_s27  ;;  %9197 = vst [vmem:[#allocation48_spill] sm:$0xff] %v6802_v17 }
 0x1ed   : > { %v6822_v55 = vpop.f32.mrf.mxu1 }
 0x1ee   : > { %9201 = vst [vmem:[#allocation52_spill] sm:$0xff] %v6822_v55 }
 0x1f0   : > { %1368 = vrot.lane.b32.xlu0 %v6706_v13, %s6177_s27  ;;  %1282 = vrot.lane.b32.xlu1 %v6618_v45, %s6177_s27 }
 0x1f4   : > { %1292 = vrot.lane.b32.xlu0 %v6630_v50, %s6177_s27  ;;  %1370 = vrot.lane.b32.xlu1 %v6728_v20, %s6177_s27 }
 0x1f8   : > { %1294 = vrot.lane.b32.xlu1 %v6650_v56, %s6177_s27  ;;  %1380 = vrot.lane.b32.xlu0 %v6738_v23, %s6177_s27 }
 0x1fc   : > { %1288 = vrot.lane.b32.xlu0 %v6640_v53, %s6177_s27  ;;  %1382 = vrot.lane.b32.xlu1 %v6760_v1, %s6177_s27 }
 0x200   : > { %1376 = vrot.lane.b32.xlu0 %v6748_v36, %s6177_s27  ;;  %1290 = vrot.lane.b32.xlu1 %v6662_v60, %s6177_s27 }
 0x204   : > { %1300 = vrot.lane.b32.xlu0 %v6672_v63, %s6177_s27  ;;  %1378 = vrot.lane.b32.xlu1 %v6770_v14, %s6177_s27 }
 0x208   : > { %1302 = vrot.lane.b32.xlu1 %v6694_v8, %s6177_s27  ;;  %1388 = vrot.lane.b32.xlu0 %v6780_v38, %s6177_s27 }
 0x20c   : > { %1296 = vrot.lane.b32.xlu0 %v6682_v3, %s6177_s27  ;;  %1390 = vrot.lane.b32.xlu1 %v6802_v17, %s6177_s27  ;;  %v6906_v17 = vpop.f32.mrf.mxu0 }
 0x210   : > { %1384 = vrot.lane.b32.xlu0 %v6792_v21, %s6177_s27  ;;  %1298 = vrot.lane.b32.xlu1 %v6704_v12, %s6177_s27  ;;  %v6915_v21 = vpop.f32.mrf.mxu0 }
 0x212   : > { %v6924_v36 = vpop.f32.mrf.mxu0 }
 0x214   : > { %1308 = vrot.lane.b32.xlu0 %v6714_v15, %s6177_s27  ;;  %1386 = vrot.lane.b32.xlu1 %v6822_v55, %s6177_s27 }
 0x218   : > { %1304 = vrot.lane.b32.xlu0 %v6726_v19, %s6177_s27  ;;  %1310 = vrot.lane.b32.xlu1 %v6736_v22, %s6177_s27 }
 0x21c   : > { %1316 = vrot.lane.b32.xlu0 %v6758_v42, %s6177_s27  ;;  %1306 = vrot.lane.b32.xlu1 %v6746_v25, %s6177_s27 }
 0x220   : > { %1312 = vrot.lane.b32.xlu0 %v6768_v18, %s6177_s27  ;;  %1318 = vrot.lane.b32.xlu1 %v6778_v40, %s6177_s27 }
 0x224   : > { %1324 = vrot.lane.b32.xlu0 %v6800_v2, %s6177_s27  ;;  %1314 = vrot.lane.b32.xlu1 %v6790_v7, %s6177_s27 }
 0x228   : > { %1320 = vrot.lane.b32.xlu0 %v6810_v24, %s6177_s27  ;;  %1326 = vrot.lane.b32.xlu1 %v6820_v49, %s6177_s27 }
 0x22c   : > { %1322 = vrot.lane.b32.xlu1 %v6830_v10, %s6177_s27  ;;  %1332 = vrot.lane.b32.xlu0 %v6838_v59, %s6177_s27 }
 0x230   : > { %1334 = vrot.lane.b32.xlu1 %v6856_v58, %s6177_s27  ;;  %1328 = vrot.lane.b32.xlu0 %v6848_v37, %s6177_s27 }
 0x234   : > { %1330 = vrot.lane.b32.xlu1 %v6864_v6, %s6177_s27  ;;  %1340 = vrot.lane.b32.xlu0 %v6874_v52, %s6177_s27 }
 0x238   : > { %1342 = vrot.lane.b32.xlu1 %v6890_v44, %s6177_s27  ;;  %1336 = vrot.lane.b32.xlu0 %v6882_v31, %s6177_s27 }
 0x23a   : > { %v6904_v41 = vpop.permute.xlu0 %1356 }
 0x23c   : > { %1338 = vrot.lane.b32.xlu1 %v6898_v29, %s6177_s27  ;;  %1348 = vrot.lane.b32.xlu0 %v6906_v17, %s6177_s27 }
 0x23e   : > { %v6913_v38 = vpop.permute.xlu1 %1358  ;;  %v1265_v55 = vpop.permute.xlu0 %1264 }
 0x23f   : > { %v1456_v1 = vadd.f32 %v1265_v55, %v6580_v27  ;;  %v1459_v55 = vadd.f32 %v6582_v4, %v1271_v34 }
 0x240   : > { %2318 = vrot.lane.b32.xlu1 %v2146_v47, %s6175_s26  ;;  %1344 = vrot.lane.b32.xlu0 %v6915_v21, %s6177_s27 }
 0x241   : > { %5639 = vmatprep.mubr.msk.f32.mxu1 %vm1524_vm5, %v1456_v1  ;;  %v6934_v1 = vpop.f32.mrf.mxu0 }
 0x242   : > { %v1267_v23 = vpop.permute.xlu1 %1266  ;;  %v6922_v14 = vpop.permute.xlu0 %1352 }
 0x243   : > { %v1457_v16 = vadd.f32 %v1267_v23, %v6586_v28 }
 0x244   : > { %1350 = vrot.lane.b32.xlu1 %v6924_v36, %s6177_s27 }
 0x245   : > { %5640 = vmatmul.mubr.msk.f32.vlgmr.msra.gmra.mxu1 %vm1524_vm5, %v1457_v16 }
 0x246   : > { %v6931_v27 = vpop.permute.xlu1 %1354  ;;  %5642 = vmatprep.mubr.msk.f32.mxu1 %vm1524_vm5, %v1458_v9  ;;  %v1277_v47 = vpop.permute.xlu0 %1276 }
 0x247   : > { %v1462_v34 = vadd.f32 %v6588_v11, %v1277_v47 }
 0x248   : > { %1346 = vrot.lane.b32.xlu1 %v6934_v1, %s6177_s27 }
 0x249   : > { %5643 = vmatmul.mubr.msk.f32.gmra.mxu1 %vm1524_vm5, %v1459_v55 }
 0x24a   : > { %v1279_v26 = vpop.permute.xlu1 %1278  ;;  %v6940_v28 = vpop.permute.xlu0 %1364 }
 0x24b   : > { %v1463_v0 = vadd.f32 %v6596_v32, %v1279_v26 }
 0x24e   : > { %v6942_v62 = vpop.permute.xlu1 %1366  ;;  %v1273_v16 = vpop.permute.xlu0 %1272 }
 0x24f   : > { %v1460_v23 = vadd.f32 %v1273_v16, %v6592_v30 }
 0x251   : > { %5645 = vmatprep.mubr.msk.f32.mxu1 %vm1524_vm5, %v1460_v23 }
 0x252   : > { %v1275_v9 = vpop.permute.xlu1 %1274  ;;  %v6946_v20 = vpop.permute.xlu0 %1360 }
 0x253   : > { %v1461_v4 = vadd.f32 %v1275_v9, %v6598_v33 }
 0x255   : > { %5646 = vmatmul.mubr.msk.f32.gmra.mxu1 %vm1524_vm5, %v1461_v4  ;;  %v2145_v4 = vld [vmem:[%s6252_s19 + $0x158] sm:$0xff] }
 0x256   : > { %v6951_v55 = vpop.permute.xlu1 %1362  ;;  %5648 = vmatprep.mubr.msk.f32.mxu1 %vm1524_vm5, %v1462_v34  ;;  %v1285_v13 = vpop.permute.xlu0 %1284  ;;  %2316 = vrot.lane.b32.xlu0 %v2145_v4, %s6175_s26  ;;  %v2147_v34 = vld [vmem:[%s6252_s19 + $0x168] sm:$0xff] }
 0x259   : > { %5649 = vmatmul.mubr.msk.f32.gmra.mxu1 %vm1524_vm5, %v1463_v0  ;;  %v1466_v0 = vadd.f32 %v6602_v35, %v1285_v13 }
 0x25a   : > { %v1287_v30 = vpop.permute.xlu1 %1286  ;;  %v6956_v16 = vpop.permute.xlu0 %1372  ;;  %2320 = vrot.lane.b32.xlu0 %v2147_v34, %s6175_s26 }
 0x25e   : > { %v6958_v23 = vpop.permute.xlu1 %1374  ;;  %v1281_v33 = vpop.permute.xlu0 %1280 }
 0x25f   : > { %v1464_v11 = vadd.f32 %v1281_v33, %v6608_v39  ;;  %v1467_v33 = vadd.f32 %v6614_v43, %v1287_v30 }
 0x261   : > { %5651 = vmatprep.mubr.msk.f32.mxu1 %vm1524_vm5, %v1464_v11  ;;  %v2148_v11 = vld [vmem:[%s6252_s19 + $0x170] sm:$0xff] }
 0x262   : > { %v1283_v47 = vpop.permute.xlu1 %1282  ;;  %v6962_v9 = vpop.permute.xlu0 %1368  ;;  %2322 = vrot.lane.b32.xlu1 %v2148_v11, %s6175_s26 }
 0x263   : > { %v1465_v32 = vadd.f32 %v1283_v47, %v6618_v45  ;;  %v2149_v45 = vld [vmem:[%s6252_s19 + $0x178] sm:$0xff] }
 0x264   : > { %2324 = vrot.lane.b32.xlu0 %v2149_v45, %s6175_s26 }
 0x265   : > { %5652 = vmatmul.mubr.msk.f32.gmra.mxu1 %vm1524_vm5, %v1465_v32 }
 0x266   : > { %v6969_v26 = vpop.permute.xlu1 %1370  ;;  %5654 = vmatprep.mubr.msk.f32.mxu1 %vm1524_vm5, %v1466_v0  ;;  %v1293_v39 = vpop.permute.xlu0 %1292 }
 0x267   : > { %v1470_v34 = vadd.f32 %v6630_v50, %v1293_v39 }
 0x269   : > { %5655 = vmatmul.mubr.msk.f32.gmra.mxu1 %vm1524_vm5, %v1467_v33 }
 0x26a   : > { %v1295_v47 = vpop.permute.xlu1 %1294  ;;  %v6978_v4 = vpop.permute.xlu0 %1380 }
 0x26b   : > { %v1471_v45 = vadd.f32 %v6650_v56, %v1295_v47 }
 0x26e   : > { %v6982_v35 = vpop.permute.xlu1 %1382  ;;  %v1289_v13 = vpop.permute.xlu0 %1288 }
 0x26f   : > { %9213 = vst [vmem:[#allocation64_spill] sm:$0xff] %v6982_v35  ;;  %v1468_v32 = vadd.f32 %v1289_v13, %v6640_v53 }
 0x271   : > { %5657 = vmatprep.mubr.msk.f32.mxu1 %vm1524_vm5, %v1468_v32 }
 0x272   : > { %v1291_v43 = vpop.permute.xlu1 %1290  ;;  %v6986_v30 = vpop.permute.xlu0 %1376 }
 0x273   : > { %v1469_v0 = vadd.f32 %v1291_v43, %v6662_v60 }
 0x275   : > { %5658 = vmatmul.mubr.msk.f32.gmra.mxu1 %vm1524_vm5, %v1469_v0 }
 0x276   : > { %v6991_v33 = vpop.permute.xlu1 %1378  ;;  %5660 = vmatprep.mubr.msk.f32.mxu1 %vm1524_vm5, %v1470_v34  ;;  %v1301_v11 = vpop.permute.xlu0 %1300 }
 0x277   : > { %v1474_v0 = vadd.f32 %v6672_v63, %v1301_v11 }
 0x279   : > { %5661 = vmatmul.mubr.msk.f32.gmra.mxu1 %vm1524_vm5, %v1471_v45 }
 0x27a   : > { %v1303_v53 = vpop.permute.xlu1 %1302  ;;  %v6996_v13 = vpop.permute.xlu0 %1388 }
 0x27b   : > { %v1475_v34 = vadd.f32 %v6694_v8, %v1303_v53 }
 0x27e   : > { %v6998_v32 = vpop.permute.xlu1 %1390  ;;  %v1297_v35 = vpop.permute.xlu0 %1296 }
 0x27f   : > { %v1472_v60 = vadd.f32 %v1297_v35, %v6682_v3 }
 0x281   : > { %5663 = vmatprep.mubr.msk.f32.mxu1 %vm1524_vm5, %v1472_v60 }
 0x282   : > { %v1299_v50 = vpop.permute.xlu1 %1298  ;;  %v7002_v39 = vpop.permute.xlu0 %1384 }
 0x283   : > { %v1473_v43 = vadd.f32 %v1299_v50, %v6704_v12 }
 0x285   : > { %5664 = vmatmul.mubr.msk.f32.gmra.mxu1 %vm1524_vm5, %v1473_v43 }
 0x286   : > { %v7007_v56 = vpop.permute.xlu1 %1386  ;;  %5666 = vmatprep.mubr.msk.f32.mxu1 %vm1524_vm5, %v1474_v0  ;;  %v1309_v47 = vpop.permute.xlu0 %1308 }
 0x287   : > { %v1478_v11 = vadd.f32 %v6714_v15, %v1309_v47 }
 0x289   : > { %5667 = vmatmul.mubr.msk.f32.gmra.mxu1 %vm1524_vm5, %v1475_v34 }
 0x28a   : > { %v1311_v3 = vpop.permute.xlu1 %1310  ;;  %v1305_v35 = vpop.permute.xlu0 %1304 }
 0x28b   : > { %v1476_v45 = vadd.f32 %v1305_v35, %v6726_v19  ;;  %v1479_v53 = vadd.f32 %v6736_v22, %v1311_v3 }
 0x28d   : > { %5669 = vmatprep.mubr.msk.f32.mxu1 %vm1524_vm5, %v1476_v45 }
 0x28e   : > { %v1307_v12 = vpop.permute.xlu1 %1306  ;;  %v1317_v60 = vpop.permute.xlu0 %1316 }
 0x28f   : > { %v1477_v63 = vadd.f32 %v1307_v12, %v6746_v25  ;;  %v1482_v15 = vadd.f32 %v6758_v42, %v1317_v60 }
 0x291   : > { %5670 = vmatmul.mubr.msk.f32.gmra.mxu1 %vm1524_vm5, %v1477_v63 }
 0x292   : > { %v1319_v50 = vpop.permute.xlu1 %1318  ;;  %5672 = vmatprep.mubr.msk.f32.mxu1 %vm1524_vm5, %v1478_v11  ;;  %v1313_v8 = vpop.permute.xlu0 %1312 }
 0x293   : > { %v1480_v43 = vadd.f32 %v1313_v8, %v6768_v18  ;;  %v1483_v22 = vadd.f32 %v6778_v40, %v1319_v50 }
 0x295   : > { %5673 = vmatmul.mubr.msk.f32.gmra.mxu1 %vm1524_vm5, %v1479_v53 }
 0x296   : > { %v1315_v19 = vpop.permute.xlu1 %1314  ;;  %5675 = vmatprep.mubr.msk.f32.mxu1 %vm1524_vm5, %v1480_v43  ;;  %v1325_v0 = vpop.permute.xlu0 %1324 }
 0x297   : > { %v1481_v25 = vadd.f32 %v1315_v19, %v6790_v7  ;;  %v1486_v42 = vadd.f32 %v6800_v2, %v1325_v0 }
 0x299   : > { %5676 = vmatmul.mubr.msk.f32.gmra.mxu1 %vm1524_vm5, %v1481_v25 }
 0x29a   : > { %v1327_v47 = vpop.permute.xlu1 %1326  ;;  %5678 = vmatprep.mubr.msk.f32.mxu1 %vm1524_vm5, %v1482_v15  ;;  %v1321_v34 = vpop.permute.xlu0 %1320 }
 0x29b   : > { %v1484_v18 = vadd.f32 %v1321_v34, %v6810_v24  ;;  %v1487_v40 = vadd.f32 %v6820_v49, %v1327_v47  ;;  %v9222_v47 = vld [vmem:[#allocation64_spill] sm:$0xff]  ;;  %v9223_v34 = vld [vmem:[#allocation39_spill] sm:$0xff] }
 0x29d   : > { %5679 = vmatmul.mubr.msk.f32.gmra.mxu1 %vm1524_vm5, %v1483_v22  ;;  %v9224_v22 = vld [vmem:[#allocation46_spill] sm:$0xff] }
 0x29e   : > { %v1323_v3 = vpop.permute.xlu1 %1322  ;;  %5681 = vmatprep.mubr.msk.f32.mxu1 %vm1524_vm5, %v1484_v18  ;;  %v1333_v35 = vpop.permute.xlu0 %1332  ;;  %v9225_v18 = vld [vmem:[#allocation52_spill] sm:$0xff] }
 0x29f   : > { %v1485_v7 = vadd.f32 %v1323_v3, %v6830_v10  ;;  %v1490_v2 = vadd.f32 %v6838_v59, %v1333_v35  ;;  %v9226_v3 = vld [vmem:[#allocation43_spill] sm:$0xff]  ;;  %v9227_v35 = vld [vmem:[#allocation48_spill] sm:$0xff] }
 0x2a1   : > { %5682 = vmatmul.mubr.msk.f32.gmra.mxu1 %vm1524_vm5, %v1485_v7  ;;  %v1519_v7 = vadd.f32 %v9227_v35, %v6998_v32 }
 0x2a2   : > { %v1335_v45 = vpop.permute.xlu1 %1334  ;;  %5684 = vmatprep.mubr.msk.f32.mxu1 %vm1524_vm5, %v1486_v42  ;;  %v1329_v12 = vpop.permute.xlu0 %1328  ;;  %v9229_v42 = vld [vmem:[#allocation12_spill] sm:$0xff] }
 0x2a3   : > { %v1488_v24 = vadd.f32 %v1329_v12, %v6848_v37  ;;  %v1491_v49 = vadd.f32 %v6856_v58, %v1335_v45 }
 0x2a5   : > { %5685 = vmatmul.mubr.msk.f32.gmra.mxu1 %vm1524_vm5, %v1487_v40  ;;  %v9231_v40 = vld [vmem:[#allocation8_spill] sm:$0xff] }
 0x2a6   : > { %v1331_v60 = vpop.permute.xlu1 %1330  ;;  %5687 = vmatprep.mubr.msk.f32.mxu1 %vm1524_vm5, %v1488_v24  ;;  %v1341_v63 = vpop.permute.xlu0 %1340 }
 0x2a7   : > { %v1489_v10 = vadd.f32 %v1331_v60, %v6864_v6  ;;  %v1494_v59 = vadd.f32 %v6874_v52, %v1341_v63  ;;  %v9233_v63 = vld [vmem:[#allocation14_spill] sm:$0xff] }
 0x2a9   : > { %5688 = vmatmul.mubr.msk.f32.gmra.mxu1 %vm1524_vm5, %v1489_v10 }
 0x2aa   : > { %v1343_v11 = vpop.permute.xlu1 %1342  ;;  %5690 = vmatprep.mubr.msk.f32.mxu1 %vm1524_vm5, %v1490_v2  ;;  %v1337_v50 = vpop.permute.xlu0 %1336 }
 0x2ab   : > { %v1492_v37 = vadd.f32 %v1337_v50, %v6882_v31  ;;  %v1495_v58 = vadd.f32 %v6890_v44, %v1343_v11  ;;  %v1500_v44 = vadd.f32 %v6922_v14, %v6626_v48  ;;  %v1504_v48 = vadd.f32 %v6946_v20, %v6664_v61  ;;  %v9215_v14 = vld [vmem:[#allocation27_spill] sm:$0xff]  ;;  %v9216_v20 = vld [vmem:[#allocation32_spill] sm:$0xff] }
 0x2ac   : > { %v1508_v61 = vadd.f32 %v6962_v9, %v9215_v14 }
 0x2ad   : > { %5691 = vmatmul.mubr.msk.f32.gmra.mxu1 %vm1524_vm5, %v1491_v49  ;;  %v9235_v49 = vld [vmem:[#allocation9_spill] sm:$0xff] }
 0x2ae   : > { %v1339_v8 = vpop.permute.xlu1 %1338  ;;  %5693 = vmatprep.mubr.msk.f32.mxu1 %vm1524_vm5, %v1492_v37  ;;  %v1349_v53 = vpop.permute.xlu0 %1348 }
 0x2af   : > { %v1493_v6 = vadd.f32 %v1339_v8, %v6898_v29  ;;  %v1498_v52 = vadd.f32 %v6906_v17, %v1349_v53  ;;  %v1503_v17 = vadd.f32 %v6632_v51, %v6913_v38  ;;  %v9218_v38 = vld [vmem:[#allocation29_spill] sm:$0xff] }
 0x2b1   : > { %5694 = vmatmul.mubr.msk.f32.gmra.mxu1 %vm1524_vm5, %v1493_v6 }
 0x2b2   : > { %v7049_v43 = vpop.permute.xlu1 %2318  ;;  %5696 = vmatprep.mubr.msk.f32.mxu1 %vm1524_vm5, %v1494_v59  ;;  %v1345_v19 = vpop.permute.xlu0 %1344 }
 0x2b3   : > { %v1496_v31 = vadd.f32 %v1345_v19, %v6915_v21  ;;  %v1501_v21 = vadd.f32 %v6931_v27, %v6642_v54  ;;  %v1505_v54 = vadd.f32 %v6951_v55, %v6684_v5  ;;  %v1509_v5 = vadd.f32 %v6969_v26, %v9216_v20  ;;  %v9220_v55 = vld [vmem:[#allocation41_spill] sm:$0xff]  ;;  %v9221_v26 = vld [vmem:[#allocation34_spill] sm:$0xff] }
 0x2b4   : > { %v1511_v27 = vadd.f32 %v9218_v38, %v6958_v23  ;;  %v1513_v9 = vadd.f32 %v6991_v33, %v9220_v55  ;;  %v1515_v23 = vadd.f32 %v9223_v34, %v9222_v47  ;;  %v1517_v33 = vadd.f32 %v7007_v56, %v9225_v18  ;;  %v9247_v34 = vld [vmem:[#allocation13_spill] sm:$0xff]  ;;  %v9249_v18 = vld [vmem:[#allocation23_spill] sm:$0xff] }
 0x2b5   : > { %5697 = vmatmul.mubr.msk.f32.gmra.mxu1 %vm1524_vm5, %v1495_v58 }
 0x2b6   : > { %v1351_v0 = vpop.permute.xlu1 %1350  ;;  %5699 = vmatprep.mubr.msk.f32.mxu1 %vm1524_vm5, %v1496_v31 }
 0x2b7   : > { %v1499_v15 = vadd.f32 %v6924_v36, %v1351_v0  ;;  %v9217_v36 = vld [vmem:[#allocation25_spill] sm:$0xff] }
 0x2ba   : > { %v1347_v25 = vpop.permute.xlu1 %1346 }
 0x2bb   : > { %v1497_v29 = vadd.f32 %v1347_v25, %v6934_v1  ;;  %v1502_v1 = vadd.f32 %v6620_v46, %v6904_v41  ;;  %v1506_v41 = vadd.f32 %v6652_v57, %v6940_v28  ;;  %v9214_v46 = vld [vmem:[#allocation21_spill] sm:$0xff]  ;;  %v1510_v57 = vadd.f32 %v9217_v36, %v6956_v16  ;;  %v9219_v28 = vld [vmem:[#allocation36_spill] sm:$0xff] }
 0x2bc   : > { %v1507_v51 = vadd.f32 %v9214_v46, %v6942_v62  ;;  %v1512_v62 = vadd.f32 %v6986_v30, %v9219_v28  ;;  %v1514_v16 = vadd.f32 %v9221_v26, %v6978_v4  ;;  %v1516_v30 = vadd.f32 %v7002_v39, %v9224_v22  ;;  %v9237_v25 = vld [vmem:[#allocation16_spill] sm:$0xff] }
 0x2bd   : > { %5700 = vmatmul.mubr.msk.f32.gmra.mxu1 %vm1524_vm5, %v1497_v29  ;;  %v1518_v4 = vadd.f32 %v9226_v3, %v6996_v13 }
 0x2be   : > { %5702 = vmatprep.mubr.msk.f32.mxu1 %vm1524_vm5, %v1498_v52 }
 0x2c1   : > { %5703 = vmatmul.mubr.msk.f32.gmra.mxu1 %vm1524_vm5, %v1499_v15 }
 0x2c2   : > { %5705 = vmatprep.mubr.msk.f32.mxu1 %vm1524_vm5, %v1500_v44  ;;  %v9239_v44 = vld [vmem:[#allocation10_spill] sm:$0xff] }
 0x2c5   : > { %5706 = vmatmul.mubr.msk.f32.gmra.mxu1 %vm1524_vm5, %v1501_v21 }
 0x2c6   : > { %5708 = vmatprep.mubr.msk.f32.mxu1 %vm1524_vm5, %v1502_v1 }
 0x2c9   : > { %5709 = vmatmul.mubr.msk.f32.gmra.mxu1 %vm1524_vm5, %v1503_v17 }
 0x2ca   : > { %5711 = vmatprep.mubr.msk.f32.mxu1 %vm1524_vm5, %v1504_v48  ;;  %v9241_v48 = vld [vmem:[#allocation18_spill] sm:$0xff] }
 0x2cd   : > { %5712 = vmatmul.mubr.msk.f32.gmra.mxu1 %vm1524_vm5, %v1505_v54 }
 0x2ce   : > { %5714 = vmatprep.mubr.msk.f32.mxu1 %vm1524_vm5, %v1506_v41 }
 0x2d1   : > { %5715 = vmatmul.mubr.msk.f32.gmra.mxu1 %vm1524_vm5, %v1507_v51 }
 0x2d2   : > { %5717 = vmatprep.mubr.msk.f32.mxu1 %vm1524_vm5, %v1508_v61  ;;  %v9243_v61 = vld [vmem:[#allocation11_spill] sm:$0xff] }
 0x2d5   : > { %5718 = vmatmul.mubr.msk.f32.gmra.mxu1 %vm1524_vm5, %v1509_v5 }
 0x2d6   : > { %5720 = vmatprep.mubr.msk.f32.mxu1 %vm1524_vm5, %v1510_v57 }
 0x2d9   : > { %5721 = vmatmul.mubr.msk.f32.gmra.mxu1 %vm1524_vm5, %v1511_v27 }
 0x2da   : > { %5723 = vmatprep.mubr.msk.f32.mxu1 %vm1524_vm5, %v1512_v62 }
 0x2dd   : > { %5724 = vmatmul.mubr.msk.f32.gmra.mxu1 %vm1524_vm5, %v1513_v9  ;;  %v9245_v9 = vld [vmem:[#allocation20_spill] sm:$0xff] }
 0x2de   : > { %5726 = vmatprep.mubr.msk.f32.mxu1 %vm1524_vm5, %v1514_v16 }
 0x2e1   : > { %5727 = vmatmul.mubr.msk.f32.gmra.mxu1 %vm1524_vm5, %v1515_v23 }
 0x2e2   : > { %5729 = vmatprep.mubr.msk.f32.mxu1 %vm1524_vm5, %v1516_v30 }
 0x2e5   : > { %5730 = vmatmul.mubr.msk.f32.gmra.mxu1 %vm1524_vm5, %v1517_v33 }
 0x2e6   : > { %5732 = vmatprep.mubr.msk.f32.mxu1 %vm1524_vm5, %v1518_v4 }
 0x2e9   : > { %5733 = vmatmul.mubr.msk.f32.gmra.mxu1 %vm1524_vm5, %v1519_v7 }
 0x305   : > { %v7122_v39 = vpop.f32.mrf.mxu1 }
 0x306   : > { %9228 = vst [vmem:[#allocation21_spill] sm:$0xff] %v7122_v39  ;;  %v2423_v45 = vadd.f32 %v7122_v39, %v9229_v42  ;;  %v9251_v42 = vld [vmem:[#allocation15_spill] sm:$0xff] }
 0x307   : > { %v7126_v12 = vpop.f32.mrf.mxu1 }
 0x308   : > { %9230 = vst [vmem:[#allocation27_spill] sm:$0xff] %v7126_v12  ;;  %v2551_v56 = vmul.f32 0.2, %v2423_v45  ;;  %v2422_v13 = vadd.f32 %v9231_v40, %v7126_v12  ;;  %vm2487_vm6 = vcmp.gt.f32.partialorder %v2423_v45, 0.0 }
 0x309   : > { %v7130_v24 = vpop.f32.mrf.mxu1 }
 0x30a   : > { %9232 = vst [vmem:[#allocation32_spill] sm:$0xff] %v7130_v24  ;;  %v2550_v60 = vmul.f32 0.2, %v2422_v13  ;;  %v2425_v32 = vadd.f32 %v7130_v24, %v9233_v63  ;;  %v7134_v10 = vsel %vm2487_vm6, %v2423_v45, %v2551_v56  ;;  %vm2486_vm8 = vcmp.gt.f32.partialorder %v2422_v13, 0.0  ;;  %v9302_v24 = vld [vmem:[#allocation49_spill] sm:$0xff] }
 0x30b   : > { %v7136_v2 = vpop.f32.mrf.mxu1  ;;  %v2682_v11 = vsel %vm2678_vm7, %v7134_v10, -inf }
 0x30c   : > { %9234 = vst [vmem:[#allocation25_spill] sm:$0xff] %v7136_v2  ;;  %v2553_v50 = vmul.f32 0.2, %v2425_v32  ;;  %v2424_v37 = vadd.f32 %v9235_v49, %v7136_v2  ;;  %2683 = vmax.xlane.f32.xlu0 %v2682_v11  ;;  %v7142_v8 = vsel %vm2486_vm8, %v2422_v13, %v2550_v60  ;;  %vm2489_vm9 = vcmp.gt.f32.partialorder %v2425_v32, 0.0  ;;  %v9253_v49 = vld [vmem:[#allocation26_spill] sm:$0xff] }
 0x30d   : > { %v2679_v53 = vsel %vm2678_vm7, %v7142_v8, -inf }
 0x30e   : > { %v2552_v6 = vmul.f32 0.2, %v2424_v37  ;;  %2680 = vmax.xlane.f32.xlu1 %v2679_v53  ;;  %v7146_v59 = vsel %vm2489_vm9, %v2425_v32, %v2553_v50  ;;  %vm2488_vm10 = vcmp.gt.f32.partialorder %v2424_v37, 0.0 }
 0x30f   : > { %v2688_v58 = vsel %vm2678_vm7, %v7146_v59, -inf }
 0x310   : > { %v7148_v19 = vsel %vm2488_vm10, %v2424_v37, %v2552_v6 }
 0x311   : > { %v2685_v31 = vsel %vm2678_vm7, %v7148_v19, -inf }
 0x312   : > { %2689 = vmax.xlane.f32.xlu1 %v2688_v58  ;;  %2686 = vmax.xlane.f32.xlu0 %v2685_v31  ;;  %v9255_v58 = vld [vmem:[#allocation17_spill] sm:$0xff] }
 0x315   : > { %v7154_v0 = vpop.f32.mrf.mxu1 }
 0x316   : > { %9236 = vst [vmem:[#allocation29_spill] sm:$0xff] %v7154_v0  ;;  %v2427_v29 = vadd.f32 %v7154_v0, %v9237_v25 }
 0x317   : > { %v7158_v52 = vpop.f32.mrf.mxu1 }
 0x318   : > { %9238 = vst [vmem:[#allocation36_spill] sm:$0xff] %v7158_v52  ;;  %v2555_v15 = vmul.f32 0.2, %v2427_v29  ;;  %v2426_v21 = vadd.f32 %v9239_v44, %v7158_v52  ;;  %vm2491_vm11 = vcmp.gt.f32.partialorder %v2427_v29, 0.0  ;;  %v9303_v52 = vld [vmem:[#allocation60_spill] sm:$0xff] }
 0x319   : > { %v7162_v1 = vpop.f32.mrf.mxu1 }
 0x31a   : > { %9240 = vst [vmem:[#allocation41_spill] sm:$0xff] %v7162_v1  ;;  %v2554_v17 = vmul.f32 0.2, %v2426_v21  ;;  %v2429_v54 = vadd.f32 %v7162_v1, %v9241_v48  ;;  %v7166_v41 = vsel %vm2491_vm11, %v2427_v29, %v2555_v15  ;;  %vm2490_vm12 = vcmp.gt.f32.partialorder %v2426_v21, 0.0  ;;  %v9257_v15 = vld [vmem:[#allocation30_spill] sm:$0xff] }
 0x31b   : > { %v7168_v46 = vpop.f32.mrf.mxu1  ;;  %v2694_v51 = vsel %vm2678_vm7, %v7166_v41, -inf }
 0x31c   : > { %9242 = vst [vmem:[#allocation34_spill] sm:$0xff] %v7168_v46  ;;  %v2557_v14 = vmul.f32 0.2, %v2429_v54  ;;  %v2428_v20 = vadd.f32 %v9243_v61, %v7168_v46  ;;  %2695 = vmax.xlane.f32.xlu0 %v2694_v51  ;;  %v7174_v5 = vsel %vm2490_vm12, %v2426_v21, %v2554_v17  ;;  %vm2493_vm13 = vcmp.gt.f32.partialorder %v2429_v54, 0.0  ;;  %v9259_v51 = vld [vmem:[#allocation19_spill] sm:$0xff] }
 0x31d   : > { %v2691_v57 = vsel %vm2678_vm7, %v7174_v5, -inf }
 0x31e   : > { %v2556_v36 = vmul.f32 0.2, %v2428_v20  ;;  %vm2492_vm14 = vcmp.gt.f32.partialorder %v2428_v20, 0.0  ;;  %v7180_v27 = vsel %vm2493_vm13, %v2429_v54, %v2557_v14 }
 0x31f   : > { %v2700_v62 = vsel %vm2678_vm7, %v7180_v27, -inf }
 0x320   : > { %2692 = vmax.xlane.f32.xlu0 %v2691_v57  ;;  %v7178_v38 = vsel %vm2492_vm14, %v2428_v20, %v2556_v36 }
 0x321   : > { %v2697_v28 = vsel %vm2678_vm7, %v7178_v38, -inf }
 0x322   : > { %2698 = vmax.xlane.f32.xlu1 %v2697_v28 }
 0x324   : > { %2701 = vmax.xlane.f32.xlu0 %v2700_v62 }
 0x325   : > { %v7186_v55 = vpop.f32.mrf.mxu1 }
 0x326   : > { %9244 = vst [vmem:[#allocation64_spill] sm:$0xff] %v7186_v55  ;;  %v2431_v26 = vadd.f32 %v7186_v55, %v9245_v9 }
 0x327   : > { %v7190_v16 = vpop.f32.mrf.mxu1 }
 0x328   : > { %9246 = vst [vmem:[#allocation39_spill] sm:$0xff] %v7190_v16  ;;  %v2559_v47 = vmul.f32 0.2, %v2431_v26  ;;  %v2430_v23 = vadd.f32 %v9247_v34, %v7190_v16  ;;  %vm2495_vm15 = vcmp.gt.f32.partialorder %v2431_v26, 0.0  ;;  %v9309_v16 = vld [vmem:[#allocation54_spill] sm:$0xff] }
 0x329   : > { %v7194_v22 = vpop.f32.mrf.mxu1 }
 0x32a   : > { %9248 = vst [vmem:[#allocation46_spill] sm:$0xff] %v7194_v22  ;;  %v2558_v30 = vmul.f32 0.2, %v2430_v23  ;;  %v2433_v33 = vadd.f32 %v7194_v22, %v9249_v18  ;;  %v7198_v3 = vsel %vm2495_vm15, %v2431_v26, %v2559_v47  ;;  %vm2494_vm0 = vcmp.gt.f32.partialorder %v2430_v23, 0.0  ;;  %v2150_v26 = vld [vmem:[%s6252_s19 + $0x180] sm:$0xff]  ;;  %v2151_v47 = vld [vmem:[%s6252_s19 + $0x188] sm:$0xff] }
 0x32b   : > { %v7200_v4 = vpop.f32.mrf.mxu1  ;;  %v2706_v35 = vsel %vm2678_vm7, %v7198_v3, -inf }
 0x32c   : > { %9250 = vst [vmem:[#allocation52_spill] sm:$0xff] %v7200_v4  ;;  %v2561_v7 = vmul.f32 0.2, %v2433_v33  ;;  %v2432_v45 = vadd.f32 %v9251_v42, %v7200_v4  ;;  %2707 = vmax.xlane.f32.xlu0 %v2706_v35  ;;  %v7206_v56 = vsel %vm2494_vm0, %v2430_v23, %v2558_v30  ;;  %vm2497_vm1 = vcmp.gt.f32.partialorder %v2433_v33, 0.0  ;;  %v9262_v30 = vld [vmem:[#allocation33_spill] sm:$0xff] }
 0x32d   : > { %v2703_v40 = vsel %vm2678_vm7, %v7206_v56, -inf }
 0x32e   : > { %v2560_v13 = vmul.f32 0.2, %v2432_v45  ;;  %2704 = vmax.xlane.f32.xlu1 %v2703_v40  ;;  %v7210_v60 = vsel %vm2497_vm1, %v2433_v33, %v2561_v7  ;;  %vm2496_vm2 = vcmp.gt.f32.partialorder %v2432_v45, 0.0  ;;  %v9263_v33 = vld [vmem:[#allocation22_spill] sm:$0xff] }
 0x32f   : > { %v2712_v63 = vsel %vm2678_vm7, %v7210_v60, -inf }
 0x330   : > { %2713 = vmax.xlane.f32.xlu0 %v2712_v63  ;;  %v7214_v32 = vsel %vm2496_vm2, %v2432_v45, %v2560_v13 }
 0x331   : > { %v2709_v11 = vsel %vm2678_vm7, %v7214_v32, -inf }
 0x332   : > { %2710 = vmax.xlane.f32.xlu1 %v2709_v11  ;;  %v2152_v11 = vld [vmem:[%s6252_s19 + $0x190] sm:$0xff] }
 0x335   : > { %v7218_v50 = vpop.f32.mrf.mxu1 }
 0x336   : > { %9252 = vst [vmem:[#allocation43_spill] sm:$0xff] %v7218_v50  ;;  %v2435_v37 = vadd.f32 %v7218_v50, %v9253_v49  ;;  %v2153_v49 = vld [vmem:[%s6252_s19 + $0x198] sm:$0xff] }
 0x337   : > { %v7222_v53 = vpop.f32.mrf.mxu1 }
 0x338   : > { %9254 = vst [vmem:[#allocation48_spill] sm:$0xff] %v7222_v53  ;;  %v2563_v6 = vmul.f32 0.2, %v2435_v37  ;;  %v2434_v31 = vadd.f32 %v9255_v58, %v7222_v53  ;;  %vm2499_vm3 = vcmp.gt.f32.partialorder %v2435_v37, 0.0  ;;  %v9266_v58 = vld [vmem:[#allocation37_spill] sm:$0xff] }
 0x339   : > { %v7226_v25 = vpop.f32.mrf.mxu1 }
 0x33a   : > { %9256 = vst [vmem:[#allocation12_spill] sm:$0xff] %v7226_v25  ;;  %v2562_v29 = vmul.f32 0.2, %v2434_v31  ;;  %v2437_v44 = vadd.f32 %v7226_v25, %v9257_v15  ;;  %v7230_v21 = vsel %vm2499_vm3, %v2435_v37, %v2563_v6  ;;  %vm2498_vm4 = vcmp.gt.f32.partialorder %v2434_v31, 0.0 }
 0x33b   : > { %v7232_v17 = vpop.f32.mrf.mxu1  ;;  %v2718_v48 = vsel %vm2678_vm7, %v7230_v21, -inf }
 0x33c   : > { %9258 = vst [vmem:[#allocation8_spill] sm:$0xff] %v7232_v17  ;;  %v2565_v54 = vmul.f32 0.2, %v2437_v44  ;;  %v2436_v14 = vadd.f32 %v9259_v51, %v7232_v17  ;;  %2719 = vmax.xlane.f32.xlu0 %v2718_v48  ;;  %v7238_v61 = vsel %vm2498_vm4, %v2434_v31, %v2562_v29  ;;  %vm2501_vm6 = vcmp.gt.f32.partialorder %v2437_v44, 0.0  ;;  %v9267_v29 = vld [vmem:[#allocation24_spill] sm:$0xff] }
 0x33d   : > { %v2715_v20 = vsel %vm2678_vm7, %v7238_v61, -inf }
 0x33e   : > { %v2564_v36 = vmul.f32 0.2, %v2436_v14  ;;  %2716 = vmax.xlane.f32.xlu1 %v2715_v20  ;;  %v7242_v57 = vsel %vm2501_vm6, %v2437_v44, %v2565_v54  ;;  %vm2500_vm8 = vcmp.gt.f32.partialorder %v2436_v14, 0.0 }
 0x33f   : > { %v2724_v28 = vsel %vm2678_vm7, %v7242_v57, -inf }
 0x340   : > { %2725 = vmax.xlane.f32.xlu0 %v2724_v28  ;;  %v7246_v62 = vsel %vm2500_vm8, %v2436_v14, %v2564_v36  ;;  %v2154_v36 = vld [vmem:[%s6252_s19 + $0x1a0] sm:$0xff]  ;;  %v2155_v28 = vld [vmem:[%s6252_s19 + $0x1a8] sm:$0xff] }
 0x341   : > { %v2721_v9 = vsel %vm2678_vm7, %v7246_v62, -inf }
 0x342   : > { %2722 = vmax.xlane.f32.xlu1 %v2721_v9 }
 0x345   : > { %v7254_v34 = vpop.f32.mrf.mxu1 }
 0x346   : > { %9260 = vst [vmem:[#allocation14_spill] sm:$0xff] %v7254_v34  ;;  %v2439_v18 = vadd.f32 %v7254_v34, %v9262_v30 }
 0x347   : > { %v7256_v23 = vpop.f32.mrf.mxu1 }
 0x348   : > { %9261 = vst [vmem:[#allocation9_spill] sm:$0xff] %v7256_v23  ;;  %v2438_v35 = vadd.f32 %v9263_v33, %v7256_v23  ;;  %v2567_v7 = vmul.f32 0.2, %v2439_v18  ;;  %vm2503_vm9 = vcmp.gt.f32.partialorder %v2439_v18, 0.0 }
 0x349   : > { %v7274_v37 = vpop.f32.mrf.mxu1 }
 0x34a   : > { %v2566_v42 = vmul.f32 0.2, %v2438_v35  ;;  %vm2502_vm10 = vcmp.gt.f32.partialorder %v2438_v35, 0.0  ;;  %v7262_v45 = vsel %vm2503_vm9, %v2439_v18, %v2567_v7  ;;  %9264 = vst [vmem:[#allocation16_spill] sm:$0xff] %v7274_v37  ;;  %v2441_v31 = vadd.f32 %v7274_v37, %v9266_v58  ;;  %v9271_v18 = vld [vmem:[#allocation28_spill] sm:$0xff]  ;;  %v2157_v58 = vld [vmem:[%s6252_s19 + $0x1b8] sm:$0xff] }
 0x34b   : > { %v2730_v13 = vsel %vm2678_vm7, %v7262_v45, -inf  ;;  %v7276_v6 = vpop.f32.mrf.mxu1 }
 0x34c   : > { %v7264_v40 = vsel %vm2502_vm10, %v2438_v35, %v2566_v42  ;;  %9265 = vst [vmem:[#allocation10_spill] sm:$0xff] %v7276_v6  ;;  %v2440_v15 = vadd.f32 %v9267_v29, %v7276_v6  ;;  %v2569_v44 = vmul.f32 0.2, %v2441_v31  ;;  %vm2505_vm11 = vcmp.gt.f32.partialorder %v2441_v31, 0.0 }
 0x34d   : > { %v2727_v63 = vsel %vm2678_vm7, %v7264_v40, -inf }
 0x34e   : > { %v2568_v48 = vmul.f32 0.2, %v2440_v15  ;;  %vm2504_vm12 = vcmp.gt.f32.partialorder %v2440_v15, 0.0  ;;  %v7282_v54 = vsel %vm2505_vm11, %v2441_v31, %v2569_v44 }
 0x34f   : > { %v2736_v14 = vsel %vm2678_vm7, %v7282_v54, -inf }
 0x350   : > { %v7284_v51 = vsel %vm2504_vm12, %v2440_v15, %v2568_v48  ;;  %v9274_v15 = vld [vmem:[#allocation44_spill] sm:$0xff]  ;;  %v9275_v48 = vld [vmem:[#allocation31_spill] sm:$0xff] }
 0x351   : > { %v2733_v20 = vsel %vm2678_vm7, %v7284_v51, -inf  ;;  %v7294_v9 = vpop.f32.mrf.mxu1 }
 0x352   : > { %9268 = vst [vmem:[#allocation18_spill] sm:$0xff] %v7294_v9 }
 0x353   : > { %2326 = vrot.lane.b32.xlu1 %v2150_v26, %s6175_s26  ;;  %v7296_v26 = vpop.f32.mrf.mxu1 }
 0x354   : > { %9269 = vst [vmem:[#allocation11_spill] sm:$0xff] %v7296_v26  ;;  %v2442_v33 = vadd.f32 %v9271_v18, %v7296_v26 }
 0x355   : > { %v7314_v31 = vpop.f32.mrf.mxu1 }
 0x356   : > { %2328 = vrot.lane.b32.xlu0 %v2151_v47, %s6175_s26  ;;  %v9270_v47 = vld [vmem:[#allocation40_spill] sm:$0xff]  ;;  %v2570_v7 = vmul.f32 0.2, %v2442_v33  ;;  %vm2506_vm14 = vcmp.gt.f32.partialorder %v2442_v33, 0.0  ;;  %9272 = vst [vmem:[#allocation20_spill] sm:$0xff] %v7314_v31  ;;  %v2445_v44 = vadd.f32 %v7314_v31, %v9274_v15 }
 0x357   : > { %v2443_v30 = vadd.f32 %v7294_v9, %v9270_v47  ;;  %v7316_v29 = vpop.f32.mrf.mxu1  ;;  %v2164_v31 = vld [vmem:[%s6252_s19 + $0x1f0] sm:$0xff] }
 0x358   : > { %9273 = vst [vmem:[#allocation13_spill] sm:$0xff] %v7316_v29  ;;  %vm2509_vm15 = vcmp.gt.f32.partialorder %v2445_v44, 0.0 }
 0x359   : > { %v2571_v35 = vmul.f32 0.2, %v2443_v30  ;;  %vm2507_vm13 = vcmp.gt.f32.partialorder %v2443_v30, 0.0 }
 0x35b   : > { %v7302_v42 = vsel %vm2507_vm13, %v2443_v30, %v2571_v35  ;;  %v2159_v35 = vld [vmem:[%s6252_s19 + $0x1c8] sm:$0xff] }
 0x375   : > { %2731 = vmax.xlane.f32.xlu0 %v2730_v13  ;;  %v7304_v13 = vsel %vm2506_vm14, %v2442_v33, %v2570_v7  ;;  %v2158_v33 = vld [vmem:[%s6252_s19 + $0x1c0] sm:$0xff]  ;;  %v7334_v7 = vpop.f32.mrf.mxu1 }
 0x376   : > { %9276 = vst [vmem:[#allocation23_spill] sm:$0xff] %v7334_v7 }
 0x377   : > { %2728 = vmax.xlane.f32.xlu1 %v2727_v63  ;;  %v2742_v63 = vsel %vm2678_vm7, %v7302_v42, -inf }
 0x388   : > { %2330 = vrot.lane.b32.xlu1 %v2152_v11, %s6175_s26  ;;  %v2739_v11 = vsel %vm2678_vm7, %v7304_v13, -inf }
 0x38b   : > { %2332 = vrot.lane.b32.xlu0 %v2153_v49, %s6175_s26  ;;  %v2156_v49 = vld [vmem:[%s6252_s19 + $0x1b0] sm:$0xff] }
 0x3aa   : > { %2737 = vmax.xlane.f32.xlu0 %v2736_v14  ;;  %v2444_v14 = vadd.f32 %v9275_v48, %v7316_v29 }
 0x3ac   : > { %2734 = vmax.xlane.f32.xlu1 %v2733_v20  ;;  %v2573_v20 = vmul.f32 0.2, %v2445_v44  ;;  %vm2508_vm0 = vcmp.gt.f32.partialorder %v2444_v14, 0.0 }
 0x3bd   : > { %2334 = vrot.lane.b32.xlu1 %v2154_v36, %s6175_s26  ;;  %v2572_v36 = vmul.f32 0.2, %v2444_v14 }
 0x3bf   : > { %v7324_v47 = vsel %vm2508_vm0, %v2444_v14, %v2572_v36 }
 0x3c0   : > { %2336 = vrot.lane.b32.xlu0 %v2155_v28, %s6175_s26  ;;  %v7322_v28 = vsel %vm2509_vm15, %v2445_v44, %v2573_v20  ;;  %v2745_v18 = vsel %vm2678_vm7, %v7324_v47, -inf }
 0x3c1   : > { %v2748_v30 = vsel %vm2678_vm7, %v7322_v28, -inf }
 0x3df   : > { %2743 = vmax.xlane.f32.xlu0 %v2742_v63  ;;  %v7336_v63 = vpop.f32.mrf.mxu1 }
 0x3e0   : > { %9277 = vst [vmem:[#allocation15_spill] sm:$0xff] %v7336_v63 }
 0x3e1   : > { %2740 = vmax.xlane.f32.xlu1 %v2739_v11  ;;  %v9278_v11 = vld [vmem:[#allocation47_spill] sm:$0xff] }
 0x3f2   : > { %2338 = vrot.lane.b32.xlu1 %v2156_v49, %s6175_s26  ;;  %v2447_v49 = vadd.f32 %v7334_v7, %v9278_v11  ;;  %v9297_v7 = vld [vmem:[#allocation55_spill] sm:$0xff] }
 0x3f4   : > { %v2575_v44 = vmul.f32 0.2, %v2447_v49  ;;  %vm2511_vm1 = vcmp.gt.f32.partialorder %v2447_v49, 0.0 }
 0x3f5   : > { %2340 = vrot.lane.b32.xlu0 %v2157_v58, %s6175_s26  ;;  %v9279_v58 = vld [vmem:[#allocation35_spill] sm:$0xff] }
 0x3f6   : > { %v2446_v15 = vadd.f32 %v9279_v58, %v7336_v63  ;;  %v7342_v14 = vsel %vm2511_vm1, %v2447_v49, %v2575_v44  ;;  %v9282_v49 = vld [vmem:[#allocation50_spill] sm:$0xff] }
 0x3f7   : > { %v2754_v36 = vsel %vm2678_vm7, %v7342_v14, -inf }
 0x3f8   : > { %v2574_v48 = vmul.f32 0.2, %v2446_v15  ;;  %vm2510_vm2 = vcmp.gt.f32.partialorder %v2446_v15, 0.0 }
 0x3fa   : > { %v7344_v20 = vsel %vm2510_vm2, %v2446_v15, %v2574_v48  ;;  %v9283_v15 = vld [vmem:[#allocation38_spill] sm:$0xff] }
 0x414   : > { %2749 = vmax.xlane.f32.xlu0 %v2748_v30  ;;  %v2751_v30 = vsel %vm2678_vm7, %v7344_v20, -inf }
 0x416   : > { %2746 = vmax.xlane.f32.xlu1 %v2745_v18  ;;  %v2160_v18 = vld [vmem:[%s6252_s19 + $0x1d0] sm:$0xff] }
 0x427   : > { %2342 = vrot.lane.b32.xlu1 %v2158_v33, %s6175_s26  ;;  %v2161_v33 = vld [vmem:[%s6252_s19 + $0x1d8] sm:$0xff] }
 0x42a   : > { %2344 = vrot.lane.b32.xlu0 %v2159_v35, %s6175_s26  ;;  %v7354_v35 = vpop.f32.mrf.mxu1 }
 0x42b   : > { %9280 = vst [vmem:[#allocation26_spill] sm:$0xff] %v7354_v35  ;;  %v2449_v58 = vadd.f32 %v7354_v35, %v9282_v49  ;;  %v2162_v49 = vld [vmem:[%s6252_s19 + $0x1e0] sm:$0xff] }
 0x42c   : > { %v7356_v11 = vpop.f32.mrf.mxu1 }
 0x42d   : > { %9281 = vst [vmem:[#allocation17_spill] sm:$0xff] %v7356_v11  ;;  %v2448_v44 = vadd.f32 %v9283_v15, %v7356_v11  ;;  %v2577_v48 = vmul.f32 0.2, %v2449_v58  ;;  %vm2513_vm3 = vcmp.gt.f32.partialorder %v2449_v58, 0.0  ;;  %v2163_v15 = vld [vmem:[%s6252_s19 + $0x1e8] sm:$0xff] }
 0x42e   : > { %v7374_v23 = vpop.f32.mrf.mxu1 }
 0x42f   : > { %vm2512_vm4 = vcmp.gt.f32.partialorder %v2448_v44, 0.0  ;;  %9284 = vst [vmem:[#allocation30_spill] sm:$0xff] %v7374_v23 }
 0x449   : > { %2755 = vmax.xlane.f32.xlu0 %v2754_v36  ;;  %v2576_v36 = vmul.f32 0.2, %v2448_v44 }
 0x44b   : > { %2752 = vmax.xlane.f32.xlu1 %v2751_v30  ;;  %v7362_v30 = vsel %vm2513_vm3, %v2449_v58, %v2577_v48  ;;  %v7376_v58 = vpop.f32.mrf.mxu1 }
 0x44c   : > { %9285 = vst [vmem:[#allocation19_spill] sm:$0xff] %v7376_v58 }
 0x45c   : > { %2346 = vrot.lane.b32.xlu1 %v2160_v18, %s6175_s26  ;;  %v7364_v18 = vsel %vm2512_vm4, %v2448_v44, %v2576_v36  ;;  %v9286_v44 = vld [vmem:[#allocation53_spill] sm:$0xff]  ;;  %v9287_v36 = vld [vmem:[#allocation42_spill] sm:$0xff] }
 0x45d   : > { %v2757_v34 = vsel %vm2678_vm7, %v7364_v18, -inf  ;;  %v2451_v48 = vadd.f32 %v7374_v23, %v9286_v44  ;;  %v7390_v44 = vpop.f32.mrf.mxu1 }
 0x45e   : > { %9288 = vst [vmem:[#allocation33_spill] sm:$0xff] %v7390_v44  ;;  %v2453_v63 = vadd.f32 %v7390_v44, %v9297_v7 }
 0x45f   : > { %2348 = vrot.lane.b32.xlu0 %v2161_v33, %s6175_s26  ;;  %v2760_v33 = vsel %vm2678_vm7, %v7362_v30, -inf  ;;  %v2579_v37 = vmul.f32 0.2, %v2451_v48  ;;  %vm2515_vm6 = vcmp.gt.f32.partialorder %v2451_v48, 0.0 }
 0x460   : > { %v2581_v23 = vmul.f32 0.2, %v2453_v63  ;;  %vm2517_vm9 = vcmp.gt.f32.partialorder %v2453_v63, 0.0 }
 0x462   : > { %v7426_v44 = vsel %vm2517_vm9, %v2453_v63, %v2581_v23  ;;  %v2317_v63 = vpop.permute.xlu0 %2316 }
 0x463   : > { %v2772_v46 = vsel %vm2678_vm7, %v7426_v44, -inf }
 0x47e   : > { %2761 = vmax.xlane.f32.xlu0 %v2760_v33  ;;  %v2450_v33 = vadd.f32 %v9287_v36, %v7376_v58  ;;  %v7392_v36 = vpop.f32.mrf.mxu1 }
 0x47f   : > { %9289 = vst [vmem:[#allocation22_spill] sm:$0xff] %v7392_v36 }
 0x480   : > { %2758 = vmax.xlane.f32.xlu1 %v2757_v34  ;;  %v2578_v34 = vmul.f32 0.2, %v2450_v33  ;;  %vm2514_vm8 = vcmp.gt.f32.partialorder %v2450_v33, 0.0  ;;  %v7394_v26 = vpop.f32.mrf.mxu1 }
 0x481   : > { %9290 = vst [vmem:[#allocation37_spill] sm:$0xff] %v7394_v26 }
 0x482   : > { %v7384_v6 = vsel %vm2514_vm8, %v2450_v33, %v2578_v34 }
 0x483   : > { %v2763_v9 = vsel %vm2678_vm7, %v7384_v6, -inf }
 0x491   : > { %2350 = vrot.lane.b32.xlu1 %v2162_v49, %s6175_s26  ;;  %v7382_v49 = vsel %vm2515_vm6, %v2451_v48, %v2579_v37  ;;  %v2165_v37 = vld [vmem:[%s6252_s19 + $0x1f8] sm:$0xff]  ;;  %v7399_v48 = vpop.f32.mrf.mxu1 }
 0x492   : > { %9291 = vst [vmem:[#allocation24_spill] sm:$0xff] %v7399_v48  ;;  %v2454_v2 = vadd.f32 %v9302_v24, %v7399_v48  ;;  %v9306_v48 = vld [vmem:[#allocation62_spill] sm:$0xff] }
 0x493   : > { %v7402_v33 = vpop.f32.mrf.mxu1 }
 0x494   : > { %2352 = vrot.lane.b32.xlu0 %v2163_v15, %s6175_s26  ;;  %v2766_v15 = vsel %vm2678_vm7, %v7382_v49, -inf  ;;  %9292 = vst [vmem:[#allocation40_spill] sm:$0xff] %v7402_v33  ;;  %vm2518_vm12 = vcmp.gt.f32.partialorder %v2454_v2, 0.0 }
 0x495   : > { %v7404_v34 = vpop.f32.mrf.mxu1 }
 0x496   : > { %9293 = vst [vmem:[#allocation28_spill] sm:$0xff] %v7404_v34 }
 0x4b3   : > { %2767 = vmax.xlane.f32.xlu0 %v2766_v15  ;;  %v7406_v15 = vpop.f32.mrf.mxu1 }
 0x4b4   : > { %9294 = vst [vmem:[#allocation44_spill] sm:$0xff] %v7406_v15 }
 0x4b5   : > { %2764 = vmax.xlane.f32.xlu1 %v2763_v9  ;;  %v7408_v9 = vpop.f32.mrf.mxu1 }
 0x4b6   : > { %9295 = vst [vmem:[#allocation31_spill] sm:$0xff] %v7408_v9 }
 0x4b7   : > { %v7410_v29 = vpop.f32.mrf.mxu1 }
 0x4b8   : > { %9296 = vst [vmem:[#allocation47_spill] sm:$0xff] %v7410_v29  ;;  %v2461_v7 = vadd.f32 %v7410_v29, %v9303_v52 }
 0x4b9   : > { %v7416_v11 = vpop.f32.mrf.mxu1 }
 0x4ba   : > { %9299 = vst [vmem:[#allocation35_spill] sm:$0xff] %v7416_v11  ;;  %v2589_v24 = vmul.f32 0.2, %v2461_v7  ;;  %vm2525_vm13 = vcmp.gt.f32.partialorder %v2461_v7, 0.0 }
 0x4bb   : > { %v7420_v39 = vpop.f32.mrf.mxu1 }
 0x4bc   : > { %9301 = vst [vmem:[#allocation50_spill] sm:$0xff] %v7420_v39  ;;  %v2463_v55 = vadd.f32 %v7420_v39, %v9306_v48 }
 0x4be   : > { %vm2527_vm15 = vcmp.gt.f32.partialorder %v2463_v55, 0.0 }
 0x4c6   : > { %2354 = vrot.lane.b32.xlu1 %v2164_v31, %s6175_s26  ;;  %v9298_v31 = vld [vmem:[#allocation45_spill] sm:$0xff] }
 0x4c7   : > { %v2452_v35 = vadd.f32 %v9298_v31, %v7392_v36  ;;  %v7428_v31 = vpop.f32.mrf.mxu1  ;;  %v9305_v36 = vld [vmem:[#allocation51_spill] sm:$0xff] }
 0x4c8   : > { %9304 = vst [vmem:[#allocation38_spill] sm:$0xff] %v7428_v31 }
 0x4c9   : > { %2356 = vrot.lane.b32.xlu0 %v2165_v37, %s6175_s26  ;;  %v9300_v37 = vld [vmem:[#allocation59_spill] sm:$0xff]  ;;  %v2580_v12 = vmul.f32 0.2, %v2452_v35  ;;  %vm2516_vm10 = vcmp.gt.f32.partialorder %v2452_v35, 0.0  ;;  %v7440_v23 = vpop.f32.mrf.mxu1 }
 0x4ca   : > { %v2459_v58 = vadd.f32 %v7406_v15, %v9300_v37  ;;  %v2455_v37 = vadd.f32 %v7394_v26, %v9305_v36  ;;  %v2582_v15 = vmul.f32 0.2, %v2454_v2  ;;  %9307 = vst [vmem:[#allocation53_spill] sm:$0xff] %v7440_v23 }
 0x4cb   : > { %v7432_v1 = vsel %vm2516_vm10, %v2452_v35, %v2580_v12  ;;  %v9308_v35 = vld [vmem:[#allocation57_spill] sm:$0xff] }
 0x4cc   : > { %v2587_v0 = vmul.f32 0.2, %v2459_v58  ;;  %vm2523_vm11 = vcmp.gt.f32.partialorder %v2459_v58, 0.0  ;;  %v2769_v36 = vsel %vm2678_vm7, %v7432_v1, -inf  ;;  %v2583_v12 = vmul.f32 0.2, %v2455_v37 }
 0x4cd   : > { %v2456_v26 = vadd.f32 %v9308_v35, %v7404_v34  ;;  %v7446_v29 = vsel %vm2518_vm12, %v2454_v2, %v2582_v15  ;;  %vm2519_vm14 = vcmp.gt.f32.partialorder %v2455_v37, 0.0  ;;  %v2457_v35 = vadd.f32 %v7402_v33, %v9309_v16  ;;  %v9310_v16 = vld [vmem:[#allocation56_spill] sm:$0xff] }
 0x4ce   : > { %v7438_v52 = vsel %vm2523_vm11, %v2459_v58, %v2587_v0  ;;  %v2591_v0 = vmul.f32 0.2, %v2463_v55  ;;  %v7451_v58 = vsel %vm2525_vm13, %v2461_v7, %v2589_v24  ;;  %v2775_v39 = vsel %vm2678_vm7, %v7446_v29, -inf  ;;  %v7463_v7 = vpop.permute.xlu1 %2322 }
 0x4cf   : > { %v2790_v48 = vsel %vm2678_vm7, %v7438_v52, -inf  ;;  %v7457_v2 = vsel %vm2519_vm14, %v2455_v37, %v2583_v12  ;;  %v2796_v15 = vsel %vm2678_vm7, %v7451_v58, -inf  ;;  %vm2520_vm0 = vcmp.gt.f32.partialorder %v2456_v26, 0.0 }
 0x4d0   : > { %v2778_v24 = vsel %vm2678_vm7, %v7457_v2, -inf  ;;  %vm2521_vm2 = vcmp.gt.f32.partialorder %v2457_v35, 0.0 }
 0x4e8   : > { %2773 = vmax.xlane.f32.xlu0 %v2772_v46  ;;  %v2465_v46 = vadd.f32 %v7440_v23, %v2317_v63  ;;  %v7461_v63 = vsel %vm2527_vm15, %v2463_v55, %v2591_v0  ;;  %v2681_v0 = vpop.xlane.xlu1 %2680  ;;  %v9311_v23 = vld [vmem:[#allocation58_spill] sm:$0xff] }
 0x4e9   : > { %v2802_v12 = vsel %vm2678_vm7, %v7461_v63, -inf  ;;  %v2460_v22 = vadd.f32 %v9311_v23, %v7416_v11 }
 0x4ea   : > { %2770 = vmax.xlane.f32.xlu1 %v2769_v36  ;;  %v2584_v36 = vmul.f32 0.2, %v2456_v26  ;;  %v2593_v34 = vmul.f32 0.2, %v2465_v46  ;;  %vm2529_vm1 = vcmp.gt.f32.partialorder %v2465_v46, 0.0 }
 0x4eb   : > { %vm2524_vm4 = vcmp.gt.f32.partialorder %v2460_v22, 0.0 }
 0x4ec   : > { %2791 = vmax.xlane.f32.xlu0 %v2790_v48  ;;  %v2585_v48 = vmul.f32 0.2, %v2457_v35  ;;  %v7469_v37 = vsel %vm2520_vm0, %v2456_v26, %v2584_v36  ;;  %v7473_v55 = vsel %vm2529_vm1, %v2465_v46, %v2593_v34  ;;  %v7481_v26 = vpop.f32.mrf.mxu1  ;;  %v2871_v34 = vsub.f32 %v7142_v8, %v2681_v0  ;;  %v9315_v8 = vld [vmem:[#allocation63_spill] sm:$0xff] }
 0x4ed   : > { %9312 = vst [vmem:[#allocation42_spill] sm:$0xff] %v7481_v26  ;;  %v2808_v36 = vsel %vm2678_vm7, %v7473_v55, -inf  ;;  %v2464_v0 = vadd.f32 %v9315_v8, %v7481_v26 }
 0x4ee   : > { %2776 = vmax.xlane.f32.xlu1 %v2775_v39  ;;  %v2458_v39 = vadd.f32 %v9310_v16, %v7408_v9  ;;  %v7479_v16 = vsel %vm2521_vm2, %v2457_v35, %v2585_v48  ;;  %v7492_v35 = vpop.f32.mrf.mxu1  ;;  %v2935_v48 = vmul.f32 1.442695, %v2871_v34 }
 0x4ef   : > { %v2784_v46 = vsel %vm2678_vm7, %v7479_v16, -inf  ;;  %9314 = vst [vmem:[#allocation55_spill] sm:$0xff] %v7492_v35  ;;  %vm2528_vm8 = vcmp.gt.f32.partialorder %v2464_v0, 0.0 }
 0x4f0   : > { %2797 = vmax.xlane.f32.xlu0 %v2796_v15  ;;  %v2781_v15 = vsel %vm2678_vm7, %v7469_v37, -inf  ;;  %v2586_v33 = vmul.f32 0.2, %v2458_v39  ;;  %vm2522_vm3 = vcmp.gt.f32.partialorder %v2458_v39, 0.0  ;;  %v7500_v17 = vpop.f32.mrf.mxu1  ;;  %5862 = vpow2.f32 %v2935_v48 }
 0x4f1   : > { %9316 = vst [vmem:[#allocation45_spill] sm:$0xff] %v7500_v17  ;;  %v2466_v34 = vadd.f32 %v7049_v43, %v7500_v17 }
 0x4f2   : > { %2779 = vmax.xlane.f32.xlu1 %v2778_v24  ;;  %v2588_v24 = vmul.f32 0.2, %v2460_v22  ;;  %v7490_v23 = vsel %vm2522_vm3, %v2458_v39, %v2586_v33  ;;  %v2592_v39 = vmul.f32 0.2, %v2464_v0 }
 0x4f3   : > { %vm2530_vm9 = vcmp.gt.f32.partialorder %v2466_v34, 0.0 }
 0x4f4   : > { %2803 = vmax.xlane.f32.xlu0 %v2802_v12  ;;  %v9313_v12 = vld [vmem:[#allocation61_spill] sm:$0xff]  ;;  %v7511_v48 = vsel %vm2528_vm8, %v2464_v0, %v2592_v39 }
 0x4f5   : > { %v2462_v9 = vadd.f32 %v9313_v12, %v7428_v31  ;;  %v2805_v31 = vsel %vm2678_vm7, %v7511_v48, -inf }
 0x4f6   : > { %2782 = vmax.xlane.f32.xlu1 %v2781_v15  ;;  %v2787_v15 = vsel %vm2678_vm7, %v7490_v23, -inf }
 0x4f7   : > { %v2590_v11 = vmul.f32 0.2, %v2462_v9  ;;  %vm2526_vm6 = vcmp.gt.f32.partialorder %v2462_v9, 0.0 }
 0x4f8   : > { %2809 = vmax.xlane.f32.xlu0 %v2808_v36  ;;  %v7498_v36 = vsel %vm2524_vm4, %v2460_v22, %v2588_v24 }
 0x4f9   : > { %v2793_v33 = vsel %vm2678_vm7, %v7498_v36, -inf  ;;  %v7506_v12 = vsel %vm2526_vm6, %v2462_v9, %v2590_v11 }
 0x4fa   : > { %2785 = vmax.xlane.f32.xlu1 %v2784_v46  ;;  %v2321_v46 = vpop.permute.xlu0 %2320  ;;  %v2799_v22 = vsel %vm2678_vm7, %v7506_v12, -inf }
 0x4fb   : > { %v2467_v24 = vadd.f32 %v7492_v35, %v2321_v46 }
 0x4fd   : > { %v2595_v26 = vmul.f32 0.2, %v2467_v24  ;;  %vm2531_vm10 = vcmp.gt.f32.partialorder %v2467_v24, 0.0  ;;  %v7517_v9 = vpop.eup %5862 }
 0x4fe   : > { %2788 = vmax.xlane.f32.xlu1 %v2787_v15  ;;  %v2594_v15 = vmul.f32 0.2, %v2466_v34  ;;  %v2325_v8 = vpop.permute.xlu0 %2324  ;;  %9318 = vst [vmem:[#allocation49_spill] sm:$0xff] %v7517_v9 }
 0x4ff   : > { %v7524_v0 = vsel %vm2531_vm10, %v2467_v24, %v2595_v26  ;;  %v2690_v26 = vpop.xlane.xlu1 %2689 }
 0x500   : > { %v7515_v11 = vsel %vm2530_vm9, %v2466_v34, %v2594_v15  ;;  %9319 = vst [vmem:[#allocation60_spill] sm:$0xff] %v7524_v0  ;;  %v2814_v34 = vsel %vm2678_vm7, %v7524_v0, -inf }
 0x501   : > { %9317 = vst [vmem:[#allocation59_spill] sm:$0xff] %v7515_v11  ;;  %v2811_v46 = vsel %vm2678_vm7, %v7515_v11, -inf }
 0x502   : > { %2794 = vmax.xlane.f32.xlu1 %v2793_v33  ;;  %v2684_v43 = vpop.xlane.xlu0 %2683 }
 0x503   : > { %v2872_v33 = vsub.f32 %v7134_v10, %v2684_v43  ;;  %v7529_v10 = vpop.f32.mrf.mxu1 }
 0x504   : > { %9320 = vst [vmem:[#allocation51_spill] sm:$0xff] %v7529_v10  ;;  %v2469_v53 = vadd.f32 %v7529_v10, %v2325_v8 }
 0x505   : > { %v2937_v39 = vmul.f32 1.442695, %v2872_v33  ;;  %v7531_v43 = vpop.f32.mrf.mxu1  ;;  %v2699_v33 = vpop.xlane.xlu1 %2698 }
 0x506   : > { %2800 = vmax.xlane.f32.xlu1 %v2799_v22  ;;  %v2687_v22 = vpop.xlane.xlu0 %2686  ;;  %9321 = vst [vmem:[#allocation62_spill] sm:$0xff] %v7531_v43  ;;  %vm2533_vm12 = vcmp.gt.f32.partialorder %v2469_v53, 0.0 }
 0x507   : > { %5864 = vpow2.f32 %v2937_v39  ;;  %v7560_v50 = vpop.f32.mrf.mxu1 }
 0x508   : > { %9325 = vst [vmem:[#allocation58_spill] sm:$0xff] %v7560_v50 }
 0x509   : > { %v7545_v39 = vpop.xlane.xlu1 %2704 }
 0x50a   : > { %2806 = vmax.xlane.f32.xlu1 %v2805_v31  ;;  %v2873_v31 = vsub.f32 %v7148_v19, %v2687_v22 }
 0x50c   : > { %v2939_v15 = vmul.f32 1.442695, %v2873_v31  ;;  %v2874_v31 = vsub.f32 %v7146_v59, %v2690_v26 }
 0x50e   : > { %2812 = vmax.xlane.f32.xlu1 %v2811_v46  ;;  %3127 = vrot.lane.b32.xlu0 %v7517_v9, %s6177_s27  ;;  %5866 = vpow2.f32 %v2939_v15  ;;  %v2468_v46 = vadd.f32 %v7463_v7, %v7531_v43  ;;  %v7550_v15 = vpop.xlane.xlu1 %2710  ;;  %v2941_v43 = vmul.f32 1.442695, %v2874_v31  ;;  %v2597_v31 = vmul.f32 0.2, %v2469_v53 }
 0x510   : > { %v2596_v19 = vmul.f32 0.2, %v2468_v46  ;;  %vm2532_vm11 = vcmp.gt.f32.partialorder %v2468_v46, 0.0  ;;  %5868 = vpow2.f32 %v2941_v43 }
 0x512   : > { %2815 = vmax.xlane.f32.xlu1 %v2814_v34  ;;  %v7543_v22 = vsel %vm2532_vm11, %v2468_v46, %v2596_v19  ;;  %v2696_v34 = vpop.xlane.xlu0 %2695  ;;  %v7552_v25 = vpop.xlane.xlu1 %2716 }
 0x513   : > { %9324 = vst [vmem:[#allocation56_spill] sm:$0xff] %v7543_v22  ;;  %v2817_v7 = vsel %vm2678_vm7, %v7543_v22, -inf  ;;  %v7574_v22 = vsel %vm2533_vm12, %v2469_v53, %v2597_v31 }
 0x514   : > { %v7535_v35 = vpop.eup %5864  ;;  %v2820_v10 = vsel %vm2678_vm7, %v7574_v22, -inf }
 0x515   : > { %9322 = vst [vmem:[#allocation57_spill] sm:$0xff] %v7535_v35 }
 0x516   : > { %v2693_v17 = vpop.xlane.xlu0 %2692  ;;  %v7556_v46 = vpop.xlane.xlu1 %2722 }
 0x517   : > { %v2875_v8 = vsub.f32 %v7174_v5, %v2693_v17 }
 0x51a   : > { %v7554_v4 = vpop.xlane.xlu0 %2701  ;;  %v2327_v59 = vpop.permute.xlu1 %2326 }
 0x51b   : > { %v7539_v24 = vpop.eup %5866 }
 0x51c   : > { %9323 = vst [vmem:[#allocation54_spill] sm:$0xff] %v7539_v24 }
 0x51d   : > { %v7563_v26 = vpop.eup %5868 }
 0x51e   : > { %v7558_v19 = vpop.xlane.xlu0 %2707  ;;  %9326 = vst [vmem:[#allocation61_spill] sm:$0xff] %v7563_v26 }
 0x523   : > { %3129 = vrot.lane.b32.xlu1 %v7535_v35, %s6177_s27 }
 0x527   : > { %3131 = vrot.lane.b32.xlu1 %v7539_v24, %s6177_s27  ;;  %v7567_v24 = vpop.xlane.xlu0 %2713 }
 0x52b   : > { %v7572_v35 = vpop.xlane.xlu0 %2719 }
 0x52d   : > { %2818 = vmax.xlane.f32.xlu0 %v2817_v7  ;;  %v7565_v7 = vpop.f32.mrf.mxu1 }
 0x52e   : > { %9327 = vst [vmem:[#allocation63_spill] sm:$0xff] %v7565_v7  ;;  %v2470_v43 = vadd.f32 %v2327_v59, %v7565_v7  ;;  %v2876_v59 = vsub.f32 %v7166_v41, %v2696_v34  ;;  %v2943_v7 = vmul.f32 1.442695, %v2875_v8  ;;  %v2877_v34 = vsub.f32 %v7178_v38, %v2699_v33 }
 0x52f   : > { %v7581_v11 = vpop.xlane.xlu0 %2725 }
 0x530   : > { %v2598_v9 = vmul.f32 0.2, %v2470_v43  ;;  %vm2534_vm13 = vcmp.gt.f32.partialorder %v2470_v43, 0.0  ;;  %v2945_v53 = vmul.f32 1.442695, %v2876_v59  ;;  %5870 = vpow2.f32 %v2943_v7  ;;  %v7604_v59 = vpop.f32.mrf.mxu1 }
 0x531   : > { %v2947_v7 = vmul.f32 1.442695, %v2877_v34  ;;  %9332 = vst [vmem:[#allocation69_spill] sm:$0xff] %v7604_v59 }
 0x532   : > { %v7579_v0 = vsel %vm2534_vm13, %v2470_v43, %v2598_v9  ;;  %5872 = vpow2.f32 %v2945_v53  ;;  %v7600_v43 = vpop.xlane.xlu1 %2728  ;;  %v7610_v33 = vpop.f32.mrf.mxu1 }
 0x533   : > { %v2329_v31 = vpop.permute.xlu0 %2328  ;;  %5874 = vpow2.f32 %v2947_v7  ;;  %9333 = vst [vmem:[#allocation70_spill] sm:$0xff] %v7610_v33 }
 0x534   : > { %v2471_v5 = vadd.f32 %v7560_v50, %v2329_v31 }
 0x536   : > { %v2599_v17 = vmul.f32 0.2, %v2471_v5  ;;  %vm2535_vm14 = vcmp.gt.f32.partialorder %v2471_v5, 0.0  ;;  %v2331_v38 = vpop.permute.xlu1 %2330 }
 0x537   : > { %v7606_v53 = vpop.xlane.xlu0 %2731  ;;  %v2472_v31 = vadd.f32 %v2331_v38, %v7610_v33 }
 0x539   : > { %vm2536_vm15 = vcmp.gt.f32.partialorder %v2472_v31, 0.0 }
 0x53a   : > { %v7614_v34 = vpop.xlane.xlu1 %2734 }
 0x53d   : > { %v7589_v9 = vpop.eup %5870 }
 0x53e   : > { %9329 = vst [vmem:[#allocation66_spill] sm:$0xff] %v7589_v9  ;;  %v2335_v38 = vpop.permute.xlu1 %2334 }
 0x543   : > { %3133 = vrot.lane.b32.xlu0 %v7563_v26, %s6177_s27  ;;  %v2823_v26 = vsel %vm2678_vm7, %v7579_v0, -inf }
 0x54b   : > { %2821 = vmax.xlane.f32.xlu1 %v2820_v10  ;;  %v7587_v10 = vsel %vm2535_vm14, %v2471_v5, %v2599_v17  ;;  %v2333_v5 = vpop.permute.xlu0 %2332 }
 0x54c   : > { %9328 = vst [vmem:[#allocation65_spill] sm:$0xff] %v7587_v10  ;;  %v2826_v41 = vsel %vm2678_vm7, %v7587_v10, -inf  ;;  %v2473_v17 = vadd.f32 %v7604_v59, %v2333_v5 }
 0x54e   : > { %v2601_v7 = vmul.f32 0.2, %v2473_v17  ;;  %vm2537_vm0 = vcmp.gt.f32.partialorder %v2473_v17, 0.0 }
 0x54f   : > { %2824 = vmax.xlane.f32.xlu1 %v2823_v26  ;;  %v7596_v26 = vpop.eup %5872 }
 0x550   : > { %9330 = vst [vmem:[#allocation67_spill] sm:$0xff] %v7596_v26  ;;  %v7602_v8 = vpop.eup %5874  ;;  %v7624_v33 = vsel %vm2537_vm0, %v2473_v17, %v2601_v7  ;;  %v7651_v7 = vpop.xlane.xlu0 %2737 }
 0x551   : > { %9331 = vst [vmem:[#allocation68_spill] sm:$0xff] %v7602_v8  ;;  %v2832_v10 = vsel %vm2678_vm7, %v7624_v33, -inf }
 0x560   : > { %3135 = vrot.lane.b32.xlu1 %v7589_v9, %s6177_s27 }
 0x562   : > { %2827 = vmax.xlane.f32.xlu0 %v2826_v41  ;;  %v2600_v41 = vmul.f32 0.2, %v2472_v31 }
 0x564   : > { %3137 = vrot.lane.b32.xlu1 %v7596_v26, %s6177_s27  ;;  %v7616_v50 = vsel %vm2536_vm15, %v2472_v31, %v2600_v41  ;;  %v7618_v26 = vpop.f32.mrf.mxu1  ;;  %v2879_v31 = vsub.f32 %v7206_v56, %v7545_v39 }
 0x565   : > { %9334 = vst [vmem:[#allocation71_spill] sm:$0xff] %v7618_v26  ;;  %v2829_v9 = vsel %vm2678_vm7, %v7616_v50, -inf }
 0x566   : > { %v7626_v5 = vpop.f32.mrf.mxu1 }
 0x567   : > { %9335 = vst [vmem:[#allocation72_spill] sm:$0xff] %v7626_v5  ;;  %v2474_v41 = vadd.f32 %v2335_v38, %v7626_v5 }
 0x569   : > { %vm2538_vm1 = vcmp.gt.f32.partialorder %v2474_v41, 0.0 }
 0x578   : > { %3139 = vrot.lane.b32.xlu0 %v7602_v8, %s6177_s27  ;;  %v2878_v8 = vsub.f32 %v7180_v27, %v7554_v4  ;;  %v2951_v27 = vmul.f32 1.442695, %v2879_v31  ;;  %v2602_v4 = vmul.f32 0.2, %v2474_v41  ;;  %v7656_v31 = vpop.f32.mrf.mxu1 }
 0x579   : > { %9338 = vst [vmem:[#allocation75_spill] sm:$0xff] %v7656_v31 }
 0x57a   : > { %v2949_v59 = vmul.f32 1.442695, %v2878_v8  ;;  %v2880_v8 = vsub.f32 %v7198_v3, %v7558_v19  ;;  %v2337_v3 = vpop.permute.xlu0 %2336  ;;  %v7653_v19 = vpop.xlane.xlu1 %2740 }
 0x57b   : > { %v2475_v38 = vadd.f32 %v7618_v26, %v2337_v3 }
 0x57c   : > { %5876 = vpow2.f32 %v2949_v59  ;;  %v2953_v56 = vmul.f32 1.442695, %v2880_v8 }
 0x57d   : > { %5878 = vpow2.f32 %v2951_v27  ;;  %vm2539_vm2 = vcmp.gt.f32.partialorder %v2475_v38, 0.0 }
 0x57e   : > { %5880 = vpow2.f32 %v2953_v56  ;;  %v2339_v27 = vpop.permute.xlu1 %2338 }
 0x588   : > { %2830 = vmax.xlane.f32.xlu1 %v2829_v9  ;;  %v7633_v9 = vsel %vm2538_vm1, %v2474_v41, %v2602_v4  ;;  %v2603_v41 = vmul.f32 0.2, %v2475_v38  ;;  %v7658_v4 = vpop.f32.mrf.mxu1 }
 0x589   : > { %v2835_v17 = vsel %vm2678_vm7, %v7633_v9, -inf  ;;  %v7639_v39 = vpop.eup %5876  ;;  %9339 = vst [vmem:[#allocation76_spill] sm:$0xff] %v7658_v4  ;;  %v2476_v8 = vadd.f32 %v2339_v27, %v7658_v4 }
 0x58a   : > { %v7663_v56 = vsel %vm2539_vm2, %v2475_v38, %v2603_v41 }
 0x58b   : > { %vm2540_vm3 = vcmp.gt.f32.partialorder %v2476_v8, 0.0 }
 0x58c   : > { %2833 = vmax.xlane.f32.xlu1 %v2832_v10  ;;  %v7643_v10 = vpop.eup %5878 }
 0x58d   : > { %9336 = vst [vmem:[#allocation73_spill] sm:$0xff] %v7643_v10  ;;  %v7647_v59 = vpop.eup %5880 }
 0x58e   : > { %9337 = vst [vmem:[#allocation74_spill] sm:$0xff] %v7647_v59 }
 0x597   : > { %2836 = vmax.xlane.f32.xlu0 %v2835_v17  ;;  %v2881_v17 = vsub.f32 %v7214_v32, %v7550_v15  ;;  %v2882_v32 = vsub.f32 %v7210_v60, %v7567_v24  ;;  %v7686_v24 = vpop.f32.mrf.mxu1 }
 0x598   : > { %9342 = vst [vmem:[#allocation79_spill] sm:$0xff] %v7686_v24 }
 0x599   : > { %v2955_v5 = vmul.f32 1.442695, %v2881_v17  ;;  %v2957_v15 = vmul.f32 1.442695, %v2882_v32  ;;  %v7688_v17 = vpop.f32.mrf.mxu1 }
 0x59a   : > { %9343 = vst [vmem:[#allocation80_spill] sm:$0xff] %v7688_v17 }
 0x59b   : > { %5882 = vpow2.f32 %v2955_v5  ;;  %v7681_v5 = vpop.xlane.xlu0 %2743 }
 0x59c   : > { %5884 = vpow2.f32 %v2957_v15 }
 0x59d   : > { %3141 = vrot.lane.b32.xlu1 %v7639_v39, %s6177_s27 }
 0x5a1   : > { %3143 = vrot.lane.b32.xlu1 %v7643_v10, %s6177_s27  ;;  %v2838_v10 = vsel %vm2678_vm7, %v7663_v56, -inf }
 0x5a8   : > { %v7673_v38 = vpop.eup %5882 }
 0x5a9   : > { %9340 = vst [vmem:[#allocation77_spill] sm:$0xff] %v7673_v38  ;;  %v7677_v41 = vpop.eup %5884 }
 0x5aa   : > { %9341 = vst [vmem:[#allocation78_spill] sm:$0xff] %v7677_v41 }
 0x5ad   : > { %3145 = vrot.lane.b32.xlu0 %v7647_v59, %s6177_s27  ;;  %v2604_v59 = vmul.f32 0.2, %v2476_v8 }
 0x5af   : > { %v7667_v3 = vsel %vm2540_vm3, %v2476_v8, %v2604_v59  ;;  %v7683_v59 = vpop.xlane.xlu1 %2746  ;;  %v2883_v8 = vsub.f32 %v7238_v61, %v7552_v25  ;;  %v2884_v25 = vsub.f32 %v7230_v21, %v7572_v35  ;;  %v7716_v35 = vpop.f32.mrf.mxu1 }
 0x5b0   : > { %v2841_v26 = vsel %vm2678_vm7, %v7667_v3, -inf  ;;  %9346 = vst [vmem:[#allocation83_spill] sm:$0xff] %v7716_v35 }
 0x5b1   : > { %v2959_v4 = vmul.f32 1.442695, %v2883_v8  ;;  %v2961_v61 = vmul.f32 1.442695, %v2884_v25  ;;  %v7718_v8 = vpop.f32.mrf.mxu1 }
 0x5b2   : > { %9347 = vst [vmem:[#allocation84_spill] sm:$0xff] %v7718_v8 }
 0x5b3   : > { %v2343_v27 = vpop.permute.xlu1 %2342  ;;  %5886 = vpow2.f32 %v2959_v4 }
 0x5b4   : > { %v2478_v32 = vadd.f32 %v2343_v27, %v7688_v17  ;;  %5888 = vpow2.f32 %v2961_v61 }
 0x5b6   : > { %vm2542_vm6 = vcmp.gt.f32.partialorder %v2478_v32, 0.0 }
 0x5c5   : > { %2839 = vmax.xlane.f32.xlu1 %v2838_v10  ;;  %v2341_v10 = vpop.permute.xlu0 %2340 }
 0x5c6   : > { %v2477_v60 = vadd.f32 %v7656_v31, %v2341_v10 }
 0x5c8   : > { %vm2541_vm4 = vcmp.gt.f32.partialorder %v2477_v60, 0.0 }
 0x5c9   : > { %v7711_v4 = vpop.xlane.xlu0 %2749 }
 0x5cc   : > { %2842 = vmax.xlane.f32.xlu0 %v2841_v26  ;;  %v2605_v26 = vmul.f32 0.2, %v2477_v60 }
 0x5ce   : > { %v7693_v15 = vsel %vm2541_vm4, %v2477_v60, %v2605_v26  ;;  %v7703_v60 = vpop.eup %5886 }
 0x5cf   : > { %9344 = vst [vmem:[#allocation81_spill] sm:$0xff] %v7703_v60  ;;  %v7707_v26 = vpop.eup %5888 }
 0x5d0   : > { %9345 = vst [vmem:[#allocation82_spill] sm:$0xff] %v7707_v26 }
 0x5d6   : > { %3147 = vrot.lane.b32.xlu1 %v7673_v38, %s6177_s27  ;;  %v2844_v38 = vsel %vm2678_vm7, %v7693_v15, -inf }
 0x5e2   : > { %3149 = vrot.lane.b32.xlu0 %v7677_v41, %s6177_s27  ;;  %v2606_v41 = vmul.f32 0.2, %v2478_v32 }
 0x5e4   : > { %v7697_v10 = vsel %vm2542_vm6, %v2478_v32, %v2606_v41  ;;  %v7713_v41 = vpop.xlane.xlu1 %2752  ;;  %v2885_v32 = vsub.f32 %v7246_v62, %v7556_v46  ;;  %v2886_v62 = vsub.f32 %v7242_v57, %v7581_v11  ;;  %v7746_v11 = vpop.f32.mrf.mxu1 }
 0x5e5   : > { %v2847_v31 = vsel %vm2678_vm7, %v7697_v10, -inf  ;;  %9350 = vst [vmem:[#allocation87_spill] sm:$0xff] %v7746_v11 }
 0x5e6   : > { %v2963_v17 = vmul.f32 1.442695, %v2885_v32  ;;  %v2965_v46 = vmul.f32 1.442695, %v2886_v62  ;;  %v7748_v32 = vpop.f32.mrf.mxu1 }
 0x5e7   : > { %9351 = vst [vmem:[#allocation88_spill] sm:$0xff] %v7748_v32 }
 0x5e8   : > { %v2347_v27 = vpop.permute.xlu1 %2346  ;;  %5890 = vpow2.f32 %v2963_v17 }
 0x5e9   : > { %v2480_v25 = vadd.f32 %v2347_v27, %v7718_v8  ;;  %5892 = vpow2.f32 %v2965_v46 }
 0x5eb   : > { %vm2544_vm9 = vcmp.gt.f32.partialorder %v2480_v25, 0.0 }
 0x5fa   : > { %2845 = vmax.xlane.f32.xlu1 %v2844_v38  ;;  %v2345_v38 = vpop.permute.xlu0 %2344 }
 0x5fb   : > { %v2479_v21 = vadd.f32 %v7686_v24, %v2345_v38 }
 0x5fd   : > { %vm2543_vm8 = vcmp.gt.f32.partialorder %v2479_v21, 0.0 }
 0x5fe   : > { %v7741_v17 = vpop.xlane.xlu0 %2755 }
 0x601   : > { %2848 = vmax.xlane.f32.xlu0 %v2847_v31  ;;  %v2607_v31 = vmul.f32 0.2, %v2479_v21 }
 0x603   : > { %v7723_v61 = vsel %vm2543_vm8, %v2479_v21, %v2607_v31  ;;  %v7733_v21 = vpop.eup %5890 }
 0x604   : > { %9348 = vst [vmem:[#allocation85_spill] sm:$0xff] %v7733_v21  ;;  %v7737_v31 = vpop.eup %5892 }
 0x605   : > { %9349 = vst [vmem:[#allocation86_spill] sm:$0xff] %v7737_v31 }
 0x60b   : > { %3151 = vrot.lane.b32.xlu1 %v7703_v60, %s6177_s27  ;;  %v2850_v60 = vsel %vm2678_vm7, %v7723_v61, -inf }
 0x617   : > { %3153 = vrot.lane.b32.xlu0 %v7707_v26, %s6177_s27  ;;  %v2608_v26 = vmul.f32 0.2, %v2480_v25 }
 0x619   : > { %v7727_v38 = vsel %vm2544_vm9, %v2480_v25, %v2608_v26  ;;  %v7743_v26 = vpop.xlane.xlu1 %2758  ;;  %v2887_v25 = vsub.f32 %v7264_v40, %v7600_v43  ;;  %v2888_v40 = vsub.f32 %v7262_v45, %v7606_v53  ;;  %v7774_v45 = vpop.f32.mrf.mxu1 }
 0x61a   : > { %v2853_v24 = vsel %vm2678_vm7, %v7727_v38, -inf  ;;  %9354 = vst [vmem:[#allocation91_spill] sm:$0xff] %v7774_v45 }
 0x61b   : > { %v2967_v8 = vmul.f32 1.442695, %v2887_v25  ;;  %v2969_v43 = vmul.f32 1.442695, %v2888_v40  ;;  %v7776_v25 = vpop.f32.mrf.mxu1 }
 0x61c   : > { %9355 = vst [vmem:[#allocation92_spill] sm:$0xff] %v7776_v25 }
 0x61d   : > { %v2351_v27 = vpop.permute.xlu1 %2350  ;;  %5894 = vpow2.f32 %v2967_v8 }
 0x61e   : > { %v2482_v62 = vadd.f32 %v2351_v27, %v7748_v32  ;;  %5896 = vpow2.f32 %v2969_v43 }
 0x620   : > { %vm2546_vm11 = vcmp.gt.f32.partialorder %v2482_v62, 0.0 }
 0x62f   : > { %2851 = vmax.xlane.f32.xlu1 %v2850_v60  ;;  %v2349_v60 = vpop.permute.xlu0 %2348 }
 0x630   : > { %v2481_v57 = vadd.f32 %v7716_v35, %v2349_v60 }
 0x632   : > { %vm2545_vm10 = vcmp.gt.f32.partialorder %v2481_v57, 0.0 }
 0x633   : > { %v7771_v8 = vpop.xlane.xlu0 %2761 }
 0x636   : > { %2854 = vmax.xlane.f32.xlu0 %v2853_v24  ;;  %v2609_v24 = vmul.f32 0.2, %v2481_v57 }
 0x638   : > { %v7753_v46 = vsel %vm2545_vm10, %v2481_v57, %v2609_v24  ;;  %v7763_v57 = vpop.eup %5894 }
 0x639   : > { %9352 = vst [vmem:[#allocation89_spill] sm:$0xff] %v7763_v57  ;;  %v7767_v24 = vpop.eup %5896 }
 0x63a   : > { %9353 = vst [vmem:[#allocation90_spill] sm:$0xff] %v7767_v24 }
 0x640   : > { %3155 = vrot.lane.b32.xlu1 %v7733_v21, %s6177_s27  ;;  %v2856_v21 = vsel %vm2678_vm7, %v7753_v46, -inf }
 0x64c   : > { %3157 = vrot.lane.b32.xlu0 %v7737_v31, %s6177_s27  ;;  %v2610_v31 = vmul.f32 0.2, %v2482_v62 }
 0x64e   : > { %v7757_v60 = vsel %vm2546_vm11, %v2482_v62, %v2610_v31  ;;  %v2765_v31 = vpop.xlane.xlu1 %2764  ;;  %v2889_v62 = vsub.f32 %v7284_v51, %v7614_v34  ;;  %v2890_v51 = vsub.f32 %v7282_v54, %v7651_v7 }
 0x64f   : > { %v2859_v35 = vsel %vm2678_vm7, %v7757_v60, -inf }
 0x650   : > { %v2971_v32 = vmul.f32 1.442695, %v2889_v62  ;;  %v2973_v34 = vmul.f32 1.442695, %v2890_v51 }
 0x652   : > { %5898 = vpow2.f32 %v2971_v32  ;;  %v2894_v32 = vsub.f32 %v7322_v28, %v7711_v4  ;;  %v2897_v28 = vsub.f32 %v7364_v18, %v7743_v26 }
 0x653   : > { %5900 = vpow2.f32 %v2973_v34  ;;  %v2892_v34 = vsub.f32 %v7302_v42, %v7681_v5 }
 0x654   : > { %v2981_v7 = vmul.f32 1.442695, %v2894_v32  ;;  %v2898_v32 = vsub.f32 %v7362_v30, %v7771_v8 }
 0x664   : > { %2857 = vmax.xlane.f32.xlu1 %v2856_v21  ;;  %v2353_v21 = vpop.permute.xlu0 %2352 }
 0x665   : > { %v2483_v27 = vadd.f32 %v7746_v11, %v2353_v21 }
 0x667   : > { %v2611_v53 = vmul.f32 0.2, %v2483_v27  ;;  %vm2547_vm12 = vcmp.gt.f32.partialorder %v2483_v27, 0.0 }
 0x669   : > { %v7781_v43 = vsel %vm2547_vm12, %v2483_v27, %v2611_v53  ;;  %v2891_v27 = vsub.f32 %v7304_v13, %v7653_v19  ;;  %v2895_v13 = vsub.f32 %v7344_v20, %v7713_v41  ;;  %v2896_v19 = vsub.f32 %v7342_v14, %v7741_v17 }
 0x66a   : > { %v2987_v20 = vmul.f32 1.442695, %v2897_v28  ;;  %v2899_v14 = vsub.f32 %v7384_v6, %v2765_v31 }
 0x66b   : > { %2860 = vmax.xlane.f32.xlu0 %v2859_v35  ;;  %v2355_v35 = vpop.permute.xlu1 %2354  ;;  %v2975_v53 = vmul.f32 1.442695, %v2891_v27 }
 0x66c   : > { %v2484_v40 = vadd.f32 %v2355_v35, %v7776_v25  ;;  %v7795_v35 = vpop.eup %5898  ;;  %v2991_v62 = vmul.f32 1.442695, %v2899_v14 }
 0x66d   : > { %5902 = vpow2.f32 %v2975_v53 }
 0x66e   : > { %vm2548_vm13 = vcmp.gt.f32.partialorder %v2484_v40, 0.0 }
 0x66f   : > { %v2771_v6 = vpop.xlane.xlu1 %2770 }
 0x670   : > { %v2901_v8 = vsub.f32 %v7432_v1, %v2771_v6 }
 0x672   : > { %v2995_v28 = vmul.f32 1.442695, %v2901_v8 }
 0x675   : > { %3159 = vrot.lane.b32.xlu1 %v7763_v57, %s6177_s27  ;;  %v2862_v57 = vsel %vm2678_vm7, %v7781_v43, -inf }
 0x681   : > { %3161 = vrot.lane.b32.xlu0 %v7767_v24, %s6177_s27  ;;  %v2612_v24 = vmul.f32 0.2, %v2484_v40 }
 0x683   : > { %v7785_v21 = vsel %vm2548_vm13, %v2484_v40, %v2612_v24  ;;  %v2768_v24 = vpop.xlane.xlu0 %2767 }
 0x684   : > { %v2865_v11 = vsel %vm2678_vm7, %v7785_v21, -inf }
 0x687   : > { %v2357_v17 = vpop.permute.xlu0 %2356 }
 0x688   : > { %v2485_v18 = vadd.f32 %v7774_v45, %v2357_v17 }
 0x68a   : > { %v2613_v51 = vmul.f32 0.2, %v2485_v18  ;;  %vm2549_vm14 = vcmp.gt.f32.partialorder %v2485_v18, 0.0 }
 0x68b   : > { %v2774_v42 = vpop.xlane.xlu0 %2773 }
 0x68c   : > { %v7835_v27 = vsel %vm2549_vm14, %v2485_v18, %v2613_v51 }
 0x699   : > { %2863 = vmax.xlane.f32.xlu1 %v2862_v57  ;;  %v2893_v57 = vsub.f32 %v7324_v47, %v7683_v59  ;;  %v2983_v47 = vmul.f32 1.442695, %v2895_v13  ;;  %v7805_v59 = vpop.eup %5900  ;;  %v2989_v13 = vmul.f32 1.442695, %v2898_v32 }
 0x69a   : > { %v7811_v4 = vpop.eup %5902 }
 0x69b   : > { %v2979_v54 = vmul.f32 1.442695, %v2893_v57  ;;  %v2977_v57 = vmul.f32 1.442695, %v2892_v34 }
 0x69d   : > { %5904 = vpow2.f32 %v2979_v54  ;;  %v2777_v54 = vpop.xlane.xlu1 %2776 }
 0x69e   : > { %5906 = vpow2.f32 %v2981_v7  ;;  %v2868_v7 = vsel %vm2678_vm7, %v7835_v27, -inf  ;;  %vm3319_vm7 = vcmask 64512  }
 0x69f   : > { %5908 = vpow2.f32 %v2983_v47 }
 0x6a0   : > { %2866 = vmax.xlane.f32.xlu0 %v2865_v11  ;;  %v2985_v11 = vmul.f32 1.442695, %v2896_v19  ;;  %v2900_v19 = vsub.f32 %v7382_v49, %v2768_v24 }
 0x6a1   : > { %v2780_v47 = vpop.xlane.xlu1 %2779 }
 0x6a2   : > { %5910 = vpow2.f32 %v2985_v11  ;;  %v2993_v30 = vmul.f32 1.442695, %v2900_v19  ;;  %v7851_v11 = vpop.xlane.xlu0 %2791 }
 0x6a3   : > { %5912 = vpow2.f32 %v2987_v20 }
 0x6a4   : > { %5914 = vpow2.f32 %v2991_v62 }
 0x6a5   : > { %5916 = vpow2.f32 %v2977_v57  ;;  %v2783_v20 = vpop.xlane.xlu1 %2782 }
 0x6a6   : > { %5918 = vpow2.f32 %v2989_v13  ;;  %v7853_v14 = vpop.xlane.xlu0 %2797 }
 0x6a7   : > { %5920 = vpow2.f32 %v2993_v30 }
 0x6a8   : > { %5922 = vpow2.f32 %v2995_v28 }
 0x6a9   : > { %v2786_v62 = vpop.xlane.xlu1 %2785 }
 0x6aa   : > { %3163 = vrot.lane.b32.xlu1 %v7795_v35, %s6177_s27  ;;  %v7816_v41 = vpop.eup %5904  ;;  %v7859_v49 = vpop.xlane.xlu0 %2803 }
 0x6ab   : > { %9356 = vst [vmem:[#allocation93_spill] sm:$0xff] %v7816_v41  ;;  %v7820_v40 = vpop.eup %5906 }
 0x6ac   : > { %9357 = vst [vmem:[#allocation94_spill] sm:$0xff] %v7820_v40  ;;  %v7825_v26 = vpop.eup %5908 }
 0x6ad   : > { %v2789_v1 = vpop.xlane.xlu1 %2788 }
 0x6ae   : > { %v7867_v51 = vpop.xlane.xlu0 %2809 }
 0x6af   : > { %v7829_v31 = vpop.eup %5910 }
 0x6b0   : > { %9358 = vst [vmem:[#allocation95_spill] sm:$0xff] %v7829_v31  ;;  %v7837_v53 = vpop.eup %5912 }
 0x6b1   : > { %v7845_v5 = vpop.eup %5914  ;;  %v7873_v34 = vpop.xlane.xlu1 %2794 }
 0x6b2   : > { %v7855_v17 = vpop.eup %5916  ;;  %v3128_v57 = vpop.permute.xlu0 %3127 }
 0x6b3   : > { %v7861_v24 = vpop.eup %5918  ;;  %v3320_v32 = vsel %vm3319_vm7, %v3128_v57, 0.0  ;;  %v2903_v57 = vsub.f32 %v7446_v29, %v2777_v54 }
 0x6b4   : > { %9359 = vst [vmem:[#allocation96_spill] sm:$0xff] %v7861_v24  ;;  %v7865_v18 = vpop.eup %5920 }
 0x6b5   : > { %9360 = vst [vmem:[#allocation97_spill] sm:$0xff] %v7865_v18  ;;  %v7871_v6 = vpop.eup %5922  ;;  %v7879_v13 = vpop.xlane.xlu1 %2800 }
 0x6b6   : > { %3165 = vrot.lane.b32.xlu0 %v7805_v59, %s6177_s27 }
 0x6b9   : > { %v7881_v30 = vpop.xlane.xlu1 %2806 }
 0x6ba   : > { %3167 = vrot.lane.b32.xlu0 %v7811_v4, %s6177_s27 }
 0x6bd   : > { %v7883_v8 = vpop.xlane.xlu1 %2812 }
 0x6be   : > { %3171 = vrot.lane.b32.xlu0 %v7816_v41, %s6177_s27 }
 0x6c1   : > { %v7885_v28 = vpop.xlane.xlu1 %2815 }
 0x6c2   : > { %3173 = vrot.lane.b32.xlu0 %v7820_v40, %s6177_s27 }
 0x6c5   : > { %v3130_v45 = vpop.permute.xlu1 %3129 }
 0x6c6   : > { %3175 = vrot.lane.b32.xlu0 %v7825_v26, %s6177_s27 }
 0x6ca   : > { %3177 = vrot.lane.b32.xlu0 %v7829_v31, %s6177_s27 }
 0x6ce   : > { %3179 = vrot.lane.b32.xlu0 %v7837_v53, %s6177_s27  ;;  %2869 = vmax.xlane.f32.xlu1 %v2868_v7  ;;  %v2902_v7 = vsub.f32 %v7426_v44, %v2774_v42  ;;  %v3323_v44 = vsel %vm3319_vm7, %v3130_v45, 0.0  ;;  %v3132_v42 = vpop.permute.xlu1 %3131  ;;  %v2905_v45 = vsub.f32 %v7469_v37, %v2783_v20  ;;  %v2906_v37 = vsub.f32 %v7479_v16, %v2786_v62 }
 0x6cf   : > { %v2908_v16 = vsub.f32 %v7438_v52, %v7851_v11  ;;  %v2909_v11 = vsub.f32 %v7498_v36, %v7873_v34 }
 0x6d0   : > { %v2997_v19 = vmul.f32 1.442695, %v2902_v7  ;;  %v2904_v7 = vsub.f32 %v7457_v2, %v2780_v47  ;;  %v3003_v54 = vmul.f32 1.442695, %v2905_v45 }
 0x6d1   : > { %v3009_v62 = vmul.f32 1.442695, %v2908_v16  ;;  %v2911_v16 = vsub.f32 %v7506_v12, %v7879_v13 }
 0x6d2   : > { %3183 = vrot.lane.b32.xlu0 %v7845_v5, %s6177_s27  ;;  %5924 = vpow2.f32 %v2997_v19  ;;  %v3326_v19 = vsel %vm3319_vm7, %v3132_v42, 0.0  ;;  %v7907_v47 = vpop.xlane.xlu1 %2821  ;;  %v3005_v42 = vmul.f32 1.442695, %v2906_v37 }
 0x6df   : > { %3169 = vrot.lane.b32.xlu1 %v7855_v17, %s6177_s27  ;;  %v7887_v25 = vpop.eup %5924 }
 0x6e0   : > { %9361 = vst [vmem:[#allocation98_spill] sm:$0xff] %v7887_v25 }
 0x6e3   : > { %3181 = vrot.lane.b32.xlu1 %v7861_v24, %s6177_s27  ;;  %v7895_v24 = vpop.xlane.xlu0 %2818 }
 0x6e7   : > { %3185 = vrot.lane.b32.xlu1 %v7865_v18, %s6177_s27  ;;  %v3001_v18 = vmul.f32 1.442695, %v2904_v7  ;;  %v3134_v31 = vpop.permute.xlu0 %3133 }
 0x6e8   : > { %v3329_v29 = vsel %vm3319_vm7, %v3134_v31, 0.0 }
 0x6eb   : > { %3187 = vrot.lane.b32.xlu1 %v7871_v6, %s6177_s27 }
 0x6f1   : > { %3321 = vadd.xlane.f32.xlu0 %v3320_v32  ;;  %v2999_v32 = vmul.f32 1.442695, %v2903_v57  ;;  %v7913_v57 = vpop.xlane.xlu1 %2824 }
 0x6f3   : > { %5926 = vpow2.f32 %v2999_v32  ;;  %v2907_v32 = vsub.f32 %v7490_v23, %v2789_v1 }
 0x6f4   : > { %5928 = vpow2.f32 %v3001_v18 }
 0x6f5   : > { %5930 = vpow2.f32 %v3003_v54  ;;  %v3136_v31 = vpop.permute.xlu1 %3135 }
 0x6f6   : > { %v3332_v20 = vsel %vm3319_vm7, %v3136_v31, 0.0  ;;  %5932 = vpow2.f32 %v3005_v42 }
 0x707   : > { %3189 = vrot.lane.b32.xlu0 %v7887_v25, %s6177_s27  ;;  %v7897_v25 = vpop.eup %5926 }
 0x708   : > { %9362 = vst [vmem:[#allocation99_spill] sm:$0xff] %v7897_v25  ;;  %v7903_v2 = vpop.eup %5928 }
 0x709   : > { %9363 = vst [vmem:[#allocation100_spill] sm:$0xff] %v7903_v2  ;;  %v7909_v18 = vpop.eup %5930 }
 0x70a   : > { %9364 = vst [vmem:[#allocation101_spill] sm:$0xff] %v7909_v18  ;;  %v7924_v31 = vpop.eup %5932 }
 0x70b   : > { %9365 = vst [vmem:[#allocation102_spill] sm:$0xff] %v7924_v31 }
 0x70f   : > { %3324 = vadd.xlane.f32.xlu1 %v3323_v44  ;;  %v3138_v44 = vpop.permute.xlu1 %3137 }
 0x710   : > { %v3335_v7 = vsel %vm3319_vm7, %v3138_v44, 0.0  ;;  %v3011_v44 = vmul.f32 1.442695, %v2909_v11 }
 0x713   : > { %3327 = vadd.xlane.f32.xlu1 %v3326_v19  ;;  %v7919_v19 = vpop.xlane.xlu0 %2827  ;;  %v7936_v37 = vpop.xlane.xlu1 %2830 }
 0x717   : > { %v3140_v45 = vpop.permute.xlu0 %3139  ;;  %v7938_v52 = vpop.xlane.xlu1 %2833 }
 0x718   : > { %v3338_v54 = vsel %vm3319_vm7, %v3140_v45, 0.0 }
 0x71b   : > { %v7954_v34 = vpop.xlane.xlu0 %2836 }
 0x724   : > { %3191 = vrot.lane.b32.xlu1 %v7897_v25, %s6177_s27 }
 0x726   : > { %3330 = vadd.xlane.f32.xlu0 %v3329_v29  ;;  %v3007_v29 = vmul.f32 1.442695, %v2907_v32 }
 0x728   : > { %3193 = vrot.lane.b32.xlu1 %v7903_v2, %s6177_s27  ;;  %5934 = vpow2.f32 %v3007_v29  ;;  %v2910_v29 = vsub.f32 %v7451_v58, %v7853_v14  ;;  %v3015_v14 = vmul.f32 1.442695, %v2911_v16 }
 0x729   : > { %5936 = vpow2.f32 %v3009_v62  ;;  %v3146_v62 = vpop.permute.xlu0 %3145 }
 0x72a   : > { %5938 = vpow2.f32 %v3011_v44  ;;  %v3013_v45 = vmul.f32 1.442695, %v2910_v29  ;;  %v3347_v11 = vsel %vm3319_vm7, %v3146_v62, 0.0  ;;  %v2913_v29 = vsub.f32 %v7511_v48, %v7881_v30 }
 0x72c   : > { %5940 = vpow2.f32 %v3013_v45 }
 0x72d   : > { %5942 = vpow2.f32 %v3015_v14  ;;  %v7972_v13 = vpop.xlane.xlu0 %2842 }
 0x731   : > { %v3150_v45 = vpop.permute.xlu0 %3149 }
 0x732   : > { %v3353_v16 = vsel %vm3319_vm7, %v3150_v45, 0.0 }
 0x735   : > { %v7928_v23 = vpop.eup %5934  ;;  %v7990_v30 = vpop.xlane.xlu0 %2848 }
 0x736   : > { %9366 = vst [vmem:[#allocation103_spill] sm:$0xff] %v7928_v23  ;;  %v7932_v1 = vpop.eup %5936 }
 0x737   : > { %9367 = vst [vmem:[#allocation104_spill] sm:$0xff] %v7932_v1 }
 0x73c   : > { %3195 = vrot.lane.b32.xlu0 %v7909_v18, %s6177_s27 }
 0x74c   : > { %3333 = vadd.xlane.f32.xlu1 %v3332_v20  ;;  %v3142_v20 = vpop.permute.xlu1 %3141 }
 0x74d   : > { %v3341_v42 = vsel %vm3319_vm7, %v3142_v20, 0.0 }
 0x750   : > { %3336 = vadd.xlane.f32.xlu1 %v3335_v7  ;;  %v3144_v32 = vpop.permute.xlu1 %3143 }
 0x751   : > { %v3344_v7 = vsel %vm3319_vm7, %v3144_v32, 0.0 }
 0x754   : > { %v7958_v58 = vpop.xlane.xlu1 %2839 }
 0x758   : > { %v3148_v20 = vpop.permute.xlu1 %3147 }
 0x759   : > { %v3350_v44 = vsel %vm3319_vm7, %v3148_v20, 0.0 }
 0x75b   : > { %3339 = vadd.xlane.f32.xlu0 %v3338_v54  ;;  %v7946_v54 = vpop.eup %5938 }
 0x75c   : > { %9368 = vst [vmem:[#allocation105_spill] sm:$0xff] %v7946_v54  ;;  %v7950_v36 = vpop.eup %5940 }
 0x75d   : > { %9369 = vst [vmem:[#allocation106_spill] sm:$0xff] %v7950_v36 }
 0x761   : > { %3197 = vrot.lane.b32.xlu1 %v7924_v31, %s6177_s27 }
 0x765   : > { %3199 = vrot.lane.b32.xlu1 %v7928_v23, %s6177_s27 }
 0x771   : > { %3201 = vrot.lane.b32.xlu0 %v7932_v1, %s6177_s27 }
 0x789   : > { %3342 = vadd.xlane.f32.xlu1 %v3341_v42  ;;  %v2912_v42 = vsub.f32 %v7461_v63, %v7859_v49  ;;  %v7976_v63 = vpop.xlane.xlu1 %2845  ;;  %v3019_v49 = vmul.f32 1.442695, %v2913_v29  ;;  %v3154_v29 = vpop.permute.xlu0 %3153 }
 0x78a   : > { %v3359_v45 = vsel %vm3319_vm7, %v3154_v29, 0.0 }
 0x78b   : > { %v3017_v32 = vmul.f32 1.442695, %v2912_v42  ;;  %v9374_v42 = vld [vmem:[#allocation59_spill] sm:$0xff] }
 0x78d   : > { %5944 = vpow2.f32 %v3017_v32  ;;  %v3152_v62 = vpop.permute.xlu1 %3151  ;;  %v2915_v32 = vsub.f32 %v9374_v42, %v7883_v8  ;;  %v8008_v42 = vpop.xlane.xlu0 %2854 }
 0x78e   : > { %5946 = vpow2.f32 %v3019_v49  ;;  %v3356_v14 = vsel %vm3319_vm7, %v3152_v62, 0.0  ;;  %v9375_v62 = vld [vmem:[#allocation60_spill] sm:$0xff] }
 0x790   : > { %3345 = vadd.xlane.f32.xlu0 %v3344_v7  ;;  %v7964_v7 = vpop.eup %5942 }
 0x791   : > { %9370 = vst [vmem:[#allocation107_spill] sm:$0xff] %v7964_v7 }
 0x79a   : > { %3203 = vrot.lane.b32.xlu1 %v7946_v54, %s6177_s27  ;;  %v7968_v12 = vpop.eup %5944 }
 0x79b   : > { %9371 = vst [vmem:[#allocation108_spill] sm:$0xff] %v7968_v12 }
 0x7a6   : > { %3205 = vrot.lane.b32.xlu0 %v7950_v36, %s6177_s27 }
 0x7be   : > { %3348 = vadd.xlane.f32.xlu1 %v3347_v11  ;;  %v2914_v11 = vsub.f32 %v7473_v55, %v7867_v51  ;;  %v7994_v55 = vpop.xlane.xlu1 %2851  ;;  %v3023_v51 = vmul.f32 1.442695, %v2915_v32  ;;  %v9378_v32 = vld [vmem:[#allocation56_spill] sm:$0xff] }
 0x7bf   : > { %v2917_v29 = vsub.f32 %v9378_v32, %v7895_v24 }
 0x7c0   : > { %v3021_v20 = vmul.f32 1.442695, %v2914_v11 }
 0x7c2   : > { %5948 = vpow2.f32 %v3021_v20  ;;  %v3156_v49 = vpop.permute.xlu1 %3155 }
 0x7c3   : > { %5950 = vpow2.f32 %v3023_v51  ;;  %v3158_v51 = vpop.permute.xlu0 %3157 }
 0x7c5   : > { %3351 = vadd.xlane.f32.xlu0 %v3350_v44  ;;  %v7982_v44 = vpop.eup %5946 }
 0x7c6   : > { %9372 = vst [vmem:[#allocation109_spill] sm:$0xff] %v7982_v44 }
 0x7c7   : > { %v8026_v32 = vpop.xlane.xlu0 %2860 }
 0x7cf   : > { %3207 = vrot.lane.b32.xlu1 %v7964_v7, %s6177_s27  ;;  %v7986_v48 = vpop.eup %5948 }
 0x7d0   : > { %9373 = vst [vmem:[#allocation110_spill] sm:$0xff] %v7986_v48  ;;  %v8000_v20 = vpop.eup %5950 }
 0x7d1   : > { %9376 = vst [vmem:[#allocation59_spill] sm:$0xff] %v8000_v20 }
 0x7db   : > { %3209 = vrot.lane.b32.xlu0 %v7968_v12, %s6177_s27  ;;  %v9401_v12 = vld [vmem:[#allocation61_spill] sm:$0xff] }
 0x7f3   : > { %3354 = vadd.xlane.f32.xlu1 %v3353_v16  ;;  %v3362_v16 = vsel %vm3319_vm7, %v3156_v49, 0.0  ;;  %v3365_v49 = vsel %vm3319_vm7, %v3158_v51, 0.0  ;;  %v3162_v51 = vpop.permute.xlu0 %3161 }
 0x7fa   : > { %3357 = vadd.xlane.f32.xlu0 %v3356_v14  ;;  %v2916_v14 = vsub.f32 %v9375_v62, %v7885_v28  ;;  %v8012_v28 = vpop.xlane.xlu1 %2857 }
 0x7fc   : > { %v3025_v11 = vmul.f32 1.442695, %v2916_v14  ;;  %v2918_v14 = vsub.f32 %v7574_v22, %v7907_v47 }
 0x7fe   : > { %5952 = vpow2.f32 %v3025_v11  ;;  %v3029_v11 = vmul.f32 1.442695, %v2918_v14 }
 0x804   : > { %3211 = vrot.lane.b32.xlu1 %v7982_v44, %s6177_s27 }
 0x80b   : > { %v8004_v8 = vpop.eup %5952 }
 0x80c   : > { %9377 = vst [vmem:[#allocation60_spill] sm:$0xff] %v8004_v8 }
 0x810   : > { %3213 = vrot.lane.b32.xlu0 %v7986_v48, %s6177_s27 }
 0x828   : > { %3360 = vadd.xlane.f32.xlu1 %v3359_v45  ;;  %v3027_v45 = vmul.f32 1.442695, %v2917_v29  ;;  %v2919_v29 = vsub.f32 %v7579_v0, %v7913_v57  ;;  %v8044_v57 = vpop.xlane.xlu0 %2866 }
 0x82a   : > { %5954 = vpow2.f32 %v3027_v45  ;;  %v3031_v47 = vmul.f32 1.442695, %v2919_v29  ;;  %v3371_v45 = vsel %vm3319_vm7, %v3162_v51, 0.0  ;;  %v2921_v29 = vsub.f32 %v7616_v50, %v7936_v37 }
 0x82b   : > { %5956 = vpow2.f32 %v3029_v11 }
 0x82c   : > { %5958 = vpow2.f32 %v3031_v47  ;;  %v3166_v51 = vpop.permute.xlu0 %3165 }
 0x82d   : > { %v3377_v47 = vsel %vm3319_vm7, %v3166_v51, 0.0 }
 0x82f   : > { %3363 = vadd.xlane.f32.xlu0 %v3362_v16  ;;  %v3160_v16 = vpop.permute.xlu1 %3159 }
 0x830   : > { %v3368_v62 = vsel %vm3319_vm7, %v3160_v16, 0.0 }
 0x833   : > { %v8030_v22 = vpop.xlane.xlu1 %2863 }
 0x839   : > { %3215 = vrot.lane.b32.xlu1 %v8000_v20, %s6177_s27 }
 0x845   : > { %3217 = vrot.lane.b32.xlu0 %v8004_v8, %s6177_s27  ;;  %v8018_v8 = vpop.eup %5954 }
 0x846   : > { %9379 = vst [vmem:[#allocation56_spill] sm:$0xff] %v8018_v8  ;;  %v8022_v24 = vpop.eup %5956 }
 0x847   : > { %9380 = vst [vmem:[#allocation111_spill] sm:$0xff] %v8022_v24 }
 0x85d   : > { %3366 = vadd.xlane.f32.xlu1 %v3365_v49  ;;  %v3164_v49 = vpop.permute.xlu1 %3163 }
 0x85e   : > { %v3374_v16 = vsel %vm3319_vm7, %v3164_v49, 0.0 }
 0x861   : > { %v8060_v37 = vpop.xlane.xlu1 %2869 }
 0x864   : > { %3369 = vadd.xlane.f32.xlu0 %v3368_v62  ;;  %v9381_v62 = vld [vmem:[#allocation65_spill] sm:$0xff] }
 0x865   : > { %v2920_v14 = vsub.f32 %v9381_v62, %v7919_v19  ;;  %v3035_v19 = vmul.f32 1.442695, %v2921_v29  ;;  %v3170_v29 = vpop.permute.xlu1 %3169 }
 0x867   : > { %v3033_v11 = vmul.f32 1.442695, %v2920_v14 }
 0x869   : > { %5960 = vpow2.f32 %v3033_v11  ;;  %v2923_v11 = vsub.f32 %v7633_v9, %v7954_v34  ;;  %v2925_v34 = vsub.f32 %v7667_v3, %v7972_v13  ;;  %v2927_v13 = vsub.f32 %v7697_v10, %v7990_v30 }
 0x86a   : > { %5962 = vpow2.f32 %v3035_v19  ;;  %v2929_v30 = vsub.f32 %v7727_v38, %v8008_v42  ;;  %v2931_v42 = vsub.f32 %v7757_v60, %v8026_v32 }
 0x86e   : > { %3219 = vrot.lane.b32.xlu1 %v8018_v8, %s6177_s27 }
 0x87a   : > { %3221 = vrot.lane.b32.xlu0 %v8022_v24, %s6177_s27  ;;  %v8036_v24 = vpop.eup %5958 }
 0x87b   : > { %9382 = vst [vmem:[#allocation65_spill] sm:$0xff] %v8036_v24  ;;  %v8040_v0 = vpop.eup %5960 }
 0x87c   : > { %9383 = vst [vmem:[#allocation112_spill] sm:$0xff] %v8040_v0  ;;  %v8052_v14 = vpop.eup %5962 }
 0x87d   : > { %9384 = vst [vmem:[#allocation113_spill] sm:$0xff] %v8052_v14 }
 0x892   : > { %3372 = vadd.xlane.f32.xlu1 %v3371_v45  ;;  %v3168_v45 = vpop.permute.xlu0 %3167 }
 0x893   : > { %v3380_v49 = vsel %vm3319_vm7, %v3168_v45, 0.0 }
 0x896   : > { %v3172_v51 = vpop.permute.xlu0 %3171 }
 0x897   : > { %v3386_v19 = vsel %vm3319_vm7, %v3172_v51, 0.0 }
 0x899   : > { %3375 = vadd.xlane.f32.xlu0 %v3374_v16  ;;  %v2922_v16 = vsub.f32 %v7624_v33, %v7938_v52  ;;  %v3039_v33 = vmul.f32 1.442695, %v2923_v11  ;;  %v3383_v52 = vsel %vm3319_vm7, %v3170_v29, 0.0  ;;  %v2926_v29 = vsub.f32 %v7693_v15, %v7976_v63 }
 0x89b   : > { %v3037_v62 = vmul.f32 1.442695, %v2922_v16  ;;  %v3174_v16 = vpop.permute.xlu0 %3173 }
 0x89d   : > { %5964 = vpow2.f32 %v3037_v62  ;;  %v3043_v62 = vmul.f32 1.442695, %v2925_v34 }
 0x89e   : > { %5966 = vpow2.f32 %v3039_v33  ;;  %v3045_v33 = vmul.f32 1.442695, %v2926_v29 }
 0x8a3   : > { %3223 = vrot.lane.b32.xlu1 %v8036_v24, %s6177_s27 }
 0x8aa   : > { %v8056_v50 = vpop.eup %5964 }
 0x8ab   : > { %9385 = vst [vmem:[#allocation114_spill] sm:$0xff] %v8056_v50 }
 0x8af   : > { %3225 = vrot.lane.b32.xlu0 %v8040_v0, %s6177_s27 }
 0x8c7   : > { %3378 = vadd.xlane.f32.xlu1 %v3377_v47  ;;  %v2924_v47 = vsub.f32 %v7663_v56, %v7958_v58  ;;  %v3389_v56 = vsel %vm3319_vm7, %v3174_v16, 0.0  ;;  %v3176_v58 = vpop.permute.xlu0 %3175 }
 0x8c8   : > { %v3392_v11 = vsel %vm3319_vm7, %v3176_v58, 0.0 }
 0x8c9   : > { %v3041_v45 = vmul.f32 1.442695, %v2924_v47 }
 0x8cb   : > { %5968 = vpow2.f32 %v3041_v45  ;;  %v3178_v51 = vpop.permute.xlu0 %3177  ;;  %v2928_v45 = vsub.f32 %v7723_v61, %v7994_v55 }
 0x8cc   : > { %5970 = vpow2.f32 %v3043_v62  ;;  %v3395_v15 = vsel %vm3319_vm7, %v3178_v51, 0.0  ;;  %v3182_v62 = vpop.permute.xlu1 %3181  ;;  %v3055_v51 = vmul.f32 1.442695, %v2931_v42 }
 0x8cd   : > { %5972 = vpow2.f32 %v3045_v33  ;;  %v3049_v34 = vmul.f32 1.442695, %v2928_v45  ;;  %v3401_v61 = vsel %vm3319_vm7, %v3182_v62, 0.0 }
 0x8ce   : > { %3381 = vadd.xlane.f32.xlu0 %v3380_v49  ;;  %v8068_v49 = vpop.eup %5966 }
 0x8cf   : > { %9386 = vst [vmem:[#allocation115_spill] sm:$0xff] %v8068_v49  ;;  %v3180_v63 = vpop.permute.xlu0 %3179 }
 0x8d0   : > { %v3398_v47 = vsel %vm3319_vm7, %v3180_v63, 0.0 }
 0x8d3   : > { %v3184_v55 = vpop.permute.xlu0 %3183 }
 0x8d4   : > { %v3404_v58 = vsel %vm3319_vm7, %v3184_v55, 0.0  ;;  %v2934_v55 = vsub.f32 %v7835_v27, %v8060_v37 }
 0x8d7   : > { %v3322_v32 = vpop.xlane.xlu0 %3321 }
 0x8d8   : > { %3227 = vrot.lane.b32.xlu1 %v8052_v14, %s6177_s27  ;;  %v8072_v9 = vpop.eup %5968 }
 0x8d9   : > { %9387 = vst [vmem:[#allocation116_spill] sm:$0xff] %v8072_v9 }
 0x8e4   : > { %3229 = vrot.lane.b32.xlu0 %v8056_v50, %s6177_s27  ;;  %v9400_v50 = vld [vmem:[#allocation54_spill] sm:$0xff] }
 0x8fc   : > { %3384 = vadd.xlane.f32.xlu1 %v3383_v52  ;;  %v8082_v52 = vpop.eup %5970 }
 0x8fd   : > { %9388 = vst [vmem:[#allocation117_spill] sm:$0xff] %v8082_v52  ;;  %v8086_v3 = vpop.eup %5972 }
 0x8fe   : > { %9389 = vst [vmem:[#allocation118_spill] sm:$0xff] %v8086_v3 }
 0x903   : > { %3387 = vadd.xlane.f32.xlu0 %v3386_v19  ;;  %v3047_v19 = vmul.f32 1.442695, %v2927_v13  ;;  %v3186_v13 = vpop.permute.xlu1 %3185 }
 0x905   : > { %5974 = vpow2.f32 %v3047_v19 }
 0x906   : > { %5976 = vpow2.f32 %v3049_v34  ;;  %v2933_v34 = vsub.f32 %v7785_v21, %v8044_v57 }
 0x90d   : > { %3231 = vrot.lane.b32.xlu1 %v8068_v49, %s6177_s27 }
 0x912   : > { %v8096_v16 = vpop.eup %5974 }
 0x913   : > { %9390 = vst [vmem:[#allocation119_spill] sm:$0xff] %v8096_v16  ;;  %v8100_v10 = vpop.eup %5976 }
 0x914   : > { %9391 = vst [vmem:[#allocation120_spill] sm:$0xff] %v8100_v10 }
 0x919   : > { %3233 = vrot.lane.b32.xlu0 %v8072_v9, %s6177_s27 }
 0x931   : > { %3390 = vadd.xlane.f32.xlu1 %v3389_v56  ;;  %v3051_v56 = vmul.f32 1.442695, %v2929_v30  ;;  %v3190_v30 = vpop.permute.xlu0 %3189 }
 0x932   : > { %v3413_v62 = vsel %vm3319_vm7, %v3190_v30, 0.0 }
 0x933   : > { %5978 = vpow2.f32 %v3051_v56 }
 0x938   : > { %3393 = vadd.xlane.f32.xlu0 %v3392_v11  ;;  %v2930_v11 = vsub.f32 %v7753_v46, %v8012_v28  ;;  %v3407_v46 = vsel %vm3319_vm7, %v3186_v13, 0.0  ;;  %v3188_v28 = vpop.permute.xlu1 %3187 }
 0x939   : > { %v3410_v19 = vsel %vm3319_vm7, %v3188_v28, 0.0 }
 0x93a   : > { %v3053_v29 = vmul.f32 1.442695, %v2930_v11  ;;  %v3061_v11 = vmul.f32 1.442695, %v2934_v55 }
 0x93c   : > { %5980 = vpow2.f32 %v3053_v29  ;;  %v3325_v45 = vpop.xlane.xlu1 %3324 }
 0x93d   : > { %5982 = vpow2.f32 %v3055_v51  ;;  %v8154_v51 = vpop.xlane.xlu0 %3330 }
 0x940   : > { %v8110_v33 = vpop.eup %5978 }
 0x941   : > { %9392 = vst [vmem:[#allocation121_spill] sm:$0xff] %v8110_v33  ;;  %v3196_v28 = vpop.permute.xlu0 %3195 }
 0x942   : > { %3235 = vrot.lane.b32.xlu1 %v8082_v52, %s6177_s27 }
 0x949   : > { %v8114_v38 = vpop.eup %5980 }
 0x94a   : > { %9393 = vst [vmem:[#allocation122_spill] sm:$0xff] %v8114_v38 }
 0x94e   : > { %3237 = vrot.lane.b32.xlu0 %v8086_v3, %s6177_s27 }
 0x966   : > { %3396 = vadd.xlane.f32.xlu1 %v3395_v15  ;;  %v2932_v15 = vsub.f32 %v7781_v43, %v8030_v22  ;;  %v8134_v43 = vpop.xlane.xlu1 %3327  ;;  %v3059_v22 = vmul.f32 1.442695, %v2933_v34 }
 0x968   : > { %v3057_v63 = vmul.f32 1.442695, %v2932_v15  ;;  %v8158_v15 = vpop.xlane.xlu0 %3339 }
 0x96a   : > { %5984 = vpow2.f32 %v3057_v63  ;;  %v3192_v56 = vpop.permute.xlu1 %3191 }
 0x96b   : > { %5986 = vpow2.f32 %v3059_v22 }
 0x96c   : > { %5988 = vpow2.f32 %v3061_v11  ;;  %v3202_v34 = vpop.permute.xlu0 %3201 }
 0x96d   : > { %3399 = vadd.xlane.f32.xlu0 %v3398_v47  ;;  %v8124_v47 = vpop.eup %5982  ;;  %5990 = vrcp.f32 %v3322_v32 }
 0x96e   : > { %9394 = vst [vmem:[#allocation123_spill] sm:$0xff] %v8124_v47  ;;  %5992 = vrcp.f32 %v3325_v45 }
 0x96f   : > { %5994 = vrcp.f32 %v8134_v43 }
 0x970   : > { %5996 = vrcp.f32 %v8154_v51 }
 0x977   : > { %3239 = vrot.lane.b32.xlu1 %v8096_v16, %s6177_s27  ;;  %v8128_v60 = vpop.eup %5984 }
 0x978   : > { %9395 = vst [vmem:[#allocation124_spill] sm:$0xff] %v8128_v60  ;;  %v8142_v21 = vpop.eup %5986 }
 0x979   : > { %9396 = vst [vmem:[#allocation125_spill] sm:$0xff] %v8142_v21  ;;  %v8148_v13 = vpop.eup %5988 }
 0x97a   : > { %9397 = vst [vmem:[#allocation126_spill] sm:$0xff] %v8148_v13 }
 0x983   : > { %3241 = vrot.lane.b32.xlu0 %v8100_v10, %s6177_s27 }
 0x99b   : > { %3402 = vadd.xlane.f32.xlu1 %v3401_v61  ;;  %v3416_v61 = vsel %vm3319_vm7, %v3192_v56, 0.0 }
 0x9a2   : > { %3405 = vadd.xlane.f32.xlu0 %v3404_v58  ;;  %v3194_v58 = vpop.permute.xlu1 %3193 }
 0x9a3   : > { %v3419_v30 = vsel %vm3319_vm7, %v3194_v58, 0.0  ;;  %v3431_v58 = vsel %vm3319_vm7, %v3202_v34, 0.0 }
 0x9a6   : > { %v8140_v29 = vpop.xlane.xlu1 %3333 }
 0x9a7   : > { %5998 = vrcp.f32 %v8140_v29  ;;  %v9404_v29 = vld [vmem:[#allocation66_spill] sm:$0xff] }
 0x9aa   : > { %v8146_v57 = vpop.xlane.xlu1 %3336 }
 0x9ab   : > { %6000 = vrcp.f32 %v8146_v57 }
 0x9ac   : > { %3243 = vrot.lane.b32.xlu1 %v8110_v33, %s6177_s27  ;;  %6002 = vrcp.f32 %v8158_v15 }
 0x9ae   : > { %v3198_v42 = vpop.permute.xlu1 %3197 }
 0x9af   : > { %v3425_v56 = vsel %vm3319_vm7, %v3198_v42, 0.0 }
 0x9b2   : > { %v3200_v27 = vpop.permute.xlu1 %3199 }
 0x9b3   : > { %v3428_v11 = vsel %vm3319_vm7, %v3200_v27, 0.0 }
 0x9b6   : > { %v8152_v37 = vpop.xlane.xlu1 %3342 }
 0x9b7   : > { %6004 = vrcp.f32 %v8152_v37 }
 0x9b8   : > { %3245 = vrot.lane.b32.xlu0 %v8114_v38, %s6177_s27 }
 0x9d0   : > { %3408 = vadd.xlane.f32.xlu1 %v3407_v46  ;;  %v3204_v46 = vpop.permute.xlu1 %3203 }
 0x9d1   : > { %v3434_v42 = vsel %vm3319_vm7, %v3204_v46, 0.0 }
 0x9d7   : > { %3411 = vadd.xlane.f32.xlu0 %v3410_v19  ;;  %v8156_v19 = vpop.xlane.xlu1 %3348 }
 0x9db   : > { %v3208_v63 = vpop.permute.xlu1 %3207 }
 0x9dc   : > { %v3440_v27 = vsel %vm3319_vm7, %v3208_v63, 0.0  ;;  %v3640_v63 = vld [vmem:[%s9013_s6] sm:$0xff] }
 0x9dd   : > { %5735 = vmatprep.subr.mxu0 %v3640_v63 }
 0x9de   : > { %5736 = vmatpush3.msra.mxu0 %v3640_v63 }
 0x9df   : > { %v8161_v22 = vpop.xlane.xlu1 %3354 }
 0x9e1   : > { %3247 = vrot.lane.b32.xlu1 %v8124_v47, %s6177_s27 }
 0x9e3   : > { %v3212_v55 = vpop.permute.xlu1 %3211 }
 0x9ed   : > { %3249 = vrot.lane.b32.xlu0 %v8128_v60, %s6177_s27 }
 0xa05   : > { %3414 = vadd.xlane.f32.xlu1 %v3413_v62  ;;  %v8163_v62 = vpop.xlane.xlu0 %3345 }
 0xa06   : > { %6006 = vrcp.f32 %v8163_v62  ;;  %v9412_v62 = vld [vmem:[#allocation74_spill] sm:$0xff] }
 0xa07   : > { %6008 = vrcp.f32 %v8156_v19 }
 0xa0c   : > { %3417 = vadd.xlane.f32.xlu0 %v3416_v61  ;;  %v3422_v61 = vsel %vm3319_vm7, %v3196_v28, 0.0 }
 0xa16   : > { %3251 = vrot.lane.b32.xlu1 %v8142_v21, %s6177_s27  ;;  %v3206_v21 = vpop.permute.xlu0 %3205 }
 0xa17   : > { %v3437_v28 = vsel %vm3319_vm7, %v3206_v21, 0.0  ;;  %v8181_v21 = vpop.xlane.xlu1 %3360 }
 0xa22   : > { %3253 = vrot.lane.b32.xlu0 %v8148_v13, %s6177_s27  ;;  %v3446_v13 = vsel %vm3319_vm7, %v3212_v55, 0.0  ;;  %v5991_v55 = vpop.eup %5990 }
 0xa3a   : > { %3420 = vadd.xlane.f32.xlu1 %v3419_v30  ;;  %v8170_v30 = vpop.xlane.xlu0 %3351 }
 0xa3b   : > { %6010 = vrcp.f32 %v8170_v30  ;;  %v9414_v30 = vld [vmem:[#allocation78_spill] sm:$0xff] }
 0xa3c   : > { %6012 = vrcp.f32 %v8161_v22 }
 0xa3e   : > { %3426 = vadd.xlane.f32.xlu1 %v3425_v56  ;;  %v3210_v56 = vpop.permute.xlu0 %3209 }
 0xa41   : > { %3423 = vadd.xlane.f32.xlu0 %v3422_v61 }
 0xa42   : > { %3429 = vadd.xlane.f32.xlu1 %v3428_v11  ;;  %v8174_v61 = vpop.xlane.xlu0 %3357  ;;  %v9398_v11 = vld [vmem:[#allocation49_spill] sm:$0xff] }
 0xa43   : > { %v3513_v46 = vmul.f32 %v5991_v55, %v9398_v11  ;;  %6014 = vrcp.f32 %v8174_v61  ;;  %v9416_v61 = vld [vmem:[#allocation82_spill] sm:$0xff] }
 0xa44   : > { %6016 = vrcp.f32 %v8181_v21 }
 0xa45   : > { %3447 = vadd.xlane.f32.xlu0 %v3446_v13  ;;  %v3443_v13 = vsel %vm3319_vm7, %v3210_v56, 0.0 }
 0xa46   : > { %3432 = vadd.xlane.f32.xlu1 %v3431_v58  ;;  %v3214_v34 = vpop.permute.xlu0 %3213  ;;  %v3216_v58 = vpop.permute.xlu1 %3215 }
 0xa47   : > { %v3449_v32 = vsel %vm3319_vm7, %v3214_v34, 0.0 }
 0xa4a   : > { %3435 = vadd.xlane.f32.xlu1 %v3434_v42  ;;  %v5993_v42 = vpop.eup %5992  ;;  %v8186_v56 = vpop.xlane.xlu0 %3363 }
 0xa4b   : > { %v8188_v45 = vpop.xlane.xlu1 %3366  ;;  %v5995_v3 = vpop.eup %5994  ;;  %6018 = vrcp.f32 %v8186_v56  ;;  %v9418_v56 = vld [vmem:[#allocation86_spill] sm:$0xff] }
 0xa4c   : > { %v3517_v43 = vmul.f32 %v5995_v3, %v9400_v50  ;;  %v5997_v48 = vpop.eup %5996  ;;  %6020 = vrcp.f32 %v8188_v45 }
 0xa4d   : > { %v5999_v2 = vpop.eup %5998 }
 0xa4e   : > { %3438 = vadd.xlane.f32.xlu1 %v3437_v28  ;;  %v9399_v28 = vld [vmem:[#allocation57_spill] sm:$0xff]  ;;  %v3521_v7 = vmul.f32 %v5999_v2, %v9404_v29  ;;  %v9408_v2 = vld [vmem:[#allocation67_spill] sm:$0xff] }
 0xa4f   : > { %v3220_v55 = vpop.permute.xlu1 %3219 }
 0xa52   : > { %3441 = vadd.xlane.f32.xlu1 %v3440_v27  ;;  %v3515_v27 = vmul.f32 %v5993_v42, %v9399_v28 }
 0xa56   : > { %3444 = vadd.xlane.f32.xlu1 %v3443_v13  ;;  %v3218_v13 = vpop.permute.xlu0 %3217 }
 0xa57   : > { %v3455_v60 = vsel %vm3319_vm7, %v3218_v13, 0.0 }
 0xa5a   : > { %3450 = vadd.xlane.f32.xlu1 %v3449_v32  ;;  %v8192_v34 = vpop.xlane.xlu0 %3369  ;;  %v8194_v32 = vpop.xlane.xlu1 %3372 }
 0xa5b   : > { %3705 = vrot.lane.b32.xlu0 %v3513_v46, %s6177_s27  ;;  %6022 = vrcp.f32 %v8192_v34  ;;  %v9420_v34 = vld [vmem:[#allocation90_spill] sm:$0xff] }
 0xa5c   : > { %6024 = vrcp.f32 %v8194_v32 }
 0xa5e   : > { %v3222_v11 = vpop.permute.xlu0 %3221  ;;  %v8196_v46 = vpop.permute.xlu1 %3223 }
 0xa5f   : > { %v3461_v24 = vsel %vm3319_vm7, %v3222_v11, 0.0  ;;  %v3458_v11 = vsel %vm3319_vm7, %v3220_v55, 0.0 }
 0xa62   : > { %v8199_v47 = vpop.xlane.xlu0 %3375  ;;  %v8201_v63 = vpop.xlane.xlu1 %3378 }
 0xa63   : > { %6026 = vrcp.f32 %v8199_v47 }
 0xa64   : > { %6028 = vrcp.f32 %v8201_v63 }
 0xa66   : > { %v3226_v42 = vpop.permute.xlu0 %3225  ;;  %v8204_v28 = vpop.permute.xlu1 %3227 }
 0xa6a   : > { %v8208_v38 = vpop.xlane.xlu1 %3384 }
 0xa6b   : > { %3707 = vrot.lane.b32.xlu1 %v3515_v27, %s6177_s27  ;;  %v8206_v27 = vpop.xlane.xlu0 %3381 }
 0xa6c   : > { %6030 = vrcp.f32 %v8206_v27 }
 0xa6e   : > { %v8212_v9 = vpop.permute.xlu1 %3231 }
 0xa6f   : > { %v8210_v10 = vpop.permute.xlu0 %3229 }
 0xa70   : > { %v3473_v37 = vsel %vm3319_vm7, %v8210_v10, 0.0 }
 0xa72   : > { %v8220_v0 = vpop.xlane.xlu1 %3390 }
 0xa73   : > { %v8215_v13 = vpop.xlane.xlu0 %3387 }
 0xa76   : > { %v8224_v16 = vpop.permute.xlu1 %3235 }
 0xa77   : > { %v8222_v33 = vpop.permute.xlu0 %3233 }
 0xa78   : > { %v3479_v19 = vsel %vm3319_vm7, %v8222_v33, 0.0 }
 0xa7a   : > { %3456 = vadd.xlane.f32.xlu0 %v3455_v60  ;;  %v3452_v60 = vsel %vm3319_vm7, %v3216_v58, 0.0  ;;  %v8228_v49 = vpop.xlane.xlu1 %3396  ;;  %v3519_v58 = vmul.f32 %v5997_v48, %v9401_v12 }
 0xa7b   : > { %v8226_v52 = vpop.xlane.xlu0 %3393 }
 0xa7e   : > { %v8234_v50 = vpop.permute.xlu1 %3239 }
 0xa7f   : > { %v8230_v51 = vpop.permute.xlu0 %3237 }
 0xa83   : > { %v8236_v3 = vpop.xlane.xlu0 %3399 }
 0xa8f   : > { %3453 = vadd.xlane.f32.xlu1 %v3452_v60  ;;  %v8238_v60 = vpop.xlane.xlu1 %3402 }
 0xa90   : > { %3709 = vrot.lane.b32.xlu0 %v3517_v43, %s6177_s27  ;;  %v8240_v43 = vpop.permute.xlu0 %3241 }
 0xa93   : > { %v8242_v14 = vpop.permute.xlu1 %3243 }
 0xa94   : > { %v8244_v36 = vpop.xlane.xlu0 %3405 }
 0xa97   : > { %v8247_v1 = vpop.xlane.xlu1 %3408 }
 0xa98   : > { %v8249_v12 = vpop.permute.xlu0 %3245 }
 0xa99   : > { %v3497_v45 = vsel %vm3319_vm7, %v8249_v12, 0.0 }
 0xa9b   : > { %v8252_v48 = vpop.permute.xlu1 %3247 }
 0xa9f   : > { %v8256_v8 = vpop.xlane.xlu1 %3414 }
 0xaa0   : > { %3711 = vrot.lane.b32.xlu1 %v3519_v58, %s6177_s27  ;;  %v8254_v58 = vpop.xlane.xlu0 %3411  ;;  %9402 = vst [vmem:[#allocation49_spill] sm:$0xff] %v8256_v8 }
 0xaa3   : > { %v8260_v20 = vpop.permute.xlu1 %3251 }
 0xaa4   : > { %v8258_v31 = vpop.permute.xlu0 %3249 }
 0xaa8   : > { %v8262_v44 = vpop.xlane.xlu0 %3417 }
 0xaac   : > { %v8270_v54 = vpop.permute.xlu0 %3253 }
 0xaad   : > { %v3509_v63 = vsel %vm3319_vm7, %v8270_v54, 0.0  ;;  %v3506_v54 = vsel %vm3319_vm7, %v8260_v20, 0.0 }
 0xaaf   : > { %3462 = vadd.xlane.f32.xlu0 %v3461_v24 }
 0xac3   : > { %v8265_v24 = vpop.xlane.xlu1 %3420 }
 0xac4   : > { %9403 = vst [vmem:[#allocation57_spill] sm:$0xff] %v8265_v24  ;;  %3459 = vadd.xlane.f32.xlu1 %v3458_v11  ;;  %v6001_v24 = vpop.eup %6000  ;;  %6032 = vrcp.f32 %v8226_v52 }
 0xac5   : > { %3713 = vrot.lane.b32.xlu0 %v3521_v7, %s6177_s27  ;;  %v3523_v7 = vmul.f32 %v6001_v24, %v9408_v2  ;;  %v3464_v24 = vsel %vm3319_vm7, %v8196_v46, 0.0  ;;  %v9410_v2 = vld [vmem:[#allocation68_spill] sm:$0xff] }
 0xac7   : > { %v8272_v23 = vpop.xlane.xlu1 %3426 }
 0xac8   : > { %9405 = vst [vmem:[#allocation54_spill] sm:$0xff] %v8272_v23 }
 0xaca   : > { %v8274_v18 = vpop.xlane.xlu0 %3423 }
 0xacb   : > { %v8276_v40 = vpop.xlane.xlu1 %3429 }
 0xace   : > { %v8278_v8 = vpop.xlane.xlu0 %3447 }
 0xacf   : > { %9406 = vst [vmem:[#allocation61_spill] sm:$0xff] %v8278_v8  ;;  %v8280_v57 = vpop.xlane.xlu1 %3432 }
 0xad0   : > { %9407 = vst [vmem:[#allocation66_spill] sm:$0xff] %v8280_v57  ;;  %v3467_v57 = vsel %vm3319_vm7, %v3226_v42, 0.0 }
 0xad2   : > { %v3706_v25 = vpop.permute.xlu0 %3705 }
 0xad3   : > { %v8282_v55 = vpop.xlane.xlu1 %3435  ;;  %5737 = vmatprep.mubr.msk.f32.mxu0 %vm3319_vm7, %v3706_v25  ;;  %v6003_v25 = vpop.eup %6002  ;;  %6034 = vrcp.f32 %v8236_v3 }
 0xad4   : > { %v6005_v42 = vpop.eup %6004  ;;  %6036 = vrcp.f32 %v8244_v36 }
 0xad5   : > { %3715 = vrot.lane.b32.xlu1 %v3523_v7, %s6177_s27  ;;  %v3525_v7 = vmul.f32 %v6003_v25, %v9410_v2  ;;  %v3527_v15 = vmul.f32 %v6005_v42, %v7639_v39  ;;  %v6007_v25 = vpop.eup %6006  ;;  %v9411_v39 = vld [vmem:[#allocation73_spill] sm:$0xff]  ;;  %6038 = vrcp.f32 %v8208_v38 }
 0xad6   : > { %v3529_v2 = vmul.f32 %v6007_v25, %v9411_v39  ;;  %v6009_v10 = vpop.eup %6008  ;;  %v9413_v25 = vld [vmem:[#allocation77_spill] sm:$0xff]  ;;  %6040 = vrcp.f32 %v8254_v58 }
 0xad7   : > { %v8287_v11 = vpop.xlane.xlu1 %3438 }
 0xadb   : > { %v8289_v29 = vpop.xlane.xlu1 %3441 }
 0xadf   : > { %v8291_v23 = vpop.xlane.xlu1 %3444 }
 0xae3   : > { %v8293_v41 = vpop.xlane.xlu1 %3450 }
 0xae4   : > { %9409 = vst [vmem:[#allocation67_spill] sm:$0xff] %v8293_v41  ;;  %3468 = vadd.xlane.f32.xlu0 %v3467_v57 }
 0xae7   : > { %v3708_v8 = vpop.permute.xlu1 %3707 }
 0xae8   : > { %5738 = vmatmul.mubr.msk.f32.vlgmr.msra.gmra.mxu0 %vm3319_vm7, %v3708_v8 }
 0xaf9   : > { %3465 = vadd.xlane.f32.xlu1 %v3464_v24  ;;  %v3470_v24 = vsel %vm3319_vm7, %v8204_v28, 0.0 }
 0xafa   : > { %3717 = vrot.lane.b32.xlu0 %v3525_v7, %s6177_s27 }
 0xb03   : > { %v8303_v41 = vpop.xlane.xlu0 %3456 }
 0xb07   : > { %v3710_v57 = vpop.permute.xlu0 %3709 }
 0xb08   : > { %5740 = vmatprep.mubr.msk.f32.mxu0 %vm3319_vm7, %v3710_v57  ;;  %v3531_v57 = vmul.f32 %v6009_v10, %v9412_v62 }
 0xb0a   : > { %3719 = vrot.lane.b32.xlu1 %v3527_v15, %s6177_s27 }
 0xb18   : > { %v8308_v8 = vpop.xlane.xlu1 %3453 }
 0xb19   : > { %3474 = vadd.xlane.f32.xlu0 %v3473_v37  ;;  %v6011_v37 = vpop.eup %6010  ;;  %6042 = vrcp.f32 %v8215_v13 }
 0xb1a   : > { %v6013_v33 = vpop.eup %6012  ;;  %6044 = vrcp.f32 %v8262_v44 }
 0xb1b   : > { %v3535_v10 = vmul.f32 %v6013_v33, %v9414_v30  ;;  %v6015_v62 = vpop.eup %6014  ;;  %v9417_v30 = vld [vmem:[#allocation85_spill] sm:$0xff]  ;;  %6046 = vrcp.f32 %v8220_v0 }
 0xb1c   : > { %v3712_v46 = vpop.permute.xlu1 %3711 }
 0xb1d   : > { %5741 = vmatmul.mubr.msk.f32.gmra.mxu0 %vm3319_vm7, %v3712_v46  ;;  %v3476_v46 = vsel %vm3319_vm7, %v8212_v9, 0.0  ;;  %v3485_v9 = vsel %vm3319_vm7, %v8230_v51, 0.0  ;;  %v6017_v51 = vpop.eup %6016  ;;  %6048 = vrcp.f32 %v8274_v18 }
 0xb1e   : > { %v6019_v33 = vpop.eup %6018  ;;  %6050 = vrcp.f32 %v8228_v49 }
 0xb2e   : > { %3471 = vadd.xlane.f32.xlu1 %v3470_v24  ;;  %v3533_v24 = vmul.f32 %v6011_v37, %v9413_v25  ;;  %v3539_v25 = vmul.f32 %v6017_v51, %v9416_v61  ;;  %v9419_v51 = vld [vmem:[#allocation89_spill] sm:$0xff] }
 0xb2f   : > { %3721 = vrot.lane.b32.xlu0 %v3529_v2, %s6177_s27 }
 0xb38   : > { %v8319_v7 = vpop.xlane.xlu0 %3462 }
 0xb3c   : > { %v3714_v42 = vpop.permute.xlu0 %3713 }
 0xb3d   : > { %5743 = vmatprep.mubr.msk.f32.mxu0 %vm3319_vm7, %v3714_v42 }
 0xb3f   : > { %3723 = vrot.lane.b32.xlu1 %v3531_v57, %s6177_s27  ;;  %v3482_v57 = vsel %vm3319_vm7, %v8224_v16, 0.0  ;;  %v3491_v16 = vsel %vm3319_vm7, %v8240_v43, 0.0  ;;  %v6021_v43 = vpop.eup %6020  ;;  %6052 = vrcp.f32 %v8276_v40 }
 0xb4d   : > { %v8324_v15 = vpop.xlane.xlu1 %3459 }
 0xb4e   : > { %3480 = vadd.xlane.f32.xlu0 %v3479_v19  ;;  %v9415_v19 = vld [vmem:[#allocation81_spill] sm:$0xff] }
 0xb51   : > { %v3716_v28 = vpop.permute.xlu1 %3715 }
 0xb52   : > { %5744 = vmatmul.mubr.msk.f32.gmra.mxu0 %vm3319_vm7, %v3716_v28  ;;  %v3537_v28 = vmul.f32 %v6015_v62, %v9415_v19  ;;  %v3543_v62 = vmul.f32 %v6021_v43, %v9418_v56  ;;  %v6023_v19 = vpop.eup %6022  ;;  %6054 = vrcp.f32 %v8238_v60  ;;  %v9422_v60 = vld [vmem:[#allocation99_spill] sm:$0xff] }
 0xb53   : > { %v6025_v12 = vpop.eup %6024  ;;  %6056 = vrcp.f32 %v8282_v55 }
 0xb63   : > { %3477 = vadd.xlane.f32.xlu1 %v3476_v46 }
 0xb64   : > { %3725 = vrot.lane.b32.xlu0 %v3533_v24, %s6177_s27 }
 0xb6d   : > { %v8335_v39 = vpop.xlane.xlu0 %3468 }
 0xb71   : > { %v3718_v2 = vpop.permute.xlu0 %3717 }
 0xb72   : > { %5746 = vmatprep.mubr.msk.f32.mxu0 %vm3319_vm7, %v3718_v2  ;;  %v3488_v2 = vsel %vm3319_vm7, %v8234_v50, 0.0 }
 0xb74   : > { %3727 = vrot.lane.b32.xlu1 %v3535_v10, %s6177_s27  ;;  %v3541_v10 = vmul.f32 %v6019_v33, %v9417_v30  ;;  %v6027_v33 = vpop.eup %6026  ;;  %6058 = vrcp.f32 %v8247_v1  ;;  %v9426_v1 = vld [vmem:[#allocation101_spill] sm:$0xff] }
 0xb75   : > { %v3549_v30 = vmul.f32 %v6027_v33, %v7795_v35 }
 0xb82   : > { %v8340_v42 = vpop.xlane.xlu1 %3465 }
 0xb83   : > { %3486 = vadd.xlane.f32.xlu0 %v3485_v9 }
 0xb86   : > { %v3720_v22 = vpop.permute.xlu1 %3719 }
 0xb87   : > { %5747 = vmatmul.mubr.msk.f32.gmra.mxu0 %vm3319_vm7, %v3720_v22 }
 0xb98   : > { %3483 = vadd.xlane.f32.xlu1 %v3482_v57 }
 0xb99   : > { %3729 = vrot.lane.b32.xlu0 %v3537_v28, %s6177_s27  ;;  %v3494_v28 = vsel %vm3319_vm7, %v8242_v14, 0.0  ;;  %v3503_v14 = vsel %vm3319_vm7, %v8258_v31, 0.0  ;;  %v6029_v31 = vpop.eup %6028  ;;  %6060 = vrcp.f32 %v8289_v29  ;;  %v9427_v29 = vld [vmem:[#allocation57_spill] sm:$0xff] }
 0xb9a   : > { %v3551_v47 = vmul.f32 %v6029_v31, %v7805_v59  ;;  %v6031_v59 = vpop.eup %6030  ;;  %v9432_v31 = vld [vmem:[#allocation105_spill] sm:$0xff] }
 0xb9b   : > { %v6033_v56 = vpop.eup %6032 }
 0xb9c   : > { %v3561_v36 = vmul.f32 %v6033_v56, %v7825_v26  ;;  %v6035_v52 = vpop.eup %6034 }
 0xb9d   : > { %v3565_v20 = vmul.f32 %v6035_v52, %v7837_v53  ;;  %v9436_v52 = vld [vmem:[#allocation98_spill] sm:$0xff] }
 0xba2   : > { %v8351_v37 = vpop.xlane.xlu0 %3474 }
 0xba6   : > { %v3722_v46 = vpop.permute.xlu0 %3721 }
 0xba7   : > { %5749 = vmatprep.mubr.msk.f32.mxu0 %vm3319_vm7, %v3722_v46  ;;  %v3545_v46 = vmul.f32 %v6023_v19, %v9419_v51 }
 0xba9   : > { %3731 = vrot.lane.b32.xlu1 %v3539_v25, %s6177_s27 }
 0xbb7   : > { %v8356_v24 = vpop.xlane.xlu1 %3471 }
 0xbb8   : > { %3492 = vadd.xlane.f32.xlu0 %v3491_v16  ;;  %v3547_v16 = vmul.f32 %v6025_v12, %v9420_v34 }
 0xbbb   : > { %v3724_v21 = vpop.permute.xlu1 %3723 }
 0xbbc   : > { %5750 = vmatmul.mubr.msk.f32.gmra.mxu0 %vm3319_vm7, %v3724_v21 }
 0xbcd   : > { %3489 = vadd.xlane.f32.xlu1 %v3488_v2  ;;  %v3500_v2 = vsel %vm3319_vm7, %v8252_v48, 0.0  ;;  %v3553_v48 = vmul.f32 %v6031_v59, %v7811_v4  ;;  %v6037_v4 = vpop.eup %6036  ;;  %v9434_v59 = vld [vmem:[#allocation97_spill] sm:$0xff] }
 0xbce   : > { %3733 = vrot.lane.b32.xlu0 %v3541_v10, %s6177_s27  ;;  %v6039_v27 = vpop.eup %6038  ;;  %v3569_v26 = vmul.f32 %v6037_v4, %v7845_v5  ;;  %v9421_v5 = vld [vmem:[#allocation93_spill] sm:$0xff] }
 0xbcf   : > { %v6041_v44 = vpop.eup %6040  ;;  %v3555_v53 = vmul.f32 %v6039_v27, %v7855_v17  ;;  %v9423_v17 = vld [vmem:[#allocation49_spill] sm:$0xff] }
 0xbd0   : > { %v6043_v0 = vpop.eup %6042  ;;  %v3573_v49 = vmul.f32 %v6041_v44, %v7871_v6  ;;  %6062 = vrcp.f32 %v9423_v17  ;;  %v9438_v44 = vld [vmem:[#allocation100_spill] sm:$0xff] }
 0xbd1   : > { %v6045_v13 = vpop.eup %6044  ;;  %v3557_v3 = vmul.f32 %v6043_v0, %v9421_v5 }
 0xbd2   : > { %v6047_v40 = vpop.eup %6046  ;;  %v3577_v58 = vmul.f32 %v6045_v13, %v9422_v60  ;;  %v9441_v13 = vld [vmem:[#allocation102_spill] sm:$0xff]  ;;  %v9443_v60 = vld [vmem:[#allocation104_spill] sm:$0xff] }
 0xbd3   : > { %v6049_v55 = vpop.eup %6048 }
 0xbd4   : > { %v6051_v6 = vpop.eup %6050  ;;  %v3581_v19 = vmul.f32 %v6049_v55, %v9426_v1  ;;  %v9444_v55 = vld [vmem:[#allocation65_spill] sm:$0xff] }
 0xbd7   : > { %v8367_v9 = vpop.xlane.xlu0 %3480 }
 0xbdb   : > { %v3726_v22 = vpop.permute.xlu0 %3725 }
 0xbdc   : > { %5752 = vmatprep.mubr.msk.f32.mxu0 %vm3319_vm7, %v3726_v22 }
 0xbde   : > { %3735 = vrot.lane.b32.xlu1 %v3543_v62, %s6177_s27  ;;  %v9424_v62 = vld [vmem:[#allocation61_spill] sm:$0xff] }
 0xbdf   : > { %6064 = vrcp.f32 %v9424_v62  ;;  %v9445_v62 = vld [vmem:[#allocation106_spill] sm:$0xff] }
 0xbe0   : > { %6066 = vrcp.f32 %v9427_v29  ;;  %v9448_v29 = vld [vmem:[#allocation115_spill] sm:$0xff] }
 0xbe1   : > { %6068 = vrcp.f32 %v8308_v8 }
 0xbec   : > { %v8372_v57 = vpop.xlane.xlu1 %3477 }
 0xbed   : > { %3498 = vadd.xlane.f32.xlu0 %v3497_v45  ;;  %v9425_v45 = vld [vmem:[#allocation94_spill] sm:$0xff] }
 0xbf0   : > { %v3728_v50 = vpop.permute.xlu1 %3727 }
 0xbf1   : > { %5753 = vmatmul.mubr.msk.f32.gmra.mxu0 %vm3319_vm7, %v3728_v50  ;;  %v3559_v50 = vmul.f32 %v6047_v40, %v9425_v45 }
 0xc02   : > { %3495 = vadd.xlane.f32.xlu1 %v3494_v28  ;;  %v6053_v28 = vpop.eup %6052 }
 0xc03   : > { %3737 = vrot.lane.b32.xlu0 %v3545_v46, %s6177_s27  ;;  %v6055_v51 = vpop.eup %6054  ;;  %v9428_v46 = vld [vmem:[#allocation95_spill] sm:$0xff] }
 0xc04   : > { %v3563_v12 = vmul.f32 %v6051_v6, %v9428_v46 }
 0xc0c   : > { %v8383_v61 = vpop.xlane.xlu0 %3486 }
 0xc10   : > { %v3730_v25 = vpop.permute.xlu0 %3729 }
 0xc11   : > { %5755 = vmatprep.mubr.msk.f32.mxu0 %vm3319_vm7, %v3730_v25  ;;  %v9429_v25 = vld [vmem:[#allocation103_spill] sm:$0xff] }
 0xc12   : > { %v3585_v34 = vmul.f32 %v6053_v28, %v9429_v25  ;;  %v9449_v25 = vld [vmem:[#allocation110_spill] sm:$0xff] }
 0xc13   : > { %3739 = vrot.lane.b32.xlu1 %v3547_v16, %s6177_s27  ;;  %v6057_v16 = vpop.eup %6056 }
 0xc21   : > { %v8388_v21 = vpop.xlane.xlu1 %3483 }
 0xc22   : > { %3504 = vadd.xlane.f32.xlu0 %v3503_v14  ;;  %v9430_v14 = vld [vmem:[#allocation54_spill] sm:$0xff] }
 0xc23   : > { %6070 = vrcp.f32 %v9430_v14 }
 0xc24   : > { %6072 = vrcp.f32 %v8324_v15 }
 0xc25   : > { %v3732_v32 = vpop.permute.xlu1 %3731 }
 0xc26   : > { %5756 = vmatmul.mubr.msk.f32.gmra.mxu0 %vm3319_vm7, %v3732_v32  ;;  %v6059_v32 = vpop.eup %6058 }
 0xc27   : > { %v6061_v8 = vpop.eup %6060 }
 0xc37   : > { %3501 = vadd.xlane.f32.xlu1 %v3500_v2  ;;  %v9431_v2 = vld [vmem:[#allocation96_spill] sm:$0xff] }
 0xc38   : > { %3741 = vrot.lane.b32.xlu0 %v3549_v30, %s6177_s27  ;;  %v3567_v30 = vmul.f32 %v6055_v51, %v9431_v2  ;;  %v9451_v2 = vld [vmem:[#allocation119_spill] sm:$0xff] }
 0xc41   : > { %v8399_v10 = vpop.xlane.xlu0 %3492 }
 0xc45   : > { %v3734_v43 = vpop.permute.xlu0 %3733 }
 0xc46   : > { %5758 = vmatprep.mubr.msk.f32.mxu0 %vm3319_vm7, %v3734_v43  ;;  %v3589_v43 = vmul.f32 %v6057_v16, %v9432_v31  ;;  %v9450_v16 = vld [vmem:[#allocation117_spill] sm:$0xff]  ;;  %v9452_v31 = vld [vmem:[#allocation60_spill] sm:$0xff] }
 0xc48   : > { %3743 = vrot.lane.b32.xlu1 %v3551_v47, %s6177_s27  ;;  %v9433_v47 = vld [vmem:[#allocation66_spill] sm:$0xff] }
 0xc49   : > { %6074 = vrcp.f32 %v9433_v47 }
 0xc4a   : > { %6076 = vrcp.f32 %v8340_v42  ;;  %v9437_v42 = vld [vmem:[#allocation109_spill] sm:$0xff] }
 0xc4b   : > { %6078 = vrcp.f32 %v8287_v11  ;;  %v9439_v11 = vld [vmem:[#allocation59_spill] sm:$0xff] }
 0xc4c   : > { %6080 = vrcp.f32 %v8356_v24  ;;  %v9440_v24 = vld [vmem:[#allocation67_spill] sm:$0xff] }
 0xc4d   : > { %6082 = vrcp.f32 %v8291_v23  ;;  %v9442_v23 = vld [vmem:[#allocation56_spill] sm:$0xff] }
 0xc4e   : > { %6084 = vrcp.f32 %v8372_v57 }
 0xc4f   : > { %6086 = vrcp.f32 %v9440_v24 }
 0xc50   : > { %6088 = vrcp.f32 %v8388_v21 }
 0xc51   : > { %6090 = vrcp.f32 %v8303_v41 }
 0xc56   : > { %v8404_v22 = vpop.xlane.xlu1 %3489 }
 0xc57   : > { %3510 = vadd.xlane.f32.xlu0 %v3509_v63  ;;  %v6063_v63 = vpop.eup %6062  ;;  %6092 = vrcp.f32 %v8404_v22 }
 0xc58   : > { %v6065_v56 = vpop.eup %6064  ;;  %6094 = vrcp.f32 %v8319_v7 }
 0xc59   : > { %v3597_v4 = vmul.f32 %v6065_v56, %v9437_v42 }
 0xc5a   : > { %v3736_v35 = vpop.permute.xlu1 %3735 }
 0xc5b   : > { %5759 = vmatmul.mubr.msk.f32.gmra.mxu0 %vm3319_vm7, %v3736_v35 }
 0xc6c   : > { %3507 = vadd.xlane.f32.xlu1 %v3506_v54  ;;  %v3571_v54 = vmul.f32 %v6059_v32, %v9434_v59 }
 0xc6d   : > { %3745 = vrot.lane.b32.xlu0 %v3553_v48, %s6177_s27  ;;  %v9435_v48 = vld [vmem:[#allocation107_spill] sm:$0xff] }
 0xc6e   : > { %v3593_v15 = vmul.f32 %v6061_v8, %v9435_v48 }
 0xc71   : > { %3753 = vrot.lane.b32.xlu0 %v3561_v36, %s6177_s27  ;;  %v6067_v36 = vpop.eup %6066 }
 0xc72   : > { %v6069_v27 = vpop.eup %6068 }
 0xc73   : > { %v3601_v0 = vmul.f32 %v6069_v27, %v9439_v11  ;;  %v9460_v11 = vld [vmem:[#allocation122_spill] sm:$0xff] }
 0xc75   : > { %3757 = vrot.lane.b32.xlu0 %v3565_v20, %s6177_s27  ;;  %v3575_v20 = vmul.f32 %v6063_v63, %v9436_v52  ;;  %v9454_v63 = vld [vmem:[#allocation111_spill] sm:$0xff] }
 0xc76   : > { %v8428_v38 = vpop.xlane.xlu0 %3498 }
 0xc79   : > { %3761 = vrot.lane.b32.xlu0 %v3569_v26, %s6177_s27  ;;  %v6071_v26 = vpop.eup %6070 }
 0xc7a   : > { %v3738_v18 = vpop.permute.xlu0 %3737  ;;  %v3583_v40 = vmul.f32 %v6071_v26, %v9441_v13 }
 0xc7b   : > { %5761 = vmatprep.mubr.msk.f32.mxu0 %vm3319_vm7, %v3738_v18  ;;  %v3579_v18 = vmul.f32 %v6067_v36, %v9438_v44  ;;  %v9457_v36 = vld [vmem:[#allocation116_spill] sm:$0xff] }
 0xc7d   : > { %3747 = vrot.lane.b32.xlu1 %v3555_v53, %s6177_s27  ;;  %3765 = vrot.lane.b32.xlu0 %v3573_v49, %s6177_s27  ;;  %v6073_v53 = vpop.eup %6072 }
 0xc7e   : > { %v6075_v49 = vpop.eup %6074  ;;  %v3605_v5 = vmul.f32 %v6073_v53, %v9442_v23 }
 0xc81   : > { %3749 = vrot.lane.b32.xlu1 %v3557_v3, %s6177_s27  ;;  %3769 = vrot.lane.b32.xlu0 %v3577_v58, %s6177_s27  ;;  %v6077_v3 = vpop.eup %6076  ;;  %v3587_v58 = vmul.f32 %v6075_v49, %v9443_v60  ;;  %v9461_v49 = vld [vmem:[#allocation123_spill] sm:$0xff] }
 0xc82   : > { %v6079_v57 = vpop.eup %6078  ;;  %v3609_v17 = vmul.f32 %v6077_v3, %v9444_v55  ;;  %v8541_v55 = vpop.f32.mrf.mxu0 }
 0xc83   : > { %v6081_v6 = vpop.eup %6080  ;;  %v3591_v45 = vmul.f32 %v6079_v57, %v9445_v62 }
 0xc84   : > { %v6083_v21 = vpop.eup %6082  ;;  %v8545_v62 = vpop.f32.mrf.mxu0 }
 0xc85   : > { %3751 = vrot.lane.b32.xlu1 %v3559_v50, %s6177_s27  ;;  %3773 = vrot.lane.b32.xlu0 %v3581_v19, %s6177_s27  ;;  %v9446_v50 = vld [vmem:[#allocation113_spill] sm:$0xff]  ;;  %v6085_v1 = vpop.eup %6084  ;;  %v9447_v19 = vld [vmem:[#allocation108_spill] sm:$0xff] }
 0xc86   : > { %v3613_v41 = vmul.f32 %v6081_v6, %v9446_v50  ;;  %v6087_v22 = vpop.eup %6086  ;;  %v3595_v28 = vmul.f32 %v6083_v21, %v9447_v19  ;;  %v3617_v51 = vmul.f32 %v6085_v1, %v9448_v29  ;;  %v8547_v50 = vpop.f32.mrf.mxu0 }
 0xc87   : > { %v6089_v46 = vpop.eup %6088 }
 0xc88   : > { %v6091_v7 = vpop.eup %6090  ;;  %v3621_v14 = vmul.f32 %v6089_v46, %v9450_v16  ;;  %v9464_v16 = vld [vmem:[#allocation125_spill] sm:$0xff] }
 0xc89   : > { %3755 = vrot.lane.b32.xlu1 %v3563_v12, %s6177_s27  ;;  %3777 = vrot.lane.b32.xlu0 %v3585_v34, %s6177_s27  ;;  %v3599_v34 = vmul.f32 %v6087_v22, %v9449_v25  ;;  %v6093_v32 = vpop.eup %6092  ;;  %v8549_v22 = vpop.f32.mrf.mxu0 }
 0xc8b   : > { %v3496_v33 = vpop.xlane.xlu1 %3495 }
 0xc8c   : > { %6096 = vrcp.f32 %v3496_v33 }
 0xc8d   : > { %3759 = vrot.lane.b32.xlu1 %v3567_v30, %s6177_s27  ;;  %3781 = vrot.lane.b32.xlu0 %v3589_v43, %s6177_s27  ;;  %6098 = vrcp.f32 %v8335_v39  ;;  %v6095_v39 = vpop.eup %6094  ;;  %v3625_v30 = vmul.f32 %v6093_v32, %v9451_v2  ;;  %v3603_v43 = vmul.f32 %v6091_v7, %v9452_v31 }
 0xc8e   : > { %6100 = vrcp.f32 %v8351_v37  ;;  %v9453_v37 = vld [vmem:[#allocation121_spill] sm:$0xff] }
 0xc8f   : > { %v3740_v35 = vpop.permute.xlu1 %3739  ;;  %6102 = vrcp.f32 %v8367_v9  ;;  %v9455_v9 = vld [vmem:[#allocation112_spill] sm:$0xff] }
 0xc90   : > { %5762 = vmatmul.mubr.msk.f32.gmra.mxu0 %vm3319_vm7, %v3740_v35  ;;  %6104 = vrcp.f32 %v8383_v61  ;;  %v3607_v35 = vmul.f32 %v6095_v39, %v9454_v63 }
 0xc91   : > { %3763 = vrot.lane.b32.xlu1 %v3571_v54, %s6177_s27  ;;  %3785 = vrot.lane.b32.xlu0 %v3593_v15, %s6177_s27  ;;  %6106 = vrcp.f32 %v8399_v10  ;;  %v9456_v15 = vld [vmem:[#allocation114_spill] sm:$0xff] }
 0xc92   : > { %6108 = vrcp.f32 %v8428_v38  ;;  %v9458_v10 = vld [vmem:[#allocation118_spill] sm:$0xff]  ;;  %v9459_v38 = vld [vmem:[#allocation120_spill] sm:$0xff] }
 0xc95   : > { %3767 = vrot.lane.b32.xlu1 %v3575_v20, %s6177_s27  ;;  %3789 = vrot.lane.b32.xlu0 %v3597_v4, %s6177_s27 }
 0xc99   : > { %3771 = vrot.lane.b32.xlu1 %v3579_v18, %s6177_s27  ;;  %3793 = vrot.lane.b32.xlu0 %v3601_v0, %s6177_s27  ;;  %v6097_v8 = vpop.eup %6096 }
 0xc9a   : > { %v3629_v47 = vmul.f32 %v6097_v8, %v9453_v37  ;;  %v6099_v59 = vpop.eup %6098 }
 0xc9b   : > { %v3611_v54 = vmul.f32 %v6099_v59, %v9455_v9  ;;  %v6101_v48 = vpop.eup %6100 }
 0xc9c   : > { %v3615_v61 = vmul.f32 %v6101_v48, %v9456_v15  ;;  %v6103_v56 = vpop.eup %6102  ;;  %v9465_v15 = vld [vmem:[#allocation48_spill] sm:$0xff] }
 0xc9d   : > { %3775 = vrot.lane.b32.xlu1 %v3583_v40, %s6177_s27  ;;  %3797 = vrot.lane.b32.xlu0 %v3605_v5, %s6177_s27  ;;  %v3619_v52 = vmul.f32 %v6103_v56, %v9457_v36  ;;  %v6105_v20 = vpop.eup %6104  ;;  %v9462_v40 = vld [vmem:[#allocation124_spill] sm:$0xff]  ;;  %v9466_v36 = vld [vmem:[#allocation43_spill] sm:$0xff] }
 0xc9e   : > { %v3623_v4 = vmul.f32 %v6105_v20, %v9458_v10  ;;  %v6107_v27 = vpop.eup %6106 }
 0xc9f   : > { %v3627_v44 = vmul.f32 %v6107_v27, %v9459_v38  ;;  %v6109_v18 = vpop.eup %6108  ;;  %v9468_v38 = vld [vmem:[#allocation12_spill] sm:$0xff] }
 0xca0   : > { %v3631_v0 = vmul.f32 %v6109_v18, %v9460_v11  ;;  %v9469_v18 = vld [vmem:[#allocation8_spill] sm:$0xff] }
 0xca1   : > { %3779 = vrot.lane.b32.xlu1 %v3587_v58, %s6177_s27  ;;  %3801 = vrot.lane.b32.xlu0 %v3609_v17, %s6177_s27  ;;  %v9463_v17 = vld [vmem:[#allocation126_spill] sm:$0xff] }
 0xca5   : > { %3783 = vrot.lane.b32.xlu1 %v3591_v45, %s6177_s27  ;;  %3805 = vrot.lane.b32.xlu0 %v3613_v41, %s6177_s27 }
 0xca9   : > { %3787 = vrot.lane.b32.xlu1 %v3595_v28, %s6177_s27  ;;  %3809 = vrot.lane.b32.xlu0 %v3617_v51, %s6177_s27  ;;  %v8552_v28 = vpop.f32.mrf.mxu0 }
 0xcab   : > { %v3505_v12 = vpop.xlane.xlu0 %3504  ;;  %v8555_v46 = vpop.f32.mrf.mxu0 }
 0xcac   : > { %6110 = vrcp.f32 %v3505_v12 }
 0xcad   : > { %3791 = vrot.lane.b32.xlu1 %v3599_v34, %s6177_s27  ;;  %3813 = vrot.lane.b32.xlu0 %v3621_v14, %s6177_s27  ;;  %v8557_v7 = vpop.f32.mrf.mxu0 }
 0xcaf   : > { %v3742_v33 = vpop.permute.xlu0 %3741  ;;  %v4057_v32 = vpop.f32.mrf.mxu0 }
 0xcb0   : > { %5764 = vmatprep.mubr.msk.f32.mxu0 %vm3319_vm7, %v3742_v33 }
 0xcb1   : > { %3817 = vrot.lane.b32.xlu0 %v3625_v30, %s6177_s27  ;;  %3795 = vrot.lane.b32.xlu1 %v3603_v43, %s6177_s27  ;;  %v5751_v33 = vpop.f32.mrf.mxu0 }
 0xcb3   : > { %v4067_v31 = vpop.f32.mrf.mxu0 }
 0xcb5   : > { %3821 = vrot.lane.b32.xlu0 %v3629_v47, %s6177_s27  ;;  %3799 = vrot.lane.b32.xlu1 %v3607_v35, %s6177_s27  ;;  %v5754_v43 = vpop.f32.mrf.mxu0 }
 0xcb7   : > { %v4077_v47 = vpop.f32.mrf.mxu0 }
 0xcb9   : > { %3803 = vrot.lane.b32.xlu1 %v3611_v54, %s6177_s27  ;;  %v6111_v53 = vpop.eup %6110 }
 0xcba   : > { %v3635_v23 = vmul.f32 %v6111_v53, %v9462_v40 }
 0xcbd   : > { %3807 = vrot.lane.b32.xlu1 %v3615_v61, %s6177_s27 }
 0xcc0   : > { %v3502_v42 = vpop.xlane.xlu1 %3501 }
 0xcc1   : > { %6112 = vrcp.f32 %v3502_v42  ;;  %3811 = vrot.lane.b32.xlu1 %v3619_v52, %s6177_s27  ;;  %v9467_v42 = vld [vmem:[#allocation52_spill] sm:$0xff] }
 0xcc2   : > { %v4356_v10 = vmul.f32 %v4077_v47, %v9467_v42 }
 0xcc4   : > { %v3744_v26 = vpop.permute.xlu1 %3743 }
 0xcc5   : > { %3815 = vrot.lane.b32.xlu1 %v3623_v4, %s6177_s27  ;;  %5765 = vmatmul.mubr.msk.f32.gmra.mxu0 %vm3319_vm7, %v3744_v26 }
 0xcc9   : > { %3819 = vrot.lane.b32.xlu1 %v3627_v44, %s6177_s27 }
 0xccd   : > { %3823 = vrot.lane.b32.xlu1 %v3631_v0, %s6177_s27  ;;  %v9470_v0 = vld [vmem:[#allocation46_spill] sm:$0xff] }
 0xcce   : > { %v6113_v24 = vpop.eup %6112  ;;  %v4357_v53 = vmul.f32 %v5754_v43, %v9470_v0 }
 0xccf   : > { %v3633_v13 = vmul.f32 %v6113_v24, %v9461_v49  ;;  %v9471_v49 = vld [vmem:[#allocation39_spill] sm:$0xff] }
 0xcd0   : > { %v8588_v40 = vpack.c.bf16 %v4357_v53, %v4356_v10 }
 0xcd1   : > { %3825 = vrot.lane.b32.xlu0 %v3633_v13, %s6177_s27  ;;  %3827 = vrot.lane.b32.xlu1 %v3635_v23, %s6177_s27  ;;  %v4354_v13 = vmul.f32 %v4067_v31, %v9471_v49 }
 0xce0   : > { %v3511_v5 = vpop.xlane.xlu0 %3510 }
 0xce1   : > { %6114 = vrcp.f32 %v3511_v5 }
 0xce4   : > { %v3746_v3 = vpop.permute.xlu0 %3745 }
 0xce5   : > { %5767 = vmatprep.mubr.msk.f32.mxu0 %vm3319_vm7, %v3746_v3 }
 0xce6   : > { %v5757_v35 = vpop.f32.mrf.mxu0 }
 0xce7   : > { %v4359_v52 = vmul.f32 %v5757_v35, %v9466_v36 }
 0xce8   : > { %v3754_v57 = vpop.permute.xlu0 %3753  ;;  %v4087_v54 = vpop.f32.mrf.mxu0 }
 0xce9   : > { %v4358_v61 = vmul.f32 %v4087_v54, %v9465_v15 }
 0xceb   : > { %v8578_v26 = vpack.c.bf16 %v4359_v52, %v4358_v61 }
 0xcec   : > { %v3758_v60 = vpop.permute.xlu0 %3757 }
 0xced   : > { %v4501_v5 = vunpack.c.l.bf16 %v8578_v26  ;;  %v4502_v3 = vunpack.c.h.bf16 %v8578_v26 }
 0xcee   : > { %v6115_v58 = vpop.eup %6114 }
 0xcef   : > { %v3639_v6 = vmul.f32 %v6115_v58, %v9463_v17  ;;  %v9472_v17 = vld [vmem:[#allocation64_spill] sm:$0xff] }
 0xcf0   : > { %v3762_v21 = vpop.permute.xlu0 %3761 }
 0xcf1   : > { %3831 = vrot.lane.b32.xlu1 %v3639_v6, %s6177_s27  ;;  %v4355_v6 = vmul.f32 %v5751_v33, %v9472_v17 }
 0xcf4   : > { %v3766_v45 = vpop.permute.xlu0 %3765 }
 0xcf5   : > { %v3508_v41 = vpop.xlane.xlu1 %3507 }
 0xcf6   : > { %6116 = vrcp.f32 %v3508_v41  ;;  %v9473_v41 = vld [vmem:[#allocation34_spill] sm:$0xff] }
 0xcf8   : > { %v3770_v1 = vpop.permute.xlu0 %3769 }
 0xcf9   : > { %v3748_v19 = vpop.permute.xlu1 %3747 }
 0xcfa   : > { %5768 = vmatmul.mubr.msk.f32.gmra.mxu0 %vm3319_vm7, %v3748_v19  ;;  %v8598_v19 = vpack.c.bf16 %v4355_v6, %v4354_v13 }
 0xcfc   : > { %v3774_v51 = vpop.permute.xlu0 %3773  ;;  %v4497_v31 = vunpack.c.l.bf16 %v8598_v19 }
 0xcfd   : > { %v3750_v29 = vpop.permute.xlu1 %3749 }
 0xcfe   : > { %5770 = vmatprep.mubr.msk.f32.mxu0 %vm3319_vm7, %v3750_v29  ;;  %v4499_v29 = vunpack.c.l.bf16 %v8588_v40 }
 0xd00   : > { %v3778_v34 = vpop.permute.xlu0 %3777 }
 0xd01   : > { %v3752_v12 = vpop.permute.xlu1 %3751 }
 0xd02   : > { %5771 = vmatmul.mubr.msk.f32.gmra.mxu0 %vm3319_vm7, %v3752_v12  ;;  %v4500_v12 = vunpack.c.h.bf16 %v8588_v40 }
 0xd03   : > { %v6117_v25 = vpop.eup %6116  ;;  %5773 = vmatprep.mubr.msk.f32.mxu0 %vm3319_vm7, %v3754_v57 }
 0xd04   : > { %v3637_v14 = vmul.f32 %v6117_v25, %v9464_v16  ;;  %v3782_v30 = vpop.permute.xlu0 %3781  ;;  %v4565_v25 = vsub.f32 %v4358_v61, %v4501_v5  ;;  %v4564_v47 = vsub.f32 %v4357_v53, %v4500_v12  ;;  %v4561_v61 = vsub.f32 %v4354_v13, %v4497_v31 }
 0xd05   : > { %v3756_v39 = vpop.permute.xlu1 %3755 }
 0xd06   : > { %3829 = vrot.lane.b32.xlu0 %v3637_v14, %s6177_s27  ;;  %5774 = vmatmul.mubr.msk.f32.gmra.mxu0 %vm3319_vm7, %v3756_v39  ;;  %v9474_v14 = vld [vmem:[#allocation41_spill] sm:$0xff] }
 0xd07   : > { %5776 = vmatprep.mubr.msk.f32.mxu0 %vm3319_vm7, %v3758_v60  ;;  %v4353_v39 = vmul.f32 %v8557_v7, %v9474_v14  ;;  %v9476_v7 = vld [vmem:[#allocation29_spill] sm:$0xff] }
 0xd08   : > { %v3786_v37 = vpop.permute.xlu0 %3785  ;;  %v4351_v35 = vmul.f32 %v8552_v28, %v9476_v7  ;;  %v9478_v28 = vld [vmem:[#allocation32_spill] sm:$0xff] }
 0xd09   : > { %v3760_v2 = vpop.permute.xlu1 %3759 }
 0xd0a   : > { %5777 = vmatmul.mubr.msk.f32.gmra.mxu0 %vm3319_vm7, %v3760_v2 }
 0xd0b   : > { %5779 = vmatprep.mubr.msk.f32.mxu0 %vm3319_vm7, %v3762_v21 }
 0xd0c   : > { %v3790_v9 = vpop.permute.xlu0 %3789 }
 0xd0d   : > { %v3764_v8 = vpop.permute.xlu1 %3763 }
 0xd0e   : > { %5780 = vmatmul.mubr.msk.f32.gmra.mxu0 %vm3319_vm7, %v3764_v8  ;;  %v4498_v8 = vunpack.c.h.bf16 %v8598_v19 }
 0xd0f   : > { %5782 = vmatprep.mubr.msk.f32.mxu0 %vm3319_vm7, %v3766_v45 }
 0xd10   : > { %v3794_v20 = vpop.permute.xlu0 %3793 }
 0xd11   : > { %v3768_v63 = vpop.permute.xlu1 %3767 }
 0xd12   : > { %5783 = vmatmul.mubr.msk.f32.gmra.mxu0 %vm3319_vm7, %v3768_v63 }
 0xd13   : > { %5785 = vmatprep.mubr.msk.f32.mxu0 %vm3319_vm7, %v3770_v1  ;;  %v4352_v1 = vmul.f32 %v4057_v32, %v9473_v41  ;;  %v9475_v32 = vld [vmem:[#allocation36_spill] sm:$0xff] }
 0xd14   : > { %v3798_v57 = vpop.permute.xlu0 %3797  ;;  %v4350_v2 = vmul.f32 %v8555_v46, %v9475_v32  ;;  %v9477_v46 = vld [vmem:[#allocation25_spill] sm:$0xff] }
 0xd15   : > { %v3772_v59 = vpop.permute.xlu1 %3771 }
 0xd16   : > { %5786 = vmatmul.mubr.msk.f32.gmra.mxu0 %vm3319_vm7, %v3772_v59  ;;  %v4348_v59 = vmul.f32 %v8549_v22, %v9477_v46  ;;  %v9479_v22 = vld [vmem:[#allocation27_spill] sm:$0xff] }
 0xd17   : > { %5788 = vmatprep.mubr.msk.f32.mxu0 %vm3319_vm7, %v3774_v51  ;;  %v4346_v42 = vmul.f32 %v8545_v62, %v9479_v22 }
 0xd18   : > { %v3802_v33 = vpop.permute.xlu0 %3801 }
 0xd19   : > { %v3776_v48 = vpop.permute.xlu1 %3775 }
 0xd1a   : > { %5789 = vmatmul.mubr.msk.f32.gmra.mxu0 %vm3319_vm7, %v3776_v48 }
 0xd1b   : > { %v5760_v56 = vpop.f32.mrf.mxu0  ;;  %5791 = vmatprep.mubr.msk.f32.mxu0 %vm3319_vm7, %v3778_v34  ;;  %v4566_v34 = vsub.f32 %v4359_v52, %v4502_v3 }
 0xd1c   : > { %v4361_v44 = vmul.f32 %v5760_v56, %v9468_v38  ;;  %v4562_v56 = vsub.f32 %v4355_v6, %v4498_v8  ;;  %v3806_v52 = vpop.permute.xlu0 %3805 }
 0xd1d   : > { %v3780_v4 = vpop.permute.xlu1 %3779  ;;  %v4097_v27 = vpop.f32.mrf.mxu0  ;;  %v4623_v63 = vpack.c.bf16 %v4566_v34, %v4565_v25 }
 0xd1e   : > { %v4360_v11 = vmul.f32 %v4097_v27, %v9469_v18  ;;  %5792 = vmatmul.mubr.msk.f32.gmra.mxu0 %vm3319_vm7, %v3780_v4 }
 0xd1f   : > { %5794 = vmatprep.mubr.msk.f32.mxu0 %vm3319_vm7, %v3782_v30  ;;  %v8609_v30 = vpack.c.bf16 %v4353_v39, %v4352_v1 }
 0xd20   : > { %v8585_v24 = vpack.c.bf16 %v4361_v44, %v4360_v11  ;;  %v3810_v53 = vpop.permute.xlu0 %3809 }
 0xd21   : > { %v3784_v23 = vpop.permute.xlu1 %3783  ;;  %v4495_v54 = vunpack.c.l.bf16 %v8609_v30  ;;  %v4496_v15 = vunpack.c.h.bf16 %v8609_v30 }
 0xd22   : > { %v4503_v60 = vunpack.c.l.bf16 %v8585_v24  ;;  %v4504_v58 = vunpack.c.h.bf16 %v8585_v24  ;;  %5795 = vmatmul.mubr.msk.f32.gmra.mxu0 %vm3319_vm7, %v3784_v23 }
 0xd23   : > { %5797 = vmatprep.mubr.msk.f32.mxu0 %vm3319_vm7, %v3786_v37  ;;  %v4563_v37 = vsub.f32 %v4356_v10, %v4499_v29  ;;  %v4560_v18 = vsub.f32 %v4353_v39, %v4496_v15 }
 0xd24   : > { %v4567_v21 = vsub.f32 %v4360_v11, %v4503_v60  ;;  %v4568_v45 = vsub.f32 %v4361_v44, %v4504_v58  ;;  %v4559_v44 = vsub.f32 %v4352_v1, %v4495_v54  ;;  %v4621_v11 = vpack.c.bf16 %v4562_v56, %v4561_v61 }
 0xd25   : > { %v3788_v51 = vpop.permute.xlu1 %3787  ;;  %v4622_v36 = vpack.c.bf16 %v4564_v47, %v4563_v37 }
 0xd26   : > { %v4624_v16 = vpack.c.bf16 %v4568_v45, %v4567_v21  ;;  %5798 = vmatmul.mubr.msk.f32.gmra.mxu0 %vm3319_vm7, %v3788_v51  ;;  %v3814_v45 = vpop.permute.xlu0 %3813 }
 0xd27   : > { %5800 = vmatprep.mubr.msk.f32.mxu0 %vm3319_vm7, %v3790_v9  ;;  %v8620_v9 = vpack.c.bf16 %v4351_v35, %v4350_v2 }
 0xd28   : > { %4695 = vrot.lane.b32.xlu1 %v4624_v16, %s6175_s26 }
 0xd29   : > { %v3792_v43 = vpop.permute.xlu1 %3791  ;;  %v4493_v4 = vunpack.c.l.bf16 %v8620_v9  ;;  %v4494_v38 = vunpack.c.h.bf16 %v8620_v9 }
 0xd2a   : > { %5801 = vmatmul.mubr.msk.f32.gmra.mxu0 %vm3319_vm7, %v3792_v43  ;;  %v3818_v12 = vpop.permute.xlu0 %3817 }
 0xd2b   : > { %5803 = vmatprep.mubr.msk.f32.mxu0 %vm3319_vm7, %v3794_v20  ;;  %v4349_v20 = vmul.f32 %v8547_v50, %v9478_v28  ;;  %v9480_v50 = vld [vmem:[#allocation21_spill] sm:$0xff]  ;;  %v4557_v5 = vsub.f32 %v4350_v2, %v4493_v4  ;;  %v4558_v3 = vsub.f32 %v4351_v35, %v4494_v38 }
 0xd2c   : > { %4693 = vrot.lane.b32.xlu1 %v4623_v63, %s6175_s26  ;;  %v4347_v0 = vmul.f32 %v8541_v55, %v9480_v50 }
 0xd2d   : > { %v3796_v48 = vpop.permute.xlu1 %3795  ;;  %v8631_v10 = vpack.c.bf16 %v4349_v20, %v4348_v59  ;;  %v4619_v21 = vpack.c.bf16 %v4558_v3, %v4557_v5 }
 0xd2e   : > { %5804 = vmatmul.mubr.msk.f32.gmra.mxu0 %vm3319_vm7, %v3796_v48  ;;  %v8640_v62 = vpack.c.bf16 %v4347_v0, %v4346_v42  ;;  %v3822_v14 = vpop.permute.xlu0 %3821 }
 0xd2f   : > { %5806 = vmatprep.mubr.msk.f32.mxu0 %vm3319_vm7, %v3798_v57  ;;  %v4491_v49 = vunpack.c.l.bf16 %v8631_v10  ;;  %v4492_v23 = vunpack.c.h.bf16 %v8631_v10  ;;  %v4620_v57 = vpack.c.bf16 %v4560_v18, %v4559_v44  ;;  %v9484_v44 = vld [vmem:[#allocation33_spill] sm:$0xff] }
 0xd30   : > { %4691 = vrot.lane.b32.xlu1 %v4622_v36, %s6175_s26  ;;  %v4489_v55 = vunpack.c.l.bf16 %v8640_v62  ;;  %v4490_v58 = vunpack.c.h.bf16 %v8640_v62  ;;  %v9481_v36 = vld [vmem:[#allocation19_spill] sm:$0xff] }
 0xd31   : > { %v3800_v27 = vpop.permute.xlu1 %3799  ;;  %v4555_v17 = vsub.f32 %v4348_v59, %v4491_v49  ;;  %v4556_v6 = vsub.f32 %v4349_v20, %v4492_v23  ;;  %v9482_v20 = vld [vmem:[#allocation30_spill] sm:$0xff]  ;;  %v9487_v23 = vld [vmem:[#allocation15_spill] sm:$0xff] }
 0xd32   : > { %5807 = vmatmul.mubr.msk.f32.gmra.mxu0 %vm3319_vm7, %v3800_v27  ;;  %v4553_v1 = vsub.f32 %v4346_v42, %v4489_v55  ;;  %v4554_v29 = vsub.f32 %v4347_v0, %v4490_v58  ;;  %v9483_v42 = vld [vmem:[#allocation17_spill] sm:$0xff]  ;;  %v9486_v0 = vld [vmem:[#allocation26_spill] sm:$0xff] }
 0xd33   : > { %5809 = vmatprep.mubr.msk.f32.mxu0 %vm3319_vm7, %v3802_v33  ;;  %v4618_v51 = vpack.c.bf16 %v4556_v6, %v4555_v17  ;;  %v9488_v6 = vld [vmem:[#allocation23_spill] sm:$0xff] }
 0xd34   : > { %4689 = vrot.lane.b32.xlu1 %v4621_v11, %s6175_s26  ;;  %v4617_v34 = vpack.c.bf16 %v4554_v29, %v4553_v1  ;;  %v9485_v11 = vld [vmem:[#allocation22_spill] sm:$0xff]  ;;  %v9489_v29 = vld [vmem:[#allocation13_spill] sm:$0xff] }
 0xd35   : > { %v3804_v13 = vpop.permute.xlu1 %3803 }
 0xd36   : > { %5810 = vmatmul.mubr.msk.f32.gmra.mxu0 %vm3319_vm7, %v3804_v13 }
 0xd37   : > { %5812 = vmatprep.mubr.msk.f32.mxu0 %vm3319_vm7, %v3806_v52 }
 0xd38   : > { %4687 = vrot.lane.b32.xlu1 %v4620_v57, %s6175_s26 }
 0xd39   : > { %v3808_v60 = vpop.permute.xlu1 %3807 }
 0xd3a   : > { %5813 = vmatmul.mubr.msk.f32.gmra.mxu0 %vm3319_vm7, %v3808_v60 }
 0xd3b   : > { %5815 = vmatprep.mubr.msk.f32.mxu0 %vm3319_vm7, %v3810_v53 }
 0xd3c   : > { %4685 = vrot.lane.b32.xlu1 %v4619_v21, %s6175_s26 }
 0xd3d   : > { %v3812_v41 = vpop.permute.xlu1 %3811 }
 0xd3e   : > { %5816 = vmatmul.mubr.msk.f32.gmra.mxu0 %vm3319_vm7, %v3812_v41 }
 0xd3f   : > { %5818 = vmatprep.mubr.msk.f32.mxu0 %vm3319_vm7, %v3814_v45 }
 0xd40   : > { %4683 = vrot.lane.b32.xlu1 %v4618_v51, %s6175_s26 }
 0xd41   : > { %v3816_v25 = vpop.permute.xlu1 %3815 }
 0xd42   : > { %5819 = vmatmul.mubr.msk.f32.gmra.mxu0 %vm3319_vm7, %v3816_v25 }
 0xd43   : > { %5821 = vmatprep.mubr.msk.f32.mxu0 %vm3319_vm7, %v3818_v12  ;;  %v3826_v33 = vpop.permute.xlu0 %3825 }
 0xd44   : > { %4681 = vrot.lane.b32.xlu1 %v4617_v34, %s6175_s26 }
 0xd45   : > { %v3820_v16 = vpop.permute.xlu1 %3819 }
 0xd46   : > { %5822 = vmatmul.mubr.msk.f32.gmra.mxu0 %vm3319_vm7, %v3820_v16 }
 0xd47   : > { %5824 = vmatprep.mubr.msk.f32.mxu0 %vm3319_vm7, %v3822_v14 }
 0xd49   : > { %v3824_v39 = vpop.permute.xlu1 %3823 }
 0xd4a   : > { %5825 = vmatmul.mubr.msk.f32.gmra.mxu0 %vm3319_vm7, %v3824_v39 }
 0xd4b   : > { %5827 = vmatprep.mubr.msk.f32.mxu0 %vm3319_vm7, %v3826_v33 }
 0xd4d   : > { %v3828_v32 = vpop.permute.xlu1 %3827 }
 0xd4e   : > { %5828 = vmatmul.mubr.msk.f32.gmra.mxu0 %vm3319_vm7, %v3828_v32  ;;  %v9490_v32 = vld [vmem:[#allocation20_spill] sm:$0xff] }
 0xd50   : > { %v8665_v43 = vpop.f32.mrf.mxu0 }
 0xd52   : > { %v8667_v8 = vpop.f32.mrf.mxu0 }
 0xd63   : > { %v3832_v31 = vpop.permute.xlu1 %3831 }
 0xd78   : > { %v3830_v2 = vpop.permute.xlu0 %3829 }
 0xd79   : > { %5830 = vmatprep.mubr.msk.f32.mxu0 %vm3319_vm7, %v3830_v2 }
 0xd7a   : > { %5831 = vmatmul.mubr.msk.f32.gmra.mxu0 %vm3319_vm7, %v3832_v31 }
 0xd85   : > { %v8669_v37 = vpop.f32.mrf.mxu0 }
 0xd87   : > { %v4117_v47 = vpop.f32.mrf.mxu0 }
 0xdba   : > { %v5769_v63 = vpop.f32.mrf.mxu0 }
 0xdbc   : > { %v4127_v7 = vpop.f32.mrf.mxu0 }
 0xdc2   : > { %v5772_v35 = vpop.f32.mrf.mxu0 }
 0xdc3   : > { %v4369_v2 = vmul.f32 %v5772_v35, %v9490_v32 }
 0xdc4   : > { %v4137_v46 = vpop.f32.mrf.mxu0 }
 0xdc5   : > { %v4368_v51 = vmul.f32 %v4137_v46, %v9489_v29 }
 0xdc6   : > { %v5775_v59 = vpop.f32.mrf.mxu0 }
 0xdc7   : > { %v4371_v21 = vmul.f32 %v5775_v59, %v9488_v6  ;;  %v9491_v59 = vld [vmem:[#allocation11_spill] sm:$0xff]  ;;  %v8707_v46 = vpack.c.bf16 %v4369_v2, %v4368_v51 }
 0xdc8   : > { %v4147_v54 = vpop.f32.mrf.mxu0 }
 0xdc9   : > { %v4370_v5 = vmul.f32 %v4147_v54, %v9487_v23  ;;  %v4366_v54 = vmul.f32 %v4127_v7, %v9491_v59  ;;  %v9495_v23 = vld [vmem:[#allocation9_spill] sm:$0xff] }
 0xdca   : > { %v5778_v48 = vpop.f32.mrf.mxu0 }
 0xdcb   : > { %v4373_v53 = vmul.f32 %v5778_v48, %v9486_v0  ;;  %v8696_v12 = vpack.c.bf16 %v4371_v21, %v4370_v5  ;;  %v9494_v0 = vld [vmem:[#allocation16_spill] sm:$0xff] }
 0xdcc   : > { %v4157_v15 = vpop.f32.mrf.mxu0 }
 0xdcd   : > { %v4372_v4 = vmul.f32 %v4157_v15, %v9483_v42  ;;  %v4513_v48 = vunpack.c.l.bf16 %v8696_v12 }
 0xdce   : > { %v5781_v61 = vpop.f32.mrf.mxu0 }
 0xdcf   : > { %v4375_v22 = vmul.f32 %v5781_v61, %v9482_v20  ;;  %v8684_v3 = vpack.c.bf16 %v4373_v53, %v4372_v4  ;;  %v4514_v61 = vunpack.c.h.bf16 %v8696_v12 }
 0xdd0   : > { %v4167_v56 = vpop.f32.mrf.mxu0 }
 0xdd1   : > { %v4374_v52 = vmul.f32 %v4167_v56, %v9481_v36  ;;  %v4515_v25 = vunpack.c.l.bf16 %v8684_v3  ;;  %v4516_v16 = vunpack.c.h.bf16 %v8684_v3 }
 0xdd2   : > { %v5784_v28 = vpop.f32.mrf.mxu0 }
 0xdd3   : > { %v8674_v38 = vpack.c.bf16 %v4375_v22, %v4374_v52  ;;  %v4377_v18 = vmul.f32 %v5784_v28, %v9484_v44  ;;  %v4579_v56 = vsub.f32 %v4372_v4, %v4515_v25  ;;  %v4580_v36 = vsub.f32 %v4373_v53, %v4516_v16  ;;  %v9492_v28 = vld [vmem:[#allocation18_spill] sm:$0xff] }
 0xdd4   : > { %v4177_v27 = vpop.f32.mrf.mxu0  ;;  %v4367_v20 = vmul.f32 %v5769_v63, %v9492_v28  ;;  %v4365_v53 = vmul.f32 %v8669_v37, %v9494_v0  ;;  %v9498_v28 = vld [vmem:[#allocation55_spill] sm:$0xff] }
 0xdd5   : > { %v4376_v50 = vmul.f32 %v4177_v27, %v9485_v11  ;;  %v4517_v55 = vunpack.c.l.bf16 %v8674_v38  ;;  %v4518_v60 = vunpack.c.h.bf16 %v8674_v38  ;;  %v4511_v27 = vunpack.c.l.bf16 %v8707_v46  ;;  %v9500_v0 = vld [vmem:[#allocation51_spill] sm:$0xff] }
 0xdd6   : > { %v8679_v49 = vpop.f32.mrf.mxu0  ;;  %v8718_v7 = vpack.c.bf16 %v4367_v20, %v4366_v54  ;;  %v4577_v11 = vsub.f32 %v4370_v5, %v4513_v48  ;;  %v4630_v4 = vpack.c.bf16 %v4580_v36, %v4579_v56  ;;  %v9497_v56 = vld [vmem:[#allocation45_spill] sm:$0xff] }
 0xdd7   : > { %v8681_v13 = vpack.c.bf16 %v4377_v18, %v4376_v50  ;;  %v4581_v14 = vsub.f32 %v4374_v52, %v4517_v55  ;;  %v4582_v39 = vsub.f32 %v4375_v22, %v4518_v60  ;;  %v9493_v22 = vld [vmem:[#allocation10_spill] sm:$0xff]  ;;  %v4362_v55 = vmul.f32 %v8667_v8, %v9495_v23 }
 0xdd8   : > { %v8686_v57 = vpop.f32.mrf.mxu0  ;;  %v4364_v42 = vmul.f32 %v4117_v47, %v9493_v22  ;;  %v4509_v60 = vunpack.c.l.bf16 %v8718_v7  ;;  %v4575_v6 = vsub.f32 %v4368_v51, %v4511_v27  ;;  %v9499_v27 = vld [vmem:[#allocation42_spill] sm:$0xff] }
 0xdd9   : > { %v4519_v58 = vunpack.c.l.bf16 %v8681_v13  ;;  %v4520_v17 = vunpack.c.h.bf16 %v8681_v13  ;;  %v4631_v52 = vpack.c.bf16 %v4582_v39, %v4581_v14 }
 0xdda   : > { %v8693_v45 = vpop.f32.mrf.mxu0  ;;  %v8727_v47 = vpack.c.bf16 %v4365_v53, %v4364_v42  ;;  %v4573_v14 = vsub.f32 %v4366_v54, %v4509_v60  ;;  %v9502_v60 = vld [vmem:[#allocation53_spill] sm:$0xff] }
 0xddb   : > { %v4583_v41 = vsub.f32 %v4376_v50, %v4519_v58  ;;  %v4584_v1 = vsub.f32 %v4377_v18, %v4520_v17  ;;  %v4512_v18 = vunpack.c.h.bf16 %v8707_v46  ;;  %v4578_v50 = vsub.f32 %v4371_v21, %v4514_v61 }
 0xddc   : > { %v8699_v34 = vpop.f32.mrf.mxu0  ;;  %v4510_v17 = vunpack.c.h.bf16 %v8718_v7  ;;  %v4507_v8 = vunpack.c.l.bf16 %v8727_v47  ;;  %v4508_v16 = vunpack.c.h.bf16 %v8727_v47 }
 0xddd   : > { %v4632_v33 = vpack.c.bf16 %v4584_v1, %v4583_v41  ;;  %v4576_v5 = vsub.f32 %v4369_v2, %v4512_v18  ;;  %v4629_v21 = vpack.c.bf16 %v4578_v50, %v4577_v11  ;;  %v9496_v41 = vld [vmem:[#allocation14_spill] sm:$0xff] }
 0xdde   : > { %v8703_v31 = vpop.f32.mrf.mxu0  ;;  %v4363_v1 = vmul.f32 %v8665_v43, %v9496_v41  ;;  %v4574_v39 = vsub.f32 %v4367_v20, %v4510_v17  ;;  %v4571_v59 = vsub.f32 %v4364_v42, %v4507_v8  ;;  %v4572_v48 = vsub.f32 %v4365_v53, %v4508_v16  ;;  %v9501_v42 = vld [vmem:[#allocation62_spill] sm:$0xff] }
 0xddf   : > { %4711 = vrot.lane.b32.xlu0 %v4632_v33, %s6175_s26  ;;  %v4628_v33 = vpack.c.bf16 %v4576_v5, %v4575_v6 }
 0xde0   : > { %v8710_v15 = vpop.f32.mrf.mxu0  ;;  %v8734_v29 = vpack.c.bf16 %v4363_v1, %v4362_v55  ;;  %v4627_v61 = vpack.c.bf16 %v4574_v39, %v4573_v14  ;;  %v4626_v50 = vpack.c.bf16 %v4572_v48, %v4571_v59  ;;  %v9504_v14 = vld [vmem:[#allocation50_spill] sm:$0xff] }
 0xde2   : > { %v8714_v35 = vpop.f32.mrf.mxu0  ;;  %v4505_v51 = vunpack.c.l.bf16 %v8734_v29  ;;  %v4506_v43 = vunpack.c.h.bf16 %v8734_v29 }
 0xde3   : > { %4709 = vrot.lane.b32.xlu0 %v4631_v52, %s6175_s26 }
 0xde4   : > { %v4217_v44 = vpop.f32.mrf.mxu0  ;;  %v4569_v54 = vsub.f32 %v4362_v55, %v4505_v51  ;;  %v4570_v20 = vsub.f32 %v4363_v1, %v4506_v43 }
 0xde6   : > { %v5799_v63 = vpop.f32.mrf.mxu0  ;;  %v4625_v5 = vpack.c.bf16 %v4570_v20, %v4569_v54 }
 0xde7   : > { %4707 = vrot.lane.b32.xlu0 %v4630_v4, %s6175_s26  ;;  %v4387_v39 = vmul.f32 %v5799_v63, %v9504_v14  ;;  %v9507_v63 = vld [vmem:[#allocation31_spill] sm:$0xff] }
 0xde8   : > { %v4227_v58 = vpop.f32.mrf.mxu0 }
 0xdea   : > { %v5802_v37 = vpop.f32.mrf.mxu0 }
 0xdeb   : > { %4705 = vrot.lane.b32.xlu0 %v4629_v21, %s6175_s26  ;;  %v4389_v17 = vmul.f32 %v5802_v37, %v9502_v60  ;;  %v9503_v21 = vld [vmem:[#allocation38_spill] sm:$0xff] }
 0xdec   : > { %v4237_v25 = vpop.f32.mrf.mxu0  ;;  %v4386_v55 = vmul.f32 %v4227_v58, %v9503_v21 }
 0xded   : > { %v4388_v18 = vmul.f32 %v4237_v25, %v9499_v27 }
 0xdee   : > { %v5805_v32 = vpop.f32.mrf.mxu0  ;;  %v8763_v43 = vpack.c.bf16 %v4387_v39, %v4386_v55 }
 0xdef   : > { %4703 = vrot.lane.b32.xlu0 %v4628_v33, %s6175_s26  ;;  %v4391_v22 = vmul.f32 %v5805_v32, %v9498_v28  ;;  %v8754_v41 = vpack.c.bf16 %v4389_v17, %v4388_v18  ;;  %v9505_v32 = vld [vmem:[#allocation35_spill] sm:$0xff]  ;;  %v4382_v28 = vmul.f32 %v8710_v15, %v9507_v63 }
 0xdf0   : > { %v4247_v2 = vpop.f32.mrf.mxu0  ;;  %v4384_v51 = vmul.f32 %v4217_v44, %v9505_v32  ;;  %v4529_v44 = vunpack.c.l.bf16 %v8763_v43  ;;  %v4530_v20 = vunpack.c.h.bf16 %v8763_v43 }
 0xdf1   : > { %v4390_v36 = vmul.f32 %v4247_v2, %v9497_v56  ;;  %v4531_v58 = vunpack.c.l.bf16 %v8754_v41  ;;  %v4532_v2 = vunpack.c.h.bf16 %v8754_v41  ;;  %v9506_v56 = vld [vmem:[#allocation47_spill] sm:$0xff] }
 0xdf2   : > { %v5808_v52 = vpop.f32.mrf.mxu0  ;;  %v4593_v60 = vsub.f32 %v4386_v55, %v4529_v44 }
 0xdf3   : > { %4701 = vrot.lane.b32.xlu0 %v4627_v61, %s6175_s26  ;;  %v8745_v4 = vpack.c.bf16 %v4391_v22, %v4390_v36  ;;  %v4393_v23 = vmul.f32 %v5808_v52, %v9500_v0  ;;  %v4385_v52 = vmul.f32 %v8714_v35, %v9506_v56  ;;  %v4595_v27 = vsub.f32 %v4388_v18, %v4531_v58  ;;  %v9509_v35 = vld [vmem:[#allocation28_spill] sm:$0xff] }
 0xdf4   : > { %v4257_v11 = vpop.f32.mrf.mxu0  ;;  %v4594_v18 = vsub.f32 %v4387_v39, %v4530_v20 }
 0xdf5   : > { %v4392_v53 = vmul.f32 %v4257_v11, %v9501_v42  ;;  %v4533_v1 = vunpack.c.l.bf16 %v8745_v4  ;;  %v4534_v8 = vunpack.c.h.bf16 %v8745_v4  ;;  %v8772_v54 = vpack.c.bf16 %v4385_v52, %v4384_v51 }
 0xdf6   : > { %v4596_v11 = vsub.f32 %v4389_v17, %v4532_v2  ;;  %v8778_v0 = vpop.f32.mrf.mxu0  ;;  %v4637_v39 = vpack.c.bf16 %v4594_v18, %v4593_v60  ;;  %v9516_v60 = vlaneseq }
 0xdf7   : > { %v8750_v6 = vpack.c.bf16 %v4393_v23, %v4392_v53  ;;  %4699 = vrot.lane.b32.xlu0 %v4626_v50, %s6175_s26  ;;  %v4597_v59 = vsub.f32 %v4390_v36, %v4533_v1  ;;  %v4598_v48 = vsub.f32 %v4391_v22, %v4534_v8  ;;  %v9508_v36 = vld [vmem:[#allocation44_spill] sm:$0xff]  ;;  %v4527_v42 = vunpack.c.l.bf16 %v8772_v54 }
 0xdf8   : > { %v4383_v22 = vmul.f32 %v8703_v31, %v9508_v36  ;;  %v4638_v17 = vpack.c.bf16 %v4596_v11, %v4595_v27  ;;  %v8789_v31 = vpop.f32.mrf.mxu0  ;;  %v9512_v1 = vld [vmem:[#allocation24_spill] sm:$0xff]  ;;  %v8818_v18 = vshrl.u32 %v9516_v60, 7 }
 0xdf9   : > { %v4535_v25 = vunpack.c.l.bf16 %v8750_v6  ;;  %v4536_v16 = vunpack.c.h.bf16 %v8750_v6  ;;  %v4639_v50 = vpack.c.bf16 %v4598_v48, %v4597_v59  ;;  %v4378_v8 = vmul.f32 %v8686_v57, %v9512_v1 }
 0xdfa   : > { %v8783_v15 = vpack.c.bf16 %v4383_v22, %v4382_v28  ;;  %v4591_v14 = vsub.f32 %v4384_v51, %v4527_v42  ;;  %v8829_v1 = vadd.s32 8, %v8818_v18 }
 0xdfb   : > { %v4599_v37 = vsub.f32 %v4392_v53, %v4535_v25  ;;  %v4600_v33 = vsub.f32 %v4393_v23, %v4536_v16  ;;  %4697 = vrot.lane.b32.xlu0 %v4625_v5, %s6175_s26  ;;  %v4380_v23 = vmul.f32 %v8699_v34, %v9509_v35  ;;  %v4528_v53 = vunpack.c.h.bf16 %v8772_v54  ;;  %v9511_v5 = vld [vmem:[#allocation40_spill] sm:$0xff] }
 0xdfc   : > { %9510 = vst [vmem:[#allocation68_spill] sm:$0xff] %v8783_v15  ;;  %v4381_v21 = vmul.f32 %v8693_v45, %v9511_v5  ;;  %v4525_v25 = vunpack.c.l.bf16 %v8783_v15  ;;  %v4526_v16 = vunpack.c.h.bf16 %v8783_v15  ;;  %v8800_v45 = vpop.f32.mrf.mxu0  ;;  %v8826_v5 = vld [vmem:[%s300_s16] sm:$0xf]  ;;  %v9527_v15 = vld [vmem:[#allocation72_spill] sm:$0xff] }
 0xdfd   : > { %v4640_v61 = vpack.c.bf16 %v4600_v33, %v4599_v37  ;;  %v4592_v55 = vsub.f32 %v4385_v52, %v4528_v53  ;;  %v9514_v37 = vld [vmem:[#allocation37_spill] sm:$0xff] }
 0xdfe   : > { %v8794_v34 = vpack.c.bf16 %v4381_v21, %v4380_v23  ;;  %v4379_v33 = vmul.f32 %v8679_v49, %v9514_v37  ;;  %v4589_v2 = vsub.f32 %v4382_v28, %v4525_v25  ;;  %v4590_v59 = vsub.f32 %v4383_v22, %v4526_v16  ;;  %v9518_v37 = vld [vmem:[#allocation87_spill] sm:$0xff] }
 0xdff   : > { %4727 = vrot.lane.b32.xlu1 %v4640_v61, %s6175_s26  ;;  %v4636_v48 = vpack.c.bf16 %v4592_v55, %v4591_v14  ;;  %v8807_v61 = vpop.f32.mrf.mxu0  ;;  %v9152_v16 = vmov 1.0|1.0   ;;  %v9517_v14 = vld [vmem:[#allocation88_spill] sm:$0xff] }
 0xe00   : > { %9513 = vst [vmem:[#allocation73_spill] sm:$0xff] %v8794_v34  ;;  %v8803_v32 = vpack.c.bf16 %v4379_v33, %v4378_v8  ;;  %v4523_v57 = vunpack.c.l.bf16 %v8794_v34  ;;  %v4524_v58 = vunpack.c.h.bf16 %v8794_v34  ;;  %v4635_v63 = vpack.c.bf16 %v4590_v59, %v4589_v2 }
 0xe01   : > { %v8812_v44 = vpop.f32.mrf.mxu0 }
 0xe02   : > { %9515 = vst [vmem:[#allocation74_spill] sm:$0xff] %v8803_v32  ;;  %v4521_v51 = vunpack.c.l.bf16 %v8803_v32  ;;  %v4522_v49 = vunpack.c.h.bf16 %v8803_v32  ;;  %v4587_v56 = vsub.f32 %v4380_v23, %v4523_v57  ;;  %v4588_v52 = vsub.f32 %v4381_v21, %v4524_v58  ;;  %v9519_v57 = vld [vmem:[#allocation84_spill] sm:$0xff] }
 0xe03   : > { %4725 = vrot.lane.b32.xlu1 %v4639_v50, %s6175_s26  ;;  %v4287_v11 = vpop.f32.mrf.mxu0 }
 0xe04   : > { %v4585_v20 = vsub.f32 %v4378_v8, %v4521_v51  ;;  %v4586_v28 = vsub.f32 %v4379_v33, %v4522_v49  ;;  %v4634_v27 = vpack.c.bf16 %v4588_v52, %v4587_v56  ;;  %v9521_v49 = vld [vmem:[#allocation92_spill] sm:$0xff]  ;;  %v9522_v52 = vld [vmem:[#allocation83_spill] sm:$0xff] }
 0xe05   : > { %v5820_v36 = vpop.f32.mrf.mxu0 }
 0xe06   : > { %v4633_v50 = vpack.c.bf16 %v4586_v28, %v4585_v20  ;;  %v9523_v28 = vld [vmem:[#allocation80_spill] sm:$0xff] }
 0xe07   : > { %4723 = vrot.lane.b32.xlu1 %v4638_v17, %s6175_s26  ;;  %v4297_v22 = vpop.f32.mrf.mxu0  ;;  %v4419_v17 = vsub.s32 1, %v8818_v18 }
 0xe09   : > { %v5823_v35 = vpop.f32.mrf.mxu0  ;;  %v4420_v8 = vrot.slane %v8826_v5, %v4419_v17 }
 0xe0b   : > { %4721 = vrot.lane.b32.xlu1 %v4637_v39, %s6175_s26  ;;  %v4307_v23 = vpop.f32.mrf.mxu0  ;;  %vm4430_vm15 = vcmp.eq.s32.totalorder %v8818_v18, %v4420_v8  ;;  %vm4434_vm0 = vcmp.eq.s32.totalorder %v8829_v1, %v4420_v8  ;;  %v4696_v8 = vpop.permute.xlu1 %4695 }
 0xe0c   : > { %vm5341_vm1 = vmpackc.low %vm4434_vm0, %vm4430_vm15 }
 0xe0d   : > { %v5826_v42 = vpop.f32.mrf.mxu0  ;;  %5342 = vmatprep.mubr.msk.bf16.mxu1 %vm5341_vm1, %v9152_v16  ;;  %v9526_v16 = vld [vmem:[#allocation75_spill] sm:$0xff] }
 0xe0e   : > { %v4401_v32 = vmul.f32 %v5820_v36, %v9526_v16  ;;  %v9529_v36 = vld [vmem:[#allocation70_spill] sm:$0xff] }
 0xe0f   : > { %4719 = vrot.lane.b32.xlu1 %v4636_v48, %s6175_s26  ;;  %v4317_v53 = vpop.f32.mrf.mxu0  ;;  %v9520_v48 = vld [vmem:[#allocation91_spill] sm:$0xff]  ;;  %v4694_v34 = vpop.permute.xlu1 %4693  ;;  %v4396_v16 = vmul.f32 %v8807_v61, %v9529_v36 }
 0xe10   : > { %v4404_v58 = vmul.f32 %v4317_v53, %v9519_v57 }
 0xe11   : > { %v5829_v21 = vpop.f32.mrf.mxu0 }
 0xe12   : > { %v4407_v33 = vmul.f32 %v5829_v21, %v9518_v37 }
 0xe13   : > { %4717 = vrot.lane.b32.xlu1 %v4635_v63, %s6175_s26  ;;  %v4327_v25 = vpop.f32.mrf.mxu0  ;;  %v4405_v63 = vmul.f32 %v5826_v42, %v9522_v52  ;;  %v9525_v42 = vld [vmem:[#allocation76_spill] sm:$0xff] }
 0xe14   : > { %v4406_v55 = vmul.f32 %v4327_v25, %v9517_v14  ;;  %v9524_v25 = vld [vmem:[#allocation79_spill] sm:$0xff]  ;;  %v4400_v57 = vmul.f32 %v4297_v22, %v9525_v42 }
 0xe15   : > { %v4403_v14 = vmul.f32 %v5823_v35, %v9524_v25  ;;  %v4398_v35 = vmul.f32 %v4287_v11, %v9527_v15  ;;  %v9528_v42 = vld [vmem:[#allocation71_spill] sm:$0xff] }
 0xe16   : > { %v8838_v59 = vpack.c.bf16 %v4407_v33, %v4406_v55 }
 0xe17   : > { %4715 = vrot.lane.b32.xlu1 %v4634_v27, %s6175_s26  ;;  %v4402_v27 = vmul.f32 %v4307_v23, %v9523_v28 }
 0xe18   : > { %v4549_v60 = vunpack.c.l.bf16 %v8838_v59  ;;  %v4550_v17 = vunpack.c.h.bf16 %v8838_v59 }
 0xe1a   : > { %v4614_v52 = vsub.f32 %v4407_v33, %v4550_v17 }
 0xe1b   : > { %4713 = vrot.lane.b32.xlu1 %v4633_v50, %s6175_s26  ;;  %v8846_v50 = vpack.c.bf16 %v4405_v63, %v4404_v58 }
 0xe1d   : > { %v4547_v23 = vunpack.c.l.bf16 %v8846_v50 }
 0xe3a   : > { %v5832_v39 = vpop.f32.mrf.mxu0 }
 0xe3b   : > { %v4409_v51 = vmul.f32 %v5832_v39, %v9520_v48  ;;  %v4548_v48 = vunpack.c.h.bf16 %v8846_v50 }
 0xe3c   : > { %v4337_v2 = vpop.f32.mrf.mxu0 }
 0xe3d   : > { %v4408_v56 = vmul.f32 %v4337_v2, %v9521_v49  ;;  %v8854_v2 = vpack.c.bf16 %v4403_v14, %v4402_v27  ;;  %v4613_v49 = vsub.f32 %v4406_v55, %v4549_v60  ;;  %v4399_v55 = vmul.f32 %v8812_v44, %v9528_v42  ;;  %v9531_v44 = vld [vmem:[#allocation63_spill] sm:$0xff] }
 0xe3f   : > { %v8843_v20 = vpack.c.bf16 %v4409_v51, %v4408_v56  ;;  %v4545_v22 = vunpack.c.l.bf16 %v8854_v2  ;;  %v4647_v25 = vpack.c.bf16 %v4614_v52, %v4613_v49  ;;  %v8870_v33 = vpack.c.bf16 %v4399_v55, %v4398_v35 }
 0xe41   : > { %v4551_v53 = vunpack.c.l.bf16 %v8843_v20  ;;  %v4552_v21 = vunpack.c.h.bf16 %v8843_v20  ;;  %v4609_v60 = vsub.f32 %v4402_v27, %v4545_v22  ;;  %v4541_v61 = vunpack.c.l.bf16 %v8870_v33  ;;  %v9532_v22 = vld [vmem:[#allocation58_spill] sm:$0xff] }
 0xe42   : > { %v4542_v49 = vunpack.c.h.bf16 %v8870_v33 }
 0xe43   : > { %v4615_v39 = vsub.f32 %v4408_v56, %v4551_v53  ;;  %v4616_v37 = vsub.f32 %v4409_v51, %v4552_v21  ;;  %v8861_v56 = vpack.c.bf16 %v4401_v32, %v4400_v57  ;;  %v4546_v51 = vunpack.c.h.bf16 %v8854_v2 }
 0xe44   : > { %v4611_v53 = vsub.f32 %v4404_v58, %v4547_v23  ;;  %v4612_v21 = vsub.f32 %v4405_v63, %v4548_v48  ;;  %v4692_v58 = vpop.permute.xlu1 %4691  ;;  %v9530_v63 = vld [vmem:[#allocation69_spill] sm:$0xff]  ;;  %v4394_v23 = vmul.f32 %v8789_v31, %v9531_v44  ;;  %v4606_v42 = vsub.f32 %v4399_v55, %v4542_v49 }
 0xe45   : > { %v4648_v28 = vpack.c.bf16 %v4616_v37, %v4615_v39  ;;  %v4543_v15 = vunpack.c.l.bf16 %v8861_v56  ;;  %v4544_v11 = vunpack.c.h.bf16 %v8861_v56  ;;  %v4610_v17 = vsub.f32 %v4403_v14, %v4546_v51 }
 0xe46   : > { %v4646_v39 = vpack.c.bf16 %v4612_v21, %v4611_v53  ;;  %v4397_v37 = vmul.f32 %v8800_v45, %v9530_v63  ;;  %v4395_v51 = vmul.f32 %v8778_v0, %v9532_v22  ;;  %v4775_v53 = vsel %vm1524_vm5, %v8585_v24, %v4696_v8 }
 0xe47   : > { %4743 = vrot.lane.b32.xlu0 %v4648_v28, %s6175_s26  ;;  %v4607_v52 = vsub.f32 %v4400_v57, %v4543_v15  ;;  %v4608_v28 = vsub.f32 %v4401_v32, %v4544_v11  ;;  %v4645_v27 = vpack.c.bf16 %v4610_v17, %v4609_v60  ;;  %v4423_v24 = vsub.s32 2, %v8818_v18 }
 0xe48   : > { %v8879_v48 = vpack.c.bf16 %v4397_v37, %v4396_v16  ;;  %v4690_v31 = vpop.permute.xlu1 %4689  ;;  %v8890_v21 = vpack.c.bf16 %v4395_v51, %v4394_v23  ;;  %v4771_v8 = vsel %vm1524_vm5, %v8578_v26, %v4694_v34  ;;  %v4767_v26 = vsel %vm1524_vm5, %v8588_v40, %v4692_v58  ;;  %v4955_v34 = vld [vmem:[#allocation4] sm:$0xff] }
 0xe49   : > { %v4644_v0 = vpack.c.bf16 %v4608_v28, %v4607_v52  ;;  %v4424_v11 = vrot.slane %v8826_v5, %v4423_v24  ;;  %v4763_v49 = vsel %vm1524_vm5, %v8598_v19, %v4690_v31  ;;  %v4415_v19 = vsub.s32 0, %v8818_v18 }
 0xe4a   : > { %v4539_v57 = vunpack.c.l.bf16 %v8879_v48  ;;  %v4540_v32 = vunpack.c.h.bf16 %v8879_v48  ;;  %v4537_v15 = vunpack.c.l.bf16 %v8890_v21  ;;  %v4427_v22 = vsub.s32 3, %v8818_v18 }
 0xe4b   : > { %4741 = vrot.lane.b32.xlu0 %v4647_v25, %s6175_s26  ;;  %v4605_v25 = vsub.f32 %v4398_v35, %v4541_v61  ;;  %v4538_v35 = vunpack.c.h.bf16 %v8890_v21  ;;  %vm4431_vm2 = vcmp.eq.s32.totalorder %v8818_v18, %v4424_v11  ;;  %vm4435_vm3 = vcmp.eq.s32.totalorder %v8829_v1, %v4424_v11 }
 0xe4c   : > { %v4603_v55 = vsub.f32 %v4396_v16, %v4539_v57  ;;  %v4604_v60 = vsub.f32 %v4397_v37, %v4540_v32  ;;  %vm8910_vm4 = vmpackc.low %vm4435_vm3, %vm4431_vm2  ;;  %v4601_v16 = vsub.f32 %v4394_v23, %v4537_v15 }
 0xe4d   : > { %v4643_v17 = vpack.c.bf16 %v4606_v42, %v4605_v25  ;;  %v4602_v37 = vsub.f32 %v4395_v51, %v4538_v35 }
 0xe4e   : > { %v4642_v44 = vpack.c.bf16 %v4604_v60, %v4603_v55  ;;  %v9536_v60 = vld [vmem:[#allocation68_spill] sm:$0xff] }
 0xe4f   : > { %4739 = vrot.lane.b32.xlu0 %v4646_v39, %s6175_s26  ;;  %v4641_v58 = vpack.c.bf16 %v4602_v37, %v4601_v16 }
 0xe51   : > { %v4712_v14 = vpop.permute.xlu0 %4711 }
 0xe52   : > { %v4807_v45 = vsel %vm1524_vm5, %v8681_v13, %v4712_v14 }
 0xe53   : > { %4737 = vrot.lane.b32.xlu0 %v4645_v27, %s6175_s26  ;;  %5521 = vmatprep.subr.bf16.mxu1 %v4807_v45 }
 0xe54   : > { %5522 = vmatpush3.bf16.msra.mxu1 %v4775_v53  ;;  %v4428_v53 = vrot.slane %v8826_v5, %v4427_v22 }
 0xe55   : > { %v4710_v36 = vpop.permute.xlu0 %4709 }
 0xe56   : > { %v4803_v13 = vsel %vm1524_vm5, %v8674_v38, %v4710_v36  ;;  %v4688_v38 = vpop.permute.xlu1 %4687  ;;  %vm4432_vm9 = vcmp.eq.s32.totalorder %v8818_v18, %v4428_v53  ;;  %vm4436_vm10 = vcmp.eq.s32.totalorder %v8829_v1, %v4428_v53 }
 0xe57   : > { %4735 = vrot.lane.b32.xlu0 %v4644_v0, %s6175_s26  ;;  %5523 = vmatprep.subr.bf16.mxu1 %v4803_v13  ;;  %v4759_v23 = vsel %vm1524_vm5, %v8609_v30, %v4688_v38  ;;  %v4416_v30 = vrot.slane %v8826_v5, %v4415_v19  ;;  %vm5345_vm12 = vmpackc.low %vm4436_vm10, %vm4432_vm9 }
 0xe58   : > { %5524 = vmatpush3.bf16.msra.mxu1 %v4771_v8 }
 0xe59   : > { %v4708_v39 = vpop.permute.xlu0 %4707  ;;  %vm4429_vm6 = vcmp.eq.s32.totalorder %v8818_v18, %v4416_v30  ;;  %vm4433_vm8 = vcmp.eq.s32.totalorder %v8829_v1, %v4416_v30 }
 0xe5a   : > { %v4799_v63 = vsel %vm1524_vm5, %v8684_v3, %v4708_v39  ;;  %v4686_v40 = vpop.permute.xlu1 %4685  ;;  %vm5343_vm11 = vmpackc.low %vm4433_vm8, %vm4429_vm6 }
 0xe5b   : > { %4733 = vrot.lane.b32.xlu0 %v4643_v17, %s6175_s26  ;;  %5525 = vmatprep.subr.bf16.mxu1 %v4799_v63  ;;  %v4755_v51 = vsel %vm1524_vm5, %v8620_v9, %v4686_v40 }
 0xe5c   : > { %5526 = vmatpush3.bf16.msra.mxu1 %v4767_v26 }
 0xe5d   : > { %v4706_v61 = vpop.permute.xlu0 %4705 }
 0xe5e   : > { %v4795_v3 = vsel %vm1524_vm5, %v8696_v12, %v4706_v61  ;;  %v4684_v27 = vpop.permute.xlu1 %4683 }
 0xe5f   : > { %4731 = vrot.lane.b32.xlu0 %v4642_v44, %s6175_s26  ;;  %5527 = vmatprep.subr.bf16.mxu1 %v4795_v3  ;;  %v4751_v31 = vsel %vm1524_vm5, %v8631_v10, %v4684_v27  ;;  %v9535_v10 = vmov 1.0|1.0  }
 0xe60   : > { %5528 = vmatpush3.bf16.msra.mxu1 %v4763_v49 }
 0xe61   : > { %v4704_v52 = vpop.permute.xlu0 %4703 }
 0xe62   : > { %v4791_v28 = vsel %vm1524_vm5, %v8707_v46, %v4704_v52 }
 0xe63   : > { %4729 = vrot.lane.b32.xlu0 %v4641_v58, %s6175_s26  ;;  %5529 = vmatprep.subr.bf16.mxu1 %v4791_v28 }
 0xe64   : > { %5530 = vmatpush3.bf16.msra.mxu1 %v4759_v23 }
 0xe65   : > { %v4702_v12 = vpop.permute.xlu0 %4701 }
 0xe66   : > { %v4787_v14 = vsel %vm1524_vm5, %v8718_v7, %v4702_v12  ;;  %v4682_v7 = vpop.permute.xlu1 %4681 }
 0xe67   : > { %5531 = vmatprep.subr.bf16.mxu1 %v4787_v14 }
 0xe68   : > { %5532 = vmatpush3.bf16.msra.mxu1 %v4755_v51  ;;  %v4956_v51 = vld [vmem:[#allocation4 + $0x8] sm:$0xff] }
 0xe69   : > { %v4700_v46 = vpop.permute.xlu0 %4699 }
 0xe6a   : > { %v4783_v45 = vsel %vm1524_vm5, %v8727_v47, %v4700_v46  ;;  %v4747_v47 = vsel %vm1524_vm5, %v8640_v62, %v4682_v7 }
 0xe6b   : > { %5533 = vmatprep.subr.bf16.mxu1 %v4783_v45 }
 0xe6c   : > { %5534 = vmatpush3.bf16.msra.mxu1 %v4751_v31 }
 0xe6d   : > { %v4698_v57 = vpop.permute.xlu0 %4697 }
 0xe6e   : > { %v4779_v9 = vsel %vm1524_vm5, %v8734_v29, %v4698_v57 }
 0xe6f   : > { %5535 = vmatprep.subr.bf16.mxu1 %v4779_v9 }
 0xe70   : > { %5536 = vmatpush3.bf16.msra.mxu1 %v4747_v47 }
 0xe71   : > { %v4728_v5 = vpop.permute.xlu1 %4727 }
 0xe72   : > { %v4839_v18 = vsel %vm1524_vm5, %v8750_v6, %v4728_v5 }
 0xe73   : > { %5344 = vmatmul.mubr.msk.bf16.vlgmr.msra.gmra.mxu1 %vm5343_vm11, %v9535_v10 }
 0xe74   : > { %5346 = vmatprep.mubr.msk.bf16.mxu1 %vm5345_vm12, %v9535_v10 }
 0xe75   : > { %v4726_v32 = vpop.permute.xlu1 %4725 }
 0xe76   : > { %v4835_v36 = vsel %vm1524_vm5, %v8745_v4, %v4726_v32 }
 0xe79   : > { %v4724_v25 = vpop.permute.xlu1 %4723 }
 0xe7a   : > { %v4831_v6 = vsel %vm1524_vm5, %v8754_v41, %v4724_v25 }
 0xe7d   : > { %v4722_v62 = vpop.permute.xlu1 %4721 }
 0xe81   : > { %v4720_v24 = vpop.permute.xlu1 %4719 }
 0xe85   : > { %v4718_v4 = vpop.permute.xlu1 %4717 }
 0xe89   : > { %v4716_v55 = vpop.permute.xlu1 %4715 }
 0xeb9   : > { %v4744_v42 = vpop.permute.xlu0 %4743 }
 0xeba   : > { %v4871_v29 = vsel %vm1524_vm5, %v8843_v20, %v4744_v42 }
 0xebb   : > { %5543 = vmatprep.subr.bf16.mxu1 %v4871_v29 }
 0xebc   : > { %5544 = vmatpush3.bf16.msra.mxu1 %v4839_v18 }
 0xebd   : > { %v4742_v1 = vpop.permute.xlu0 %4741 }
 0xebe   : > { %v4867_v0 = vsel %vm1524_vm5, %v8838_v59, %v4742_v1  ;;  %v4827_v59 = vsel %vm1524_vm5, %v8763_v43, %v4722_v62  ;;  %v4819_v43 = vsel %vm1524_vm5, %v9536_v60, %v4718_v4 }
 0xebf   : > { %5545 = vmatprep.subr.bf16.mxu1 %v4867_v0 }
 0xec0   : > { %5546 = vmatpush3.bf16.msra.mxu1 %v4835_v36 }
 0xec1   : > { %v4740_v13 = vpop.permute.xlu0 %4739 }
 0xec2   : > { %v4863_v20 = vsel %vm1524_vm5, %v8846_v50, %v4740_v13  ;;  %v4823_v50 = vsel %vm1524_vm5, %v8772_v54, %v4720_v24  ;;  %v4714_v54 = vpop.permute.xlu1 %4713 }
 0xec3   : > { %5547 = vmatprep.subr.bf16.mxu1 %v4863_v20 }
 0xec4   : > { %5548 = vmatpush3.bf16.msra.mxu1 %v4831_v6 }
 0xec5   : > { %v4738_v8 = vpop.permute.xlu0 %4737 }
 0xec6   : > { %v4859_v15 = vsel %vm1524_vm5, %v8854_v2, %v4738_v8 }
 0xec7   : > { %5549 = vmatprep.subr.bf16.mxu1 %v4859_v15 }
 0xec8   : > { %5550 = vmatpush3.bf16.msra.mxu1 %v4827_v59 }
 0xec9   : > { %v4736_v11 = vpop.permute.xlu0 %4735 }
 0xeca   : > { %v4855_v35 = vsel %vm1524_vm5, %v8861_v56, %v4736_v11  ;;  %v9537_v56 = vld [vmem:[#allocation73_spill] sm:$0xff] }
 0xecb   : > { %5551 = vmatprep.subr.bf16.mxu1 %v4855_v35  ;;  %v4815_v38 = vsel %vm1524_vm5, %v9537_v56, %v4716_v55 }
 0xecc   : > { %5552 = vmatpush3.bf16.msra.mxu1 %v4823_v50 }
 0xecd   : > { %v4734_v41 = vpop.permute.xlu0 %4733 }
 0xece   : > { %v4851_v2 = vsel %vm1524_vm5, %v8870_v33, %v4734_v41  ;;  %v9538_v33 = vld [vmem:[#allocation74_spill] sm:$0xff] }
 0xecf   : > { %5553 = vmatprep.subr.bf16.mxu1 %v4851_v2  ;;  %v4811_v16 = vsel %vm1524_vm5, %v9538_v33, %v4714_v54 }
 0xed0   : > { %5554 = vmatpush3.bf16.msra.mxu1 %v4819_v43 }
 0xed1   : > { %v4732_v17 = vpop.permute.xlu0 %4731 }
 0xed2   : > { %v4847_v39 = vsel %vm1524_vm5, %v8879_v48, %v4732_v17 }
 0xed3   : > { %5555 = vmatprep.subr.bf16.mxu1 %v4847_v39 }
 0xed4   : > { %5556 = vmatpush3.bf16.msra.mxu1 %v4815_v38 }
 0xed5   : > { %v4730_v63 = vpop.permute.xlu0 %4729 }
 0xed6   : > { %v4843_v26 = vsel %vm1524_vm5, %v8890_v21, %v4730_v63 }
 0xed7   : > { %5557 = vmatprep.subr.bf16.mxu1 %v4843_v26 }
 0xed8   : > { %5558 = vmatpush3.bf16.msra.mxu1 %v4811_v16 }
 0xedb   : > { %5348 = vmatmul.mubr.msk.bf16.vlgmr.msra.gmra.mxu1 %vm8910_vm4, %v9535_v10 }
 0xf33   : > { %v5537_v48 = vpop.f32.mrf.mxu1 }
 0xf35   : > { %v5538_v37 = vpop.f32.mrf.mxu1 }
 0xf36   : > { %v5539_v40 = vadd.f32 %v5538_v37, %v5537_v48 }
 0xf37   : > { %v5540_v44 = vpop.f32.mrf.mxu1 }
 0xf39   : > { %v5541_v61 = vpop.f32.mrf.mxu1 }
 0xf3a   : > { %v5542_v23 = vadd.f32 %v5541_v61, %v5540_v44 }
 0xf9b   : > { %v5559_v3 = vpop.f32.mrf.mxu1 }
 0xf9d   : > { %v5560_v49 = vpop.f32.mrf.mxu1 }
 0xf9e   : > { %v5561_v58 = vadd.f32 %v5560_v49, %v5559_v3 }
 0xf9f   : > { %v5562_v52 = vpop.f32.mrf.mxu1 }
 0xfa0   : > { %v4949_v28 = vadd.f32 %v5561_v58, %v5539_v40 }
 0xfa1   : > { %v5563_v21 = vpop.f32.mrf.mxu1 }
 0xfa2   : > { %v5564_v12 = vadd.f32 %v5563_v21, %v5562_v52  ;;  %4959 = vrot.lane.b32.xlu0 %v4949_v28, %s6177_s27 }
 0xfa4   : > { %v4952_v19 = vadd.f32 %v5564_v12, %v5542_v23 }
 0xfa6   : > { %4961 = vrot.lane.b32.xlu1 %v4952_v19, %s6177_s27 }
0x1014   : > { %v4960_v27 = vpop.permute.xlu0 %4959 }
0x1015   : > { %v4965_v14 = vadd.f32 %v4960_v27, %v4949_v28 }
0x1017   : > { %v4967_v22 = vadd.f32 %v4965_v14, %v4955_v34 }
0x1018   : > { %v4962_v46 = vpop.permute.xlu1 %4961 }
0x1019   : > { %4969 = vst.msk [vmem:[#allocation4] sm:$0xff] %vm1524_vm5, %v4967_v22  ;;  %v4966_v30 = vadd.f32 %v4962_v46, %v4952_v19  ;;  %4974 = sbr.rel (%p5349_p12) target bundleno = 4208 (0x1070), region = 52 }
0x101b   : > { %v4968_v45 = vadd.f32 %v4966_v30, %v4956_v51 }
0x101d   : > { %4970 = vst.msk [vmem:[#allocation4 + $0x8] sm:$0xff] %vm1524_vm5, %v4968_v45 }
0x1020   : > { %v4975_v53 = vld [vmem:[#allocation4] sm:$0xff] }
0x1021   : > { %v4977_v7 = vsel %vm1524_vm5, %v4975_v53, 0.0 }
0x1024   : > { %v4976_v31 = vld [vmem:[#allocation4 + $0x8] sm:$0xff] }
0x1025   : > { %v4978_v57 = vsel %vm1524_vm5, %v4976_v31, 0.0 }
0x1026   : > { %v4979_v9 = vadd.f32 %v4978_v57, %v4977_v7 }
0x1028   : > { %v4980_v47 = vrot.slane %v4979_v9, 4 }
0x102a   : > { %v4981_v10 = vadd.f32 %v4980_v47, %v4979_v9 }
0x102c   : > { %v4982_v5 = vrot.slane %v4981_v10, 2 }
0x102e   : > { %v4983_v32 = vadd.f32 %v4982_v5, %v4981_v10 }
0x1030   : > { %v4984_v25 = vrot.slane %v4983_v32, 1 }
0x1032   : > { %v4985_v42 = vadd.f32 %v4984_v25, %v4983_v32 }
0x1034   : > { %v4987_v29 = vmul.f32 0.0625, %v4985_v42 }
0x1036   : > { %v4988_v18 = vsub.f32 %v4975_v53, %v4987_v29  ;;  %v4989_v62 = vsub.f32 %v4976_v31, %v4987_v29 }
0x1038   : > { %v4990_v1 = vmul.f32 %v4988_v18, %v4988_v18  ;;  %v4991_v0 = vmul.f32 %v4989_v62, %v4989_v62 }
0x103a   : > { %v4992_v36 = vsel %vm1524_vm5, %v4990_v1, 0.0  ;;  %v4993_v13 = vsel %vm1524_vm5, %v4991_v0, 0.0 }
0x103b   : > { %v4994_v24 = vadd.f32 %v4993_v13, %v4992_v36 }
0x103d   : > { %v4995_v20 = vrot.slane %v4994_v24, 4 }
0x103f   : > { %v4996_v6 = vadd.f32 %v4995_v20, %v4994_v24 }
0x1041   : > { %v4997_v8 = vrot.slane %v4996_v6, 2 }
0x1043   : > { %v4998_v15 = vadd.f32 %v4997_v8, %v4996_v6 }
0x1045   : > { %v4999_v59 = vrot.slane %v4998_v15, 1 }
0x1047   : > { %v5000_v4 = vadd.f32 %v4999_v59, %v4998_v15 }
0x1049   : > { %v5001_v11 = vmul.f32 0.0625, %v5000_v4 }
0x104b   : > { %v5002_v35 = vadd.f32 1e-05, %v5001_v11 }
0x104d   : > { %6118 = vrsqrt.f32 %v5002_v35  ;;  %vm5005_vm13 = vcmp.eq.f32.partialorder %v5002_v35, inf  ;;  %v5008_v41 = vand.u32 2147483648, %v5002_v35  ;;  %vm5007_vm14 = vcmp.eq.f32.partialorder %v5002_v35, 0.0 }
0x105a   : > { %v6119_v50 = vpop.eup %6118 }
0x105b   : > { %v5004_v55 = vmul.f32 %v6119_v50, %v5002_v35 }
0x105d   : > { %v5006_v2 = vsel %vm5005_vm13, %v5002_v35, %v5004_v55 }
0x105e   : > { %v5009_v60 = vsel %vm5007_vm14, %v5008_v41, %v5006_v2 }
0x105f   : > { %6120 = vrcp.f32 %v5009_v60 }
0x106c   : > { %v6121_v43 = vpop.eup %6120 }
0x106d   : > { %v5011_v17 = vmul.f32 %v6121_v43, %v4988_v18  ;;  %v5012_v39 = vmul.f32 %v6121_v43, %v4989_v62 }
0x106f   : > { %5013 = vst.msk [vmem:[#allocation4] sm:$0xff] %vm1524_vm5, %v5011_v17  ;;  %5014 = vst.msk [vmem:[#allocation4 + $0x8] sm:$0xff] %vm1524_vm5, %v5012_v39 }
0x1070 PF: > { %p5839_p13 = scmp.eq.s32.totalorder %s6231_s0, 3  ;;  %s6179_s8 = smov [#allocation4]  }
0x1071   : > { %s5021_s11 = sshll.u32 %s6179_s8, 4  ;;  %s5022_s11 = int_to_ptr.vmem [resolvable:$true] %s5021_s11 }
0x1072   : > { %s6134_s12 = scalar_lea.vmem %s5022_s11, 256  ;;  %p6141_p3 = scmp.lt.s32.totalorder %s5022_s11, %s5022_s11 }
0x1073   : > { %p6135_p0 = scmp.ne.s32.totalorder %s5022_s11, %s6134_s12  ;;  %p6142_p4 = scmp.lt.s32.totalorder %s6134_s12, %s6134_s12 }
0x1075   : > { %p6136_p1 = pnand %p6135_p0, %p5839_p13  ;;  %p6143_p5 = por %p6142_p4, %p6141_p3 }
0x1077   : > { %p6137_p2 = pneg %p6136_p1 }
0x1079   : > { %p6144_p6 = pnand %p6143_p5, %p6137_p2 }
0x107b   : > { %6147 = shalt.err (!%p6144_p6)
}
0x107c   : > { %s6180_s13 = smov 128   ;;  %s6181_s14 = smov 8  }
0x107d   : > { %5836 = dma.vmem_to_hbm [thread:$0]  (%p5839_p13), %s5022_s11, 256, %s9014_s7, [#allocation5], %s6180_s13, %s6180_s13, %s6181_s14  }
0x107e   : > { %6165 = dma.done.wait (%p5839_p13), [#allocation5], 256  }
0x107f   : > { %6167 = vsyncadd (%p5839_p13), [#allocation5], 4294967040 }
0x1080 PF: > { %s24_s29 = sadd.s32 1, %s6170_s29  }
0x1081   : > { %p21_p7 = scmp.ge.s32.totalorder %s24_s29, 6  }
0x1083   :  { %23 = sbr.rel (!%p21_p7) target bundleno = 16 (0x10), region = 88 }
0x1088   :  { %5037 = vsyncpa [#allocation5], 1 }
0x1089   :  { %5039 = vsyncpa [#allocation5 + $0x1], 1 }

</bundles_post_ra>
